<compile_context>
chip_gen: v7x
topology: tpu7x:2x2x1
jax: 0.10.0
libtpu: 0.0.40
codegen_flags: <defaults>
</compile_context>

<pallas_src>
import numpy as np
import jax
import jax.numpy as jnp
from jax import lax
from jax.experimental import pallas as pl
from jax.experimental.pallas import tpu as pltpu

_BT = 8                 # images per grid step (batch tile)
_F32 = jnp.float32
_BF16 = jnp.bfloat16


# ------------------------------ Pallas kernel -------------------------------

def _net_fused_kernel(x_ref, se_ref, b1_ref, b1s_ref, bias1_ref,
                      te_ref, b2_ref, b2s_ref, bias2_ref,
                      pick_ref, g_ref, fc1b_ref, fc2w_ref, fc2b_ref,
                      o_ref):
    """Whole Net forward for a tile of _BT images (bf16 matmuls, f32 acc)."""

    def mm(a, b):
        return jnp.dot(a, b, preferred_element_type=_F32)

    xb = x_ref[...].astype(_BF16)                              # (BT*28, 28)

    # ---------------- conv1 (1->10, k5) + 2x2 max-pool + ReLU ----------------
    half1 = se_ref.shape[1] // 2                               # BT*12
    # u[i]: rows (2*ph+i) stacked on rows (2*ph+1+i) of every image
    u = [mm(se_ref[i], xb).astype(_BF16) for i in range(5)]    # (2*BT*12, 28)
    accw0 = mm(u[0], b1_ref[0])                                # w-corner 0
    accw1 = mm(u[0], b1s_ref[0])                               # w-corner 1
    for i in range(1, 5):
        accw0 = accw0 + mm(u[i], b1_ref[i])
        accw1 = accw1 + mm(u[i], b1s_ref[i])
    p1 = jnp.maximum(jnp.maximum(accw0[:half1], accw0[half1:]),
                     jnp.maximum(accw1[:half1], accw1[half1:]))
    h1 = jnp.maximum(p1 + bias1_ref[...], 0.0).astype(_BF16)   # (BT*12, 240)

    # --------- conv2 (10->20, k5) + Dropout2d + 2x2 max-pool + ReLU ----------
    # TODO(synk): Dropout2d / F.dropout are identity (inference mode); the
    # training-mode stochastic dropout of the PyTorch module is not reproduced.
    half2 = te_ref.shape[1] // 2                               # BT*4
    v = [mm(te_ref[i], h1).astype(_BF16) for i in range(5)]    # (2*BT*4, 240)
    accq0 = mm(v[0], b2_ref[0])
    accq1 = mm(v[0], b2s_ref[0])
    for i in range(1, 5):
        accq0 = accq0 + mm(v[i], b2_ref[i])
        accq1 = accq1 + mm(v[i], b2s_ref[i])
    p2 = jnp.maximum(jnp.maximum(accq0[:half2], accq0[half2:]),
                     jnp.maximum(accq1[:half2], accq1[half2:]))
    h2 = jnp.maximum(p2 + bias2_ref[...], 0.0).astype(_BF16)   # (BT*4, 160)

    # ------ flatten (torch NCHW order) + fc1 + ReLU + fc2 + log_softmax ------
    z1 = mm(mm(pick_ref[0], h2).astype(_BF16), g_ref[0])
    for qh in range(1, 4):
        z1 = z1 + mm(mm(pick_ref[qh], h2).astype(_BF16), g_ref[qh])
    z1 = jnp.maximum(z1 + fc1b_ref[...], 0.0)                  # (BT, 50)
    logits = mm(z1.astype(_BF16), fc2w_ref[...]) + fc2b_ref[...]   # (BT, 10)
    m = jnp.max(logits, axis=-1, keepdims=True)
    lse = m + jnp.log(jnp.sum(jnp.exp(logits - m), axis=-1, keepdims=True))
    o_ref[...] = (logits - lse).astype(o_ref.dtype)


# -------------------- constant (geometry/weight) matrices --------------------

def _selection_matrices(bt):
    """0/1 row-selection matrices, block-diagonal across the bt images."""
    n = np.arange(bt)[:, None]

    # conv1: pick x rows 2*ph+i (top half) and 2*ph+1+i (bottom half)
    se = np.zeros((5, 2 * bt * 12, bt * 28), np.float32)
    ph = np.arange(12)[None, :]
    rows1 = (12 * n + ph).ravel()
    for i in range(5):
        se[i, rows1, (28 * n + 2 * ph + i).ravel()] = 1.0
        se[i, bt * 12 + rows1, (28 * n + 2 * ph + 1 + i).ravel()] = 1.0

    # conv2: pick h1 rows 2*qh+i and 2*qh+1+i
    te = np.zeros((5, 2 * bt * 4, bt * 12), np.float32)
    qh = np.arange(4)[None, :]
    rows2 = (4 * n + qh).ravel()
    for i in range(5):
        te[i, rows2, (12 * n + 2 * qh + i).ravel()] = 1.0
        te[i, bt * 4 + rows2, (12 * n + 2 * qh + 1 + i).ravel()] = 1.0

    # fc1: pick h2 row (4n + qh) per image
    pick = np.zeros((4, bt, 4 * bt), np.float32)
    for q in range(4):
        pick[q, np.arange(bt), 4 * np.arange(bt) + q] = 1.0

    return (jnp.asarray(se, _BF16), jnp.asarray(te, _BF16),
            jnp.asarray(pick, _BF16))


def _banded_conv1(w1, dw):
    # B[i, (w+dw)+j, 10*w+co] = w1[co, 0, i, j]
    i_ix, w_ix, j_ix, co_ix = np.meshgrid(
        np.arange(5), np.arange(24), np.arange(5), np.arange(10), indexing="ij")
    vals = jnp.transpose(w1[:, 0, :, :], (1, 2, 0))               # (i, j, co)
    vals = jnp.broadcast_to(vals[:, None, :, :], (5, 24, 5, 10))  # (i, w, j, co)
    return (jnp.zeros((5, 28, 240), _F32)
            .at[i_ix, w_ix + dw + j_ix, 10 * w_ix + co_ix]
            .set(vals, mode="drop")
            .astype(_BF16))


def _banded_conv2(w2, dw):
    # B[i, 20*((q+dw)+j)+ci, 20*q+do] = w2[do, ci, i, j]
    i_ix, q_ix, j_ix, ci_ix, do_ix = np.meshgrid(
        np.arange(5), np.arange(8), np.arange(5), np.arange(10), np.arange(20),
        indexing="ij")
    vals = jnp.transpose(w2, (2, 3, 1, 0))                        # (i, j, ci, do)
    vals = jnp.broadcast_to(vals[:, None, :, :, :], (5, 8, 5, 10, 20))
    return (jnp.zeros((5, 240, 160), _F32)
            .at[i_ix, 20 * (q_ix + dw + j_ix) + ci_ix, 20 * q_ix + do_ix]
            .set(vals, mode="drop")
            .astype(_BF16))


def _fc1_gather(fc1_w):
    # G[qh, 40*qw+do, k] = fc1_w[k, do*16 + qh*4 + qw]  (torch x.view(-1,320) order)
    qh_ix, qw_ix, do_ix, k_ix = np.meshgrid(
        np.arange(4), np.arange(4), np.arange(20), np.arange(50), indexing="ij")
    vals = fc1_w.T[(do_ix * 16 + qh_ix * 4 + qw_ix), k_ix]        # (4,4,20,50)
    return (jnp.zeros((4, 160, 50), _F32)
            .at[qh_ix, 40 * qw_ix + do_ix, k_ix].set(vals)
            .astype(_BF16))


def _build_constants(params, bt):
    se, te, pick = _selection_matrices(bt)
    return (
        se,
        _banded_conv1(params["conv1_w"], 0),
        _banded_conv1(params["conv1_w"], 1),
        jnp.tile(params["conv1_b"].astype(_F32), 24)[None, :],    # (1, 240)
        te,
        _banded_conv2(params["conv2_w"], 0),
        _banded_conv2(params["conv2_w"], 1),
        jnp.tile(params["conv2_b"].astype(_F32), 8)[None, :],     # (1, 160)
        pick,
        _fc1_gather(params["fc1_w"]),
        params["fc1_b"].astype(_F32)[None, :],                    # (1, 50)
        params["fc2_w"].T.astype(_BF16),                          # (50, 10)
        params["fc2_b"].astype(_F32)[None, :],                    # (1, 10)
    )


def _const_spec(a):
    nd = a.ndim
    return pl.BlockSpec(a.shape, lambda g, _nd=nd: (0,) * _nd)


# ------------------------------- forward pass --------------------------------

@jax.jit
def net_forward(x_nchw, params):
    """log-softmax class scores, shape (N, 10)."""
    bt = _BT
    n = x_nchw.shape[0]
    npad = ((n + bt - 1) // bt) * bt
    x = x_nchw.reshape(n, 28, 28).astype(_F32)
    if npad != n:
        x = jnp.concatenate([x, jnp.zeros((npad - n, 28, 28), _F32)], axis=0)
    x_rows = x.reshape(npad * 28, 28)        # images stacked along rows

    consts = _build_constants(params, bt)
    out = pl.pallas_call(
        _net_fused_kernel,
        out_shape=jax.ShapeDtypeStruct((npad, 10), _F32),
        grid=(npad // bt,),
        in_specs=[pl.BlockSpec((bt * 28, 28), lambda g: (g, 0))]
                 + [_const_spec(a) for a in consts],
        out_specs=pl.BlockSpec((bt, 10), lambda g: (g, 0)),
        compiler_params=pltpu.CompilerParams(
            dimension_semantics=("parallel",),
            vmem_limit_bytes=32 * 1024 * 1024),
    )(x_rows, *consts)
    return out[:n]


# --------------------------------- test glue ---------------------------------

def init_params(key):
    ks = jax.random.split(key, 8)
    return {
        "conv1_w": 0.20 * jax.random.normal(ks[0], (10, 1, 5, 5), _F32),
        "conv1_b": 0.10 * jax.random.normal(ks[1], (10,), _F32),
        "conv2_w": 0.05 * jax.random.normal(ks[2], (20, 10, 5, 5), _F32),
        "conv2_b": 0.10 * jax.random.normal(ks[3], (20,), _F32),
        "fc1_w": 0.05 * jax.random.normal(ks[4], (50, 320), _F32),
        "fc1_b": 0.10 * jax.random.normal(ks[5], (50,), _F32),
        "fc2_w": 0.10 * jax.random.normal(ks[6], (10, 50), _F32),
        "fc2_b": 0.10 * jax.random.normal(ks[7], (10,), _F32),
    }


def reference_forward(x, params):
    """Pure-JAX reference with matching bf16-operand / f32-accumulate rounding."""
    def r(a):
        return a.astype(_BF16).astype(_F32)

    hp = lax.Precision.HIGHEST
    n = x.shape[0]
    y = lax.conv_general_dilated(
        r(x.astype(_F32)), r(params["conv1_w"]), (1, 1), "VALID",
        dimension_numbers=("NCHW", "OIHW", "NCHW"), precision=hp)
    y = y + params["conv1_b"][None, :, None, None]
    y = lax.reduce_window(y, -jnp.inf, lax.max, (1, 1, 2, 2), (1, 1, 2, 2), "VALID")
    y = jnp.maximum(y, 0.0)
    y = lax.conv_general_dilated(
        r(y), r(params["conv2_w"]), (1, 1), "VALID",
        dimension_numbers=("NCHW", "OIHW", "NCHW"), precision=hp)
    y = y + params["conv2_b"][None, :, None, None]
    y = lax.reduce_window(y, -jnp.inf, lax.max, (1, 1, 2, 2), (1, 1, 2, 2), "VALID")
    y = jnp.maximum(y, 0.0)
    y = y.reshape(n, 320)
    y = jnp.maximum(jnp.dot(r(y), r(params["fc1_w"]).T, precision=hp)
                    + params["fc1_b"], 0.0)
    y = jnp.dot(r(y), r(params["fc2_w"]).T, precision=hp) + params["fc2_b"]
    return jax.nn.log_softmax(y, axis=1)


if __name__ == "__main__":
    key = jax.random.PRNGKey(0)
    pkey, xkey = jax.random.split(key)
    params = init_params(pkey)
    x = jax.random.normal(xkey, (2, 1, 28, 28), jnp.float32)   # NCHW, MNIST-sized

    out = jax.block_until_ready(net_forward(x, params))
    ref = jax.block_until_ready(reference_forward(x, params))

    assert out.shape == (2, 10), out.shape
    max_err = float(jnp.max(jnp.abs(out - ref)))
    assert max_err < 5e-3, f"mismatch vs reference: {max_err}"
    print("KERNEL_OK")
</pallas_src>

<mosaic_0001>
module attributes {stable_mosaic.version = 11 : i64} {
  func.func private @main(%arg0: i32) attributes {dimension_semantics = [#tpu.dimension_semantics<core_parallel>], iteration_bounds = array<i64: 2>, tpu.core_type = #tpu.core_type<sc_scalar_subcore>, window_params = []} {
    return
  }
}

module attributes {stable_mosaic.version = 11 : i64} {
  func.func private @main(%arg0: i32) attributes {dimension_semantics = [#tpu.dimension_semantics<core_parallel>], iteration_bounds = array<i64: 2>, tpu.core_type = #tpu.core_type<sc_scalar_subcore>, window_params = []} {
    return
  }
}

module attributes {stable_mosaic.version = 11 : i64} {
  func.func @_net_fused_kernel(%arg0: i32, %arg1: memref<224x28xf32, #tpu.memory_space<vmem>>, %arg2: memref<5x192x224xbf16, #tpu.memory_space<vmem>>, %arg3: memref<5x28x240xbf16, #tpu.memory_space<vmem>>, %arg4: memref<5x28x240xbf16, #tpu.memory_space<vmem>>, %arg5: memref<1x240xf32, #tpu.memory_space<vmem>>, %arg6: memref<5x64x96xbf16, #tpu.memory_space<vmem>>, %arg7: memref<5x240x160xbf16, #tpu.memory_space<vmem>>, %arg8: memref<5x240x160xbf16, #tpu.memory_space<vmem>>, %arg9: memref<1x160xf32, #tpu.memory_space<vmem>>, %arg10: memref<4x8x32xbf16, #tpu.memory_space<vmem>>, %arg11: memref<4x160x50xbf16, #tpu.memory_space<vmem>>, %arg12: memref<1x50xf32, #tpu.memory_space<vmem>>, %arg13: memref<50x10xbf16, #tpu.memory_space<vmem>>, %arg14: memref<1x10xf32, #tpu.memory_space<vmem>>, %arg15: memref<8x10xf32, #tpu.memory_space<vmem>>) attributes {dimension_semantics = [#tpu.dimension_semantics<parallel>], iteration_bounds = array<i64: 1>, scalar_prefetch = 0 : i64, scratch_operands = 0 : i64, tpu.core_type = #tpu.core_type<tc>, window_params = [{transform_indices = @transform_0, window_bounds = array<i64: 224, 28>}, {pipeline_mode = #tpu.pipeline_mode<synchronous>, transform_indices = @transform_1, window_bounds = array<i64: 5, 192, 224>}, {pipeline_mode = #tpu.pipeline_mode<synchronous>, transform_indices = @transform_2, window_bounds = array<i64: 5, 28, 240>}, {pipeline_mode = #tpu.pipeline_mode<synchronous>, transform_indices = @transform_3, window_bounds = array<i64: 5, 28, 240>}, {pipeline_mode = #tpu.pipeline_mode<synchronous>, transform_indices = @transform_4, window_bounds = array<i64: 1, 240>}, {pipeline_mode = #tpu.pipeline_mode<synchronous>, transform_indices = @transform_5, window_bounds = array<i64: 5, 64, 96>}, {pipeline_mode = #tpu.pipeline_mode<synchronous>, transform_indices = @transform_6, window_bounds = array<i64: 5, 240, 160>}, {pipeline_mode = #tpu.pipeline_mode<synchronous>, transform_indices = @transform_7, window_bounds = array<i64: 5, 240, 160>}, {pipeline_mode = #tpu.pipeline_mode<synchronous>, transform_indices = @transform_8, window_bounds = array<i64: 1, 160>}, {pipeline_mode = #tpu.pipeline_mode<synchronous>, transform_indices = @transform_9, window_bounds = array<i64: 4, 8, 32>}, {pipeline_mode = #tpu.pipeline_mode<synchronous>, transform_indices = @transform_10, window_bounds = array<i64: 4, 160, 50>}, {pipeline_mode = #tpu.pipeline_mode<synchronous>, transform_indices = @transform_11, window_bounds = array<i64: 1, 50>}, {pipeline_mode = #tpu.pipeline_mode<synchronous>, transform_indices = @transform_12, window_bounds = array<i64: 50, 10>}, {pipeline_mode = #tpu.pipeline_mode<synchronous>, transform_indices = @transform_13, window_bounds = array<i64: 1, 10>}, {transform_indices = @transform_14, window_bounds = array<i64: 8, 10>}]} {
    %c0 = arith.constant 0 : index
    %c0_0 = arith.constant 0 : index
    %0 = vector.load %arg1[%c0, %c0_0] : memref<224x28xf32, #tpu.memory_space<vmem>>, vector<224x28xf32>
    %1 = arith.truncf %0 : vector<224x28xf32> to vector<224x28xbf16>
    %c0_1 = arith.constant 0 : index
    %c0_2 = arith.constant 0 : index
    %c0_3 = arith.constant 0 : index
    %2 = vector.load %arg2[%c0_1, %c0_2, %c0_3] : memref<5x192x224xbf16, #tpu.memory_space<vmem>>, vector<1x192x224xbf16>
    %3 = vector.shape_cast %2 : vector<1x192x224xbf16> to vector<192x224xbf16>
    %cst = arith.constant dense<0.000000e+00> : vector<192x28xf32>
    %4 = tpu.matmul %3, %1, %cst {dimension_numbers = #tpu.dot_dimension_numbers<[1], [0], [0], [1], [0, 0, 1, 1], [], []>} : vector<192x224xbf16>, vector<224x28xbf16>, vector<192x28xf32> -> vector<192x28xf32>
    %5 = arith.truncf %4 : vector<192x28xf32> to vector<192x28xbf16>
    %c1 = arith.constant 1 : index
    %c0_4 = arith.constant 0 : index
    %c0_5 = arith.constant 0 : index
    %6 = vector.load %arg2[%c1, %c0_4, %c0_5] : memref<5x192x224xbf16, #tpu.memory_space<vmem>>, vector<1x192x224xbf16>
    %7 = vector.shape_cast %6 : vector<1x192x224xbf16> to vector<192x224xbf16>
    %cst_6 = arith.constant dense<0.000000e+00> : vector<192x28xf32>
    %8 = tpu.matmul %7, %1, %cst_6 {dimension_numbers = #tpu.dot_dimension_numbers<[1], [0], [0], [1], [0, 0, 1, 1], [], []>} : vector<192x224xbf16>, vector<224x28xbf16>, vector<192x28xf32> -> vector<192x28xf32>
    %9 = arith.truncf %8 : vector<192x28xf32> to vector<192x28xbf16>
    %c2 = arith.constant 2 : index
    %c0_7 = arith.constant 0 : index
    %c0_8 = arith.constant 0 : index
    %10 = vector.load %arg2[%c2, %c0_7, %c0_8] : memref<5x192x224xbf16, #tpu.memory_space<vmem>>, vector<1x192x224xbf16>
    %11 = vector.shape_cast %10 : vector<1x192x224xbf16> to vector<192x224xbf16>
    %cst_9 = arith.constant dense<0.000000e+00> : vector<192x28xf32>
    %12 = tpu.matmul %11, %1, %cst_9 {dimension_numbers = #tpu.dot_dimension_numbers<[1], [0], [0], [1], [0, 0, 1, 1], [], []>} : vector<192x224xbf16>, vector<224x28xbf16>, vector<192x28xf32> -> vector<192x28xf32>
    %13 = arith.truncf %12 : vector<192x28xf32> to vector<192x28xbf16>
    %c3 = arith.constant 3 : index
    %c0_10 = arith.constant 0 : index
    %c0_11 = arith.constant 0 : index
    %14 = vector.load %arg2[%c3, %c0_10, %c0_11] : memref<5x192x224xbf16, #tpu.memory_space<vmem>>, vector<1x192x224xbf16>
    %15 = vector.shape_cast %14 : vector<1x192x224xbf16> to vector<192x224xbf16>
    %cst_12 = arith.constant dense<0.000000e+00> : vector<192x28xf32>
    %16 = tpu.matmul %15, %1, %cst_12 {dimension_numbers = #tpu.dot_dimension_numbers<[1], [0], [0], [1], [0, 0, 1, 1], [], []>} : vector<192x224xbf16>, vector<224x28xbf16>, vector<192x28xf32> -> vector<192x28xf32>
    %17 = arith.truncf %16 : vector<192x28xf32> to vector<192x28xbf16>
    %c4 = arith.constant 4 : index
    %c0_13 = arith.constant 0 : index
    %c0_14 = arith.constant 0 : index
    %18 = vector.load %arg2[%c4, %c0_13, %c0_14] : memref<5x192x224xbf16, #tpu.memory_space<vmem>>, vector<1x192x224xbf16>
    %19 = vector.shape_cast %18 : vector<1x192x224xbf16> to vector<192x224xbf16>
    %cst_15 = arith.constant dense<0.000000e+00> : vector<192x28xf32>
    %20 = tpu.matmul %19, %1, %cst_15 {dimension_numbers = #tpu.dot_dimension_numbers<[1], [0], [0], [1], [0, 0, 1, 1], [], []>} : vector<192x224xbf16>, vector<224x28xbf16>, vector<192x28xf32> -> vector<192x28xf32>
    %21 = arith.truncf %20 : vector<192x28xf32> to vector<192x28xbf16>
    %c0_16 = arith.constant 0 : index
    %c0_17 = arith.constant 0 : index
    %c0_18 = arith.constant 0 : index
    %22 = vector.load %arg3[%c0_16, %c0_17, %c0_18] : memref<5x28x240xbf16, #tpu.memory_space<vmem>>, vector<1x28x240xbf16>
    %23 = vector.shape_cast %22 : vector<1x28x240xbf16> to vector<28x240xbf16>
    %cst_19 = arith.constant dense<0.000000e+00> : vector<192x240xf32>
    %24 = tpu.matmul %5, %23, %cst_19 {dimension_numbers = #tpu.dot_dimension_numbers<[1], [0], [0], [1], [0, 0, 1, 1], [], []>} : vector<192x28xbf16>, vector<28x240xbf16>, vector<192x240xf32> -> vector<192x240xf32>
    %c0_20 = arith.constant 0 : index
    %c0_21 = arith.constant 0 : index
    %c0_22 = arith.constant 0 : index
    %25 = vector.load %arg4[%c0_20, %c0_21, %c0_22] : memref<5x28x240xbf16, #tpu.memory_space<vmem>>, vector<1x28x240xbf16>
    %26 = vector.shape_cast %25 : vector<1x28x240xbf16> to vector<28x240xbf16>
    %cst_23 = arith.constant dense<0.000000e+00> : vector<192x240xf32>
    %27 = tpu.matmul %5, %26, %cst_23 {dimension_numbers = #tpu.dot_dimension_numbers<[1], [0], [0], [1], [0, 0, 1, 1], [], []>} : vector<192x28xbf16>, vector<28x240xbf16>, vector<192x240xf32> -> vector<192x240xf32>
    %c1_24 = arith.constant 1 : index
    %c0_25 = arith.constant 0 : index
    %c0_26 = arith.constant 0 : index
    %28 = vector.load %arg3[%c1_24, %c0_25, %c0_26] : memref<5x28x240xbf16, #tpu.memory_space<vmem>>, vector<1x28x240xbf16>
    %29 = vector.shape_cast %28 : vector<1x28x240xbf16> to vector<28x240xbf16>
    %cst_27 = arith.constant dense<0.000000e+00> : vector<192x240xf32>
    %30 = tpu.matmul %9, %29, %cst_27 {dimension_numbers = #tpu.dot_dimension_numbers<[1], [0], [0], [1], [0, 0, 1, 1], [], []>} : vector<192x28xbf16>, vector<28x240xbf16>, vector<192x240xf32> -> vector<192x240xf32>
    %31 = arith.addf %24, %30 : vector<192x240xf32>
    %c1_28 = arith.constant 1 : index
    %c0_29 = arith.constant 0 : index
    %c0_30 = arith.constant 0 : index
    %32 = vector.load %arg4[%c1_28, %c0_29, %c0_30] : memref<5x28x240xbf16, #tpu.memory_space<vmem>>, vector<1x28x240xbf16>
    %33 = vector.shape_cast %32 : vector<1x28x240xbf16> to vector<28x240xbf16>
    %cst_31 = arith.constant dense<0.000000e+00> : vector<192x240xf32>
    %34 = tpu.matmul %9, %33, %cst_31 {dimension_numbers = #tpu.dot_dimension_numbers<[1], [0], [0], [1], [0, 0, 1, 1], [], []>} : vector<192x28xbf16>, vector<28x240xbf16>, vector<192x240xf32> -> vector<192x240xf32>
    %35 = arith.addf %27, %34 : vector<192x240xf32>
    %c2_32 = arith.constant 2 : index
    %c0_33 = arith.constant 0 : index
    %c0_34 = arith.constant 0 : index
    %36 = vector.load %arg3[%c2_32, %c0_33, %c0_34] : memref<5x28x240xbf16, #tpu.memory_space<vmem>>, vector<1x28x240xbf16>
    %37 = vector.shape_cast %36 : vector<1x28x240xbf16> to vector<28x240xbf16>
    %cst_35 = arith.constant dense<0.000000e+00> : vector<192x240xf32>
    %38 = tpu.matmul %13, %37, %cst_35 {dimension_numbers = #tpu.dot_dimension_numbers<[1], [0], [0], [1], [0, 0, 1, 1], [], []>} : vector<192x28xbf16>, vector<28x240xbf16>, vector<192x240xf32> -> vector<192x240xf32>
    %39 = arith.addf %31, %38 : vector<192x240xf32>
    %c2_36 = arith.constant 2 : index
    %c0_37 = arith.constant 0 : index
    %c0_38 = arith.constant 0 : index
    %40 = vector.load %arg4[%c2_36, %c0_37, %c0_38] : memref<5x28x240xbf16, #tpu.memory_space<vmem>>, vector<1x28x240xbf16>
    %41 = vector.shape_cast %40 : vector<1x28x240xbf16> to vector<28x240xbf16>
    %cst_39 = arith.constant dense<0.000000e+00> : vector<192x240xf32>
    %42 = tpu.matmul %13, %41, %cst_39 {dimension_numbers = #tpu.dot_dimension_numbers<[1], [0], [0], [1], [0, 0, 1, 1], [], []>} : vector<192x28xbf16>, vector<28x240xbf16>, vector<192x240xf32> -> vector<192x240xf32>
    %43 = arith.addf %35, %42 : vector<192x240xf32>
    %c3_40 = arith.constant 3 : index
    %c0_41 = arith.constant 0 : index
    %c0_42 = arith.constant 0 : index
    %44 = vector.load %arg3[%c3_40, %c0_41, %c0_42] : memref<5x28x240xbf16, #tpu.memory_space<vmem>>, vector<1x28x240xbf16>
    %45 = vector.shape_cast %44 : vector<1x28x240xbf16> to vector<28x240xbf16>
    %cst_43 = arith.constant dense<0.000000e+00> : vector<192x240xf32>
    %46 = tpu.matmul %17, %45, %cst_43 {dimension_numbers = #tpu.dot_dimension_numbers<[1], [0], [0], [1], [0, 0, 1, 1], [], []>} : vector<192x28xbf16>, vector<28x240xbf16>, vector<192x240xf32> -> vector<192x240xf32>
    %47 = arith.addf %39, %46 : vector<192x240xf32>
    %c3_44 = arith.constant 3 : index
    %c0_45 = arith.constant 0 : index
    %c0_46 = arith.constant 0 : index
    %48 = vector.load %arg4[%c3_44, %c0_45, %c0_46] : memref<5x28x240xbf16, #tpu.memory_space<vmem>>, vector<1x28x240xbf16>
    %49 = vector.shape_cast %48 : vector<1x28x240xbf16> to vector<28x240xbf16>
    %cst_47 = arith.constant dense<0.000000e+00> : vector<192x240xf32>
    %50 = tpu.matmul %17, %49, %cst_47 {dimension_numbers = #tpu.dot_dimension_numbers<[1], [0], [0], [1], [0, 0, 1, 1], [], []>} : vector<192x28xbf16>, vector<28x240xbf16>, vector<192x240xf32> -> vector<192x240xf32>
    %51 = arith.addf %43, %50 : vector<192x240xf32>
    %c4_48 = arith.constant 4 : index
    %c0_49 = arith.constant 0 : index
    %c0_50 = arith.constant 0 : index
    %52 = vector.load %arg3[%c4_48, %c0_49, %c0_50] : memref<5x28x240xbf16, #tpu.memory_space<vmem>>, vector<1x28x240xbf16>
    %53 = vector.shape_cast %52 : vector<1x28x240xbf16> to vector<28x240xbf16>
    %cst_51 = arith.constant dense<0.000000e+00> : vector<192x240xf32>
    %54 = tpu.matmul %21, %53, %cst_51 {dimension_numbers = #tpu.dot_dimension_numbers<[1], [0], [0], [1], [0, 0, 1, 1], [], []>} : vector<192x28xbf16>, vector<28x240xbf16>, vector<192x240xf32> -> vector<192x240xf32>
    %55 = arith.addf %47, %54 : vector<192x240xf32>
    %c4_52 = arith.constant 4 : index
    %c0_53 = arith.constant 0 : index
    %c0_54 = arith.constant 0 : index
    %56 = vector.load %arg4[%c4_52, %c0_53, %c0_54] : memref<5x28x240xbf16, #tpu.memory_space<vmem>>, vector<1x28x240xbf16>
    %57 = vector.shape_cast %56 : vector<1x28x240xbf16> to vector<28x240xbf16>
    %cst_55 = arith.constant dense<0.000000e+00> : vector<192x240xf32>
    %58 = tpu.matmul %21, %57, %cst_55 {dimension_numbers = #tpu.dot_dimension_numbers<[1], [0], [0], [1], [0, 0, 1, 1], [], []>} : vector<192x28xbf16>, vector<28x240xbf16>, vector<192x240xf32> -> vector<192x240xf32>
    %59 = arith.addf %51, %58 : vector<192x240xf32>
    %60 = vector.extract_strided_slice %55 {offsets = [0, 0], sizes = [96, 240], strides = [1, 1]} : vector<192x240xf32> to vector<96x240xf32>
    %61 = vector.extract_strided_slice %55 {offsets = [96, 0], sizes = [96, 240], strides = [1, 1]} : vector<192x240xf32> to vector<96x240xf32>
    %62 = arith.maximumf %60, %61 : vector<96x240xf32>
    %63 = vector.extract_strided_slice %59 {offsets = [0, 0], sizes = [96, 240], strides = [1, 1]} : vector<192x240xf32> to vector<96x240xf32>
    %64 = vector.extract_strided_slice %59 {offsets = [96, 0], sizes = [96, 240], strides = [1, 1]} : vector<192x240xf32> to vector<96x240xf32>
    %65 = arith.maximumf %63, %64 : vector<96x240xf32>
    %66 = arith.maximumf %62, %65 : vector<96x240xf32>
    %c0_56 = arith.constant 0 : index
    %c0_57 = arith.constant 0 : index
    %67 = vector.load %arg5[%c0_56, %c0_57] : memref<1x240xf32, #tpu.memory_space<vmem>>, vector<1x240xf32>
    %68 = vector.broadcast %67 : vector<1x240xf32> to vector<96x240xf32>
    %69 = arith.addf %66, %68 : vector<96x240xf32>
    %cst_58 = arith.constant 0.000000e+00 : f32
    %70 = vector.broadcast %cst_58 : f32 to vector<96x240xf32>
    %71 = arith.maximumf %69, %70 : vector<96x240xf32>
    %72 = arith.truncf %71 : vector<96x240xf32> to vector<96x240xbf16>
    %c0_59 = arith.constant 0 : index
    %c0_60 = arith.constant 0 : index
    %c0_61 = arith.constant 0 : index
    %73 = vector.load %arg6[%c0_59, %c0_60, %c0_61] : memref<5x64x96xbf16, #tpu.memory_space<vmem>>, vector<1x64x96xbf16>
    %74 = vector.shape_cast %73 : vector<1x64x96xbf16> to vector<64x96xbf16>
    %cst_62 = arith.constant dense<0.000000e+00> : vector<64x240xf32>
    %75 = tpu.matmul %74, %72, %cst_62 {dimension_numbers = #tpu.dot_dimension_numbers<[1], [0], [0], [1], [0, 0, 1, 1], [], []>} : vector<64x96xbf16>, vector<96x240xbf16>, vector<64x240xf32> -> vector<64x240xf32>
    %76 = arith.truncf %75 : vector<64x240xf32> to vector<64x240xbf16>
    %c1_63 = arith.constant 1 : index
    %c0_64 = arith.constant 0 : index
    %c0_65 = arith.constant 0 : index
    %77 = vector.load %arg6[%c1_63, %c0_64, %c0_65] : memref<5x64x96xbf16, #tpu.memory_space<vmem>>, vector<1x64x96xbf16>
    %78 = vector.shape_cast %77 : vector<1x64x96xbf16> to vector<64x96xbf16>
    %cst_66 = arith.constant dense<0.000000e+00> : vector<64x240xf32>
    %79 = tpu.matmul %78, %72, %cst_66 {dimension_numbers = #tpu.dot_dimension_numbers<[1], [0], [0], [1], [0, 0, 1, 1], [], []>} : vector<64x96xbf16>, vector<96x240xbf16>, vector<64x240xf32> -> vector<64x240xf32>
    %80 = arith.truncf %79 : vector<64x240xf32> to vector<64x240xbf16>
    %c2_67 = arith.constant 2 : index
    %c0_68 = arith.constant 0 : index
    %c0_69 = arith.constant 0 : index
    %81 = vector.load %arg6[%c2_67, %c0_68, %c0_69] : memref<5x64x96xbf16, #tpu.memory_space<vmem>>, vector<1x64x96xbf16>
    %82 = vector.shape_cast %81 : vector<1x64x96xbf16> to vector<64x96xbf16>
    %cst_70 = arith.constant dense<0.000000e+00> : vector<64x240xf32>
    %83 = tpu.matmul %82, %72, %cst_70 {dimension_numbers = #tpu.dot_dimension_numbers<[1], [0], [0], [1], [0, 0, 1, 1], [], []>} : vector<64x96xbf16>, vector<96x240xbf16>, vector<64x240xf32> -> vector<64x240xf32>
    %84 = arith.truncf %83 : vector<64x240xf32> to vector<64x240xbf16>
    %c3_71 = arith.constant 3 : index
    %c0_72 = arith.constant 0 : index
    %c0_73 = arith.constant 0 : index
    %85 = vector.load %arg6[%c3_71, %c0_72, %c0_73] : memref<5x64x96xbf16, #tpu.memory_space<vmem>>, vector<1x64x96xbf16>
    %86 = vector.shape_cast %85 : vector<1x64x96xbf16> to vector<64x96xbf16>
    %cst_74 = arith.constant dense<0.000000e+00> : vector<64x240xf32>
    %87 = tpu.matmul %86, %72, %cst_74 {dimension_numbers = #tpu.dot_dimension_numbers<[1], [0], [0], [1], [0, 0, 1, 1], [], []>} : vector<64x96xbf16>, vector<96x240xbf16>, vector<64x240xf32> -> vector<64x240xf32>
    %88 = arith.truncf %87 : vector<64x240xf32> to vector<64x240xbf16>
    %c4_75 = arith.constant 4 : index
    %c0_76 = arith.constant 0 : index
    %c0_77 = arith.constant 0 : index
    %89 = vector.load %arg6[%c4_75, %c0_76, %c0_77] : memref<5x64x96xbf16, #tpu.memory_space<vmem>>, vector<1x64x96xbf16>
    %90 = vector.shape_cast %89 : vector<1x64x96xbf16> to vector<64x96xbf16>
    %cst_78 = arith.constant dense<0.000000e+00> : vector<64x240xf32>
    %91 = tpu.matmul %90, %72, %cst_78 {dimension_numbers = #tpu.dot_dimension_numbers<[1], [0], [0], [1], [0, 0, 1, 1], [], []>} : vector<64x96xbf16>, vector<96x240xbf16>, vector<64x240xf32> -> vector<64x240xf32>
    %92 = arith.truncf %91 : vector<64x240xf32> to vector<64x240xbf16>
    %c0_79 = arith.constant 0 : index
    %c0_80 = arith.constant 0 : index
    %c0_81 = arith.constant 0 : index
    %93 = vector.load %arg7[%c0_79, %c0_80, %c0_81] : memref<5x240x160xbf16, #tpu.memory_space<vmem>>, vector<1x240x160xbf16>
    %94 = vector.shape_cast %93 : vector<1x240x160xbf16> to vector<240x160xbf16>
    %cst_82 = arith.constant dense<0.000000e+00> : vector<64x160xf32>
    %95 = tpu.matmul %76, %94, %cst_82 {dimension_numbers = #tpu.dot_dimension_numbers<[1], [0], [0], [1], [0, 0, 1, 1], [], []>} : vector<64x240xbf16>, vector<240x160xbf16>, vector<64x160xf32> -> vector<64x160xf32>
    %c0_83 = arith.constant 0 : index
    %c0_84 = arith.constant 0 : index
    %c0_85 = arith.constant 0 : index
    %96 = vector.load %arg8[%c0_83, %c0_84, %c0_85] : memref<5x240x160xbf16, #tpu.memory_space<vmem>>, vector<1x240x160xbf16>
    %97 = vector.shape_cast %96 : vector<1x240x160xbf16> to vector<240x160xbf16>
    %cst_86 = arith.constant dense<0.000000e+00> : vector<64x160xf32>
    %98 = tpu.matmul %76, %97, %cst_86 {dimension_numbers = #tpu.dot_dimension_numbers<[1], [0], [0], [1], [0, 0, 1, 1], [], []>} : vector<64x240xbf16>, vector<240x160xbf16>, vector<64x160xf32> -> vector<64x160xf32>
    %c1_87 = arith.constant 1 : index
    %c0_88 = arith.constant 0 : index
    %c0_89 = arith.constant 0 : index
    %99 = vector.load %arg7[%c1_87, %c0_88, %c0_89] : memref<5x240x160xbf16, #tpu.memory_space<vmem>>, vector<1x240x160xbf16>
    %100 = vector.shape_cast %99 : vector<1x240x160xbf16> to vector<240x160xbf16>
    %cst_90 = arith.constant dense<0.000000e+00> : vector<64x160xf32>
    %101 = tpu.matmul %80, %100, %cst_90 {dimension_numbers = #tpu.dot_dimension_numbers<[1], [0], [0], [1], [0, 0, 1, 1], [], []>} : vector<64x240xbf16>, vector<240x160xbf16>, vector<64x160xf32> -> vector<64x160xf32>
    %102 = arith.addf %95, %101 : vector<64x160xf32>
    %c1_91 = arith.constant 1 : index
    %c0_92 = arith.constant 0 : index
    %c0_93 = arith.constant 0 : index
    %103 = vector.load %arg8[%c1_91, %c0_92, %c0_93] : memref<5x240x160xbf16, #tpu.memory_space<vmem>>, vector<1x240x160xbf16>
    %104 = vector.shape_cast %103 : vector<1x240x160xbf16> to vector<240x160xbf16>
    %cst_94 = arith.constant dense<0.000000e+00> : vector<64x160xf32>
    %105 = tpu.matmul %80, %104, %cst_94 {dimension_numbers = #tpu.dot_dimension_numbers<[1], [0], [0], [1], [0, 0, 1, 1], [], []>} : vector<64x240xbf16>, vector<240x160xbf16>, vector<64x160xf32> -> vector<64x160xf32>
    %106 = arith.addf %98, %105 : vector<64x160xf32>
    %c2_95 = arith.constant 2 : index
    %c0_96 = arith.constant 0 : index
    %c0_97 = arith.constant 0 : index
    %107 = vector.load %arg7[%c2_95, %c0_96, %c0_97] : memref<5x240x160xbf16, #tpu.memory_space<vmem>>, vector<1x240x160xbf16>
    %108 = vector.shape_cast %107 : vector<1x240x160xbf16> to vector<240x160xbf16>
    %cst_98 = arith.constant dense<0.000000e+00> : vector<64x160xf32>
    %109 = tpu.matmul %84, %108, %cst_98 {dimension_numbers = #tpu.dot_dimension_numbers<[1], [0], [0], [1], [0, 0, 1, 1], [], []>} : vector<64x240xbf16>, vector<240x160xbf16>, vector<64x160xf32> -> vector<64x160xf32>
    %110 = arith.addf %102, %109 : vector<64x160xf32>
    %c2_99 = arith.constant 2 : index
    %c0_100 = arith.constant 0 : index
    %c0_101 = arith.constant 0 : index
    %111 = vector.load %arg8[%c2_99, %c0_100, %c0_101] : memref<5x240x160xbf16, #tpu.memory_space<vmem>>, vector<1x240x160xbf16>
    %112 = vector.shape_cast %111 : vector<1x240x160xbf16> to vector<240x160xbf16>
    %cst_102 = arith.constant dense<0.000000e+00> : vector<64x160xf32>
    %113 = tpu.matmul %84, %112, %cst_102 {dimension_numbers = #tpu.dot_dimension_numbers<[1], [0], [0], [1], [0, 0, 1, 1], [], []>} : vector<64x240xbf16>, vector<240x160xbf16>, vector<64x160xf32> -> vector<64x160xf32>
    %114 = arith.addf %106, %113 : vector<64x160xf32>
    %c3_103 = arith.constant 3 : index
    %c0_104 = arith.constant 0 : index
    %c0_105 = arith.constant 0 : index
    %115 = vector.load %arg7[%c3_103, %c0_104, %c0_105] : memref<5x240x160xbf16, #tpu.memory_space<vmem>>, vector<1x240x160xbf16>
    %116 = vector.shape_cast %115 : vector<1x240x160xbf16> to vector<240x160xbf16>
    %cst_106 = arith.constant dense<0.000000e+00> : vector<64x160xf32>
    %117 = tpu.matmul %88, %116, %cst_106 {dimension_numbers = #tpu.dot_dimension_numbers<[1], [0], [0], [1], [0, 0, 1, 1], [], []>} : vector<64x240xbf16>, vector<240x160xbf16>, vector<64x160xf32> -> vector<64x160xf32>
    %118 = arith.addf %110, %117 : vector<64x160xf32>
    %c3_107 = arith.constant 3 : index
    %c0_108 = arith.constant 0 : index
    %c0_109 = arith.constant 0 : index
    %119 = vector.load %arg8[%c3_107, %c0_108, %c0_109] : memref<5x240x160xbf16, #tpu.memory_space<vmem>>, vector<1x240x160xbf16>
    %120 = vector.shape_cast %119 : vector<1x240x160xbf16> to vector<240x160xbf16>
    %cst_110 = arith.constant dense<0.000000e+00> : vector<64x160xf32>
    %121 = tpu.matmul %88, %120, %cst_110 {dimension_numbers = #tpu.dot_dimension_numbers<[1], [0], [0], [1], [0, 0, 1, 1], [], []>} : vector<64x240xbf16>, vector<240x160xbf16>, vector<64x160xf32> -> vector<64x160xf32>
    %122 = arith.addf %114, %121 : vector<64x160xf32>
    %c4_111 = arith.constant 4 : index
    %c0_112 = arith.constant 0 : index
    %c0_113 = arith.constant 0 : index
    %123 = vector.load %arg7[%c4_111, %c0_112, %c0_113] : memref<5x240x160xbf16, #tpu.memory_space<vmem>>, vector<1x240x160xbf16>
    %124 = vector.shape_cast %123 : vector<1x240x160xbf16> to vector<240x160xbf16>
    %cst_114 = arith.constant dense<0.000000e+00> : vector<64x160xf32>
    %125 = tpu.matmul %92, %124, %cst_114 {dimension_numbers = #tpu.dot_dimension_numbers<[1], [0], [0], [1], [0, 0, 1, 1], [], []>} : vector<64x240xbf16>, vector<240x160xbf16>, vector<64x160xf32> -> vector<64x160xf32>
    %126 = arith.addf %118, %125 : vector<64x160xf32>
    %c4_115 = arith.constant 4 : index
    %c0_116 = arith.constant 0 : index
    %c0_117 = arith.constant 0 : index
    %127 = vector.load %arg8[%c4_115, %c0_116, %c0_117] : memref<5x240x160xbf16, #tpu.memory_space<vmem>>, vector<1x240x160xbf16>
    %128 = vector.shape_cast %127 : vector<1x240x160xbf16> to vector<240x160xbf16>
    %cst_118 = arith.constant dense<0.000000e+00> : vector<64x160xf32>
    %129 = tpu.matmul %92, %128, %cst_118 {dimension_numbers = #tpu.dot_dimension_numbers<[1], [0], [0], [1], [0, 0, 1, 1], [], []>} : vector<64x240xbf16>, vector<240x160xbf16>, vector<64x160xf32> -> vector<64x160xf32>
    %130 = arith.addf %122, %129 : vector<64x160xf32>
    %131 = vector.extract_strided_slice %126 {offsets = [0, 0], sizes = [32, 160], strides = [1, 1]} : vector<64x160xf32> to vector<32x160xf32>
    %132 = vector.extract_strided_slice %126 {offsets = [32, 0], sizes = [32, 160], strides = [1, 1]} : vector<64x160xf32> to vector<32x160xf32>
    %133 = arith.maximumf %131, %132 : vector<32x160xf32>
    %134 = vector.extract_strided_slice %130 {offsets = [0, 0], sizes = [32, 160], strides = [1, 1]} : vector<64x160xf32> to vector<32x160xf32>
    %135 = vector.extract_strided_slice %130 {offsets = [32, 0], sizes = [32, 160], strides = [1, 1]} : vector<64x160xf32> to vector<32x160xf32>
    %136 = arith.maximumf %134, %135 : vector<32x160xf32>
    %137 = arith.maximumf %133, %136 : vector<32x160xf32>
    %c0_119 = arith.constant 0 : index
    %c0_120 = arith.constant 0 : index
    %138 = vector.load %arg9[%c0_119, %c0_120] : memref<1x160xf32, #tpu.memory_space<vmem>>, vector<1x160xf32>
    %139 = vector.broadcast %138 : vector<1x160xf32> to vector<32x160xf32>
    %140 = arith.addf %137, %139 : vector<32x160xf32>
    %cst_121 = arith.constant 0.000000e+00 : f32
    %141 = vector.broadcast %cst_121 : f32 to vector<32x160xf32>
    %142 = arith.maximumf %140, %141 : vector<32x160xf32>
    %143 = arith.truncf %142 : vector<32x160xf32> to vector<32x160xbf16>
    %c0_122 = arith.constant 0 : index
    %c0_123 = arith.constant 0 : index
    %c0_124 = arith.constant 0 : index
    %144 = vector.load %arg10[%c0_122, %c0_123, %c0_124] : memref<4x8x32xbf16, #tpu.memory_space<vmem>>, vector<1x8x32xbf16>
    %145 = vector.shape_cast %144 : vector<1x8x32xbf16> to vector<8x32xbf16>
    %cst_125 = arith.constant dense<0.000000e+00> : vector<8x160xf32>
    %146 = tpu.matmul %145, %143, %cst_125 {dimension_numbers = #tpu.dot_dimension_numbers<[1], [0], [0], [1], [0, 0, 1, 1], [], []>} : vector<8x32xbf16>, vector<32x160xbf16>, vector<8x160xf32> -> vector<8x160xf32>
    %147 = arith.truncf %146 : vector<8x160xf32> to vector<8x160xbf16>
    %c0_126 = arith.constant 0 : index
    %c0_127 = arith.constant 0 : index
    %c0_128 = arith.constant 0 : index
    %148 = vector.load %arg11[%c0_126, %c0_127, %c0_128] : memref<4x160x50xbf16, #tpu.memory_space<vmem>>, vector<1x160x50xbf16>
    %149 = vector.shape_cast %148 : vector<1x160x50xbf16> to vector<160x50xbf16>
    %cst_129 = arith.constant dense<0.000000e+00> : vector<8x50xf32>
    %150 = tpu.matmul %147, %149, %cst_129 {dimension_numbers = #tpu.dot_dimension_numbers<[1], [0], [0], [1], [0, 0, 1, 1], [], []>} : vector<8x160xbf16>, vector<160x50xbf16>, vector<8x50xf32> -> vector<8x50xf32>
    %c1_130 = arith.constant 1 : index
    %c0_131 = arith.constant 0 : index
    %c0_132 = arith.constant 0 : index
    %151 = vector.load %arg10[%c1_130, %c0_131, %c0_132] : memref<4x8x32xbf16, #tpu.memory_space<vmem>>, vector<1x8x32xbf16>
    %152 = vector.shape_cast %151 : vector<1x8x32xbf16> to vector<8x32xbf16>
    %cst_133 = arith.constant dense<0.000000e+00> : vector<8x160xf32>
    %153 = tpu.matmul %152, %143, %cst_133 {dimension_numbers = #tpu.dot_dimension_numbers<[1], [0], [0], [1], [0, 0, 1, 1], [], []>} : vector<8x32xbf16>, vector<32x160xbf16>, vector<8x160xf32> -> vector<8x160xf32>
    %154 = arith.truncf %153 : vector<8x160xf32> to vector<8x160xbf16>
    %c1_134 = arith.constant 1 : index
    %c0_135 = arith.constant 0 : index
    %c0_136 = arith.constant 0 : index
    %155 = vector.load %arg11[%c1_134, %c0_135, %c0_136] : memref<4x160x50xbf16, #tpu.memory_space<vmem>>, vector<1x160x50xbf16>
    %156 = vector.shape_cast %155 : vector<1x160x50xbf16> to vector<160x50xbf16>
    %cst_137 = arith.constant dense<0.000000e+00> : vector<8x50xf32>
    %157 = tpu.matmul %154, %156, %cst_137 {dimension_numbers = #tpu.dot_dimension_numbers<[1], [0], [0], [1], [0, 0, 1, 1], [], []>} : vector<8x160xbf16>, vector<160x50xbf16>, vector<8x50xf32> -> vector<8x50xf32>
    %158 = arith.addf %150, %157 : vector<8x50xf32>
    %c2_138 = arith.constant 2 : index
    %c0_139 = arith.constant 0 : index
    %c0_140 = arith.constant 0 : index
    %159 = vector.load %arg10[%c2_138, %c0_139, %c0_140] : memref<4x8x32xbf16, #tpu.memory_space<vmem>>, vector<1x8x32xbf16>
    %160 = vector.shape_cast %159 : vector<1x8x32xbf16> to vector<8x32xbf16>
    %cst_141 = arith.constant dense<0.000000e+00> : vector<8x160xf32>
    %161 = tpu.matmul %160, %143, %cst_141 {dimension_numbers = #tpu.dot_dimension_numbers<[1], [0], [0], [1], [0, 0, 1, 1], [], []>} : vector<8x32xbf16>, vector<32x160xbf16>, vector<8x160xf32> -> vector<8x160xf32>
    %162 = arith.truncf %161 : vector<8x160xf32> to vector<8x160xbf16>
    %c2_142 = arith.constant 2 : index
    %c0_143 = arith.constant 0 : index
    %c0_144 = arith.constant 0 : index
    %163 = vector.load %arg11[%c2_142, %c0_143, %c0_144] : memref<4x160x50xbf16, #tpu.memory_space<vmem>>, vector<1x160x50xbf16>
    %164 = vector.shape_cast %163 : vector<1x160x50xbf16> to vector<160x50xbf16>
    %cst_145 = arith.constant dense<0.000000e+00> : vector<8x50xf32>
    %165 = tpu.matmul %162, %164, %cst_145 {dimension_numbers = #tpu.dot_dimension_numbers<[1], [0], [0], [1], [0, 0, 1, 1], [], []>} : vector<8x160xbf16>, vector<160x50xbf16>, vector<8x50xf32> -> vector<8x50xf32>
    %166 = arith.addf %158, %165 : vector<8x50xf32>
    %c3_146 = arith.constant 3 : index
    %c0_147 = arith.constant 0 : index
    %c0_148 = arith.constant 0 : index
    %167 = vector.load %arg10[%c3_146, %c0_147, %c0_148] : memref<4x8x32xbf16, #tpu.memory_space<vmem>>, vector<1x8x32xbf16>
    %168 = vector.shape_cast %167 : vector<1x8x32xbf16> to vector<8x32xbf16>
    %cst_149 = arith.constant dense<0.000000e+00> : vector<8x160xf32>
    %169 = tpu.matmul %168, %143, %cst_149 {dimension_numbers = #tpu.dot_dimension_numbers<[1], [0], [0], [1], [0, 0, 1, 1], [], []>} : vector<8x32xbf16>, vector<32x160xbf16>, vector<8x160xf32> -> vector<8x160xf32>
    %170 = arith.truncf %169 : vector<8x160xf32> to vector<8x160xbf16>
    %c3_150 = arith.constant 3 : index
    %c0_151 = arith.constant 0 : index
    %c0_152 = arith.constant 0 : index
    %171 = vector.load %arg11[%c3_150, %c0_151, %c0_152] : memref<4x160x50xbf16, #tpu.memory_space<vmem>>, vector<1x160x50xbf16>
    %172 = vector.shape_cast %171 : vector<1x160x50xbf16> to vector<160x50xbf16>
    %cst_153 = arith.constant dense<0.000000e+00> : vector<8x50xf32>
    %173 = tpu.matmul %170, %172, %cst_153 {dimension_numbers = #tpu.dot_dimension_numbers<[1], [0], [0], [1], [0, 0, 1, 1], [], []>} : vector<8x160xbf16>, vector<160x50xbf16>, vector<8x50xf32> -> vector<8x50xf32>
    %174 = arith.addf %166, %173 : vector<8x50xf32>
    %c0_154 = arith.constant 0 : index
    %c0_155 = arith.constant 0 : index
    %175 = vector.load %arg12[%c0_154, %c0_155] : memref<1x50xf32, #tpu.memory_space<vmem>>, vector<1x50xf32>
    %176 = vector.broadcast %175 : vector<1x50xf32> to vector<8x50xf32>
    %177 = arith.addf %174, %176 : vector<8x50xf32>
    %cst_156 = arith.constant 0.000000e+00 : f32
    %178 = vector.broadcast %cst_156 : f32 to vector<8x50xf32>
    %179 = arith.maximumf %177, %178 : vector<8x50xf32>
    %180 = arith.truncf %179 : vector<8x50xf32> to vector<8x50xbf16>
    %c0_157 = arith.constant 0 : index
    %c0_158 = arith.constant 0 : index
    %181 = vector.load %arg13[%c0_157, %c0_158] : memref<50x10xbf16, #tpu.memory_space<vmem>>, vector<50x10xbf16>
    %cst_159 = arith.constant dense<0.000000e+00> : vector<8x10xf32>
    %182 = tpu.matmul %180, %181, %cst_159 {dimension_numbers = #tpu.dot_dimension_numbers<[1], [0], [0], [1], [0, 0, 1, 1], [], []>} : vector<8x50xbf16>, vector<50x10xbf16>, vector<8x10xf32> -> vector<8x10xf32>
    %c0_160 = arith.constant 0 : index
    %c0_161 = arith.constant 0 : index
    %183 = vector.load %arg14[%c0_160, %c0_161] : memref<1x10xf32, #tpu.memory_space<vmem>>, vector<1x10xf32>
    %184 = vector.broadcast %183 : vector<1x10xf32> to vector<8x10xf32>
    %185 = arith.addf %182, %184 : vector<8x10xf32>
    %cst_162 = arith.constant dense<0xFF800000> : vector<8xf32>
    %186 = vector.multi_reduction <maximumf>, %185, %cst_162 [1] : vector<8x10xf32> to vector<8xf32>
    %187 = vector.shape_cast %186 : vector<8xf32> to vector<8x1xf32>
    %188 = vector.broadcast %187 : vector<8x1xf32> to vector<8x10xf32>
    %189 = arith.subf %185, %188 : vector<8x10xf32>
    %190 = math.exp %189 : vector<8x10xf32>
    %cst_163 = arith.constant dense<0.000000e+00> : vector<8xf32>
    %191 = vector.multi_reduction <add>, %190, %cst_163 [1] : vector<8x10xf32> to vector<8xf32>
    %192 = vector.shape_cast %191 : vector<8xf32> to vector<8x1xf32>
    %193 = math.log %192 : vector<8x1xf32>
    %194 = arith.addf %187, %193 : vector<8x1xf32>
    %195 = vector.broadcast %194 : vector<8x1xf32> to vector<8x10xf32>
    %196 = arith.subf %185, %195 : vector<8x10xf32>
    %c0_164 = arith.constant 0 : index
    %c0_165 = arith.constant 0 : index
    %197 = vector.load %arg15[%c0_164, %c0_165] : memref<8x10xf32, #tpu.memory_space<vmem>>, vector<8x10xf32>
    tpu.vector_store %arg15[%c0_164, %c0_165], %196 {strides = array<i32>} : memref<8x10xf32, #tpu.memory_space<vmem>>, vector<8x10xf32>,
    return
  }
  func.func @transform_0(%arg0: i32) -> (i32, i32) {
    %c0_i32 = arith.constant 0 : i32
    %c0_i32_0 = arith.constant 0 : i32
    return %arg0, %c0_i32 : i32, i32
  }
  func.func @transform_1(%arg0: i32) -> (i32, i32, i32) {
    %c0_i32 = arith.constant 0 : i32
    %c0_i32_0 = arith.constant 0 : i32
    %c0_i32_1 = arith.constant 0 : i32
    %c0_i32_2 = arith.constant 0 : i32
    return %c0_i32, %c0_i32_0, %c0_i32_1 : i32, i32, i32
  }
  func.func @transform_2(%arg0: i32) -> (i32, i32, i32) {
    %c0_i32 = arith.constant 0 : i32
    %c0_i32_0 = arith.constant 0 : i32
    %c0_i32_1 = arith.constant 0 : i32
    %c0_i32_2 = arith.constant 0 : i32
    return %c0_i32, %c0_i32_0, %c0_i32_1 : i32, i32, i32
  }
  func.func @transform_3(%arg0: i32) -> (i32, i32, i32) {
    %c0_i32 = arith.constant 0 : i32
    %c0_i32_0 = arith.constant 0 : i32
    %c0_i32_1 = arith.constant 0 : i32
    %c0_i32_2 = arith.constant 0 : i32
    return %c0_i32, %c0_i32_0, %c0_i32_1 : i32, i32, i32
  }
  func.func @transform_4(%arg0: i32) -> (i32, i32) {
    %c0_i32 = arith.constant 0 : i32
    %c0_i32_0 = arith.constant 0 : i32
    %c0_i32_1 = arith.constant 0 : i32
    return %c0_i32, %c0_i32_0 : i32, i32
  }
  func.func @transform_5(%arg0: i32) -> (i32, i32, i32) {
    %c0_i32 = arith.constant 0 : i32
    %c0_i32_0 = arith.constant 0 : i32
    %c0_i32_1 = arith.constant 0 : i32
    %c0_i32_2 = arith.constant 0 : i32
    return %c0_i32, %c0_i32_0, %c0_i32_1 : i32, i32, i32
  }
  func.func @transform_6(%arg0: i32) -> (i32, i32, i32) {
    %c0_i32 = arith.constant 0 : i32
    %c0_i32_0 = arith.constant 0 : i32
    %c0_i32_1 = arith.constant 0 : i32
    %c0_i32_2 = arith.constant 0 : i32
    return %c0_i32, %c0_i32_0, %c0_i32_1 : i32, i32, i32
  }
  func.func @transform_7(%arg0: i32) -> (i32, i32, i32) {
    %c0_i32 = arith.constant 0 : i32
    %c0_i32_0 = arith.constant 0 : i32
    %c0_i32_1 = arith.constant 0 : i32
    %c0_i32_2 = arith.constant 0 : i32
    return %c0_i32, %c0_i32_0, %c0_i32_1 : i32, i32, i32
  }
  func.func @transform_8(%arg0: i32) -> (i32, i32) {
    %c0_i32 = arith.constant 0 : i32
    %c0_i32_0 = arith.constant 0 : i32
    %c0_i32_1 = arith.constant 0 : i32
    return %c0_i32, %c0_i32_0 : i32, i32
  }
  func.func @transform_9(%arg0: i32) -> (i32, i32, i32) {
    %c0_i32 = arith.constant 0 : i32
    %c0_i32_0 = arith.constant 0 : i32
    %c0_i32_1 = arith.constant 0 : i32
    %c0_i32_2 = arith.constant 0 : i32
    return %c0_i32, %c0_i32_0, %c0_i32_1 : i32, i32, i32
  }
  func.func @transform_10(%arg0: i32) -> (i32, i32, i32) {
    %c0_i32 = arith.constant 0 : i32
    %c0_i32_0 = arith.constant 0 : i32
    %c0_i32_1 = arith.constant 0 : i32
    %c0_i32_2 = arith.constant 0 : i32
    return %c0_i32, %c0_i32_0, %c0_i32_1 : i32, i32, i32
  }
  func.func @transform_11(%arg0: i32) -> (i32, i32) {
    %c0_i32 = arith.constant 0 : i32
    %c0_i32_0 = arith.constant 0 : i32
    %c0_i32_1 = arith.constant 0 : i32
    return %c0_i32, %c0_i32_0 : i32, i32
  }
  func.func @transform_12(%arg0: i32) -> (i32, i32) {
    %c0_i32 = arith.constant 0 : i32
    %c0_i32_0 = arith.constant 0 : i32
    %c0_i32_1 = arith.constant 0 : i32
    return %c0_i32, %c0_i32_0 : i32, i32
  }
  func.func @transform_13(%arg0: i32) -> (i32, i32) {
    %c0_i32 = arith.constant 0 : i32
    %c0_i32_0 = arith.constant 0 : i32
    %c0_i32_1 = arith.constant 0 : i32
    return %c0_i32, %c0_i32_0 : i32, i32
  }
  func.func @transform_14(%arg0: i32) -> (i32, i32) {
    %c0_i32 = arith.constant 0 : i32
    %c0_i32_0 = arith.constant 0 : i32
    return %arg0, %c0_i32 : i32, i32
  }
}

</mosaic_0001>

<bundles_post_ra>
// kernel: tile.13
= control target key start
LH: loop header
LB: loop body
LE: loop exit
PB: predicated region body
PF: predicated region fallthrough
CT: control target
= control target key end

     0   :  { %s34_s0 = inlined_call_operand.vmem [shape: f32[10], index: 0, kind: input, shape index: {}]   ;;  %s35_s1 = inlined_call_operand.vmem [shape: f32[24,10], index: 1, kind: output, shape index: {}]  }
   0x1   :  { %v4_v0 = vld [vmem:[%s34_s0] ss:$0 sm:$0xff] }
   0x2   :  { %5 = vst [vmem:[%s35_s1] sm:$0xff] %v4_v0  ;;  %10 = vst [vmem:[%s35_s1 + $0x8] sm:$0xff] %v4_v0 }
   0x3   :  { %11 = vst [vmem:[%s35_s1 + $0x10] sm:$0xff] %v4_v0 }

// kernel: tile.14
= control target key start
LH: loop header
LB: loop body
LE: loop exit
PB: predicated region body
PF: predicated region fallthrough
CT: control target
= control target key end

     0   :  { %vm9_vm0 = vcmask 64512   ;;  %s220_s12 = smov 120   ;;  %s221_s13 = smov 102   ;;  %vm3_vm1 = vcmask 80896   ;;  %vm13_vm2 = vcmask 15360   ;;  %vm16_vm3 = vcmask 1048512   ;;  %s334_s0 = inlined_call_operand.vmem [shape: f32[24,10], index: 0, kind: input, shape index: {}]   ;;  %s335_s1 = inlined_call_operand.vmem [shape: f32[1,240], index: 1, kind: output, shape index: {}]  }
   0x1   :  { %v172_v0 = vld [vmem:[%s334_s0 + $0xc] sm:$0x1]   ;;  %v175_v3 = vld [vmem:[%s334_s0 + $0x17] sm:$0x1]   ;;  %v174_v4 = vld [vmem:[%s334_s0 + $0xb] sm:$0x1]  }
   0x2   :  { %v173_v1 = vld [vmem:[%s334_s0 + $0xc] sm:$0x1]   ;;  %26 = vrot.lane.b32.xlu1 %v175_v3, %s221_s13  ;;  %v176_v5 = vld [vmem:[%s334_s0 + $0xa] sm:$0x1]   ;;  %s222_s18 = smov 110   ;;  %s223_s19 = smov 100  }
   0x3   :  { %v10_v2 = vsel %vm9_vm0, %v173_v1, %v172_v0  ;;  %v177_v6 = vld [vmem:[%s334_s0 + $0x16] sm:$0x1]   ;;  %v178_v7 = vld [vmem:[%s334_s0 + $0x9] sm:$0x1]   ;;  %s224_s24 = smov 92   ;;  %s225_s25 = smov 90  }
   0x4   :  { %11 = vrot.lane.b32.xlu0 %v10_v2, %s220_s12  ;;  %v179_v8 = vld [vmem:[%s334_s0 + $0x15] sm:$0x1]   ;;  %v180_v9 = vld [vmem:[%s334_s0 + $0x8] sm:$0x1]   ;;  %v2_v10 = vld [vmem:[%s334_s0] sm:$0x1]  }
   0x5   :  { %4 = vst.msk [vmem:[#allocation0] sm:$0x1] %vm3_vm1, %v2_v10   ;;  %s226_s3 = smov 82   ;;  %s227_s4 = smov 80   ;;  %v181_v11 = vld [vmem:[%s334_s0 + $0x14] sm:$0x1]  }
   0x6   :  { %33 = vrot.lane.b32.xlu1 %v176_v5, %s223_s19  ;;  %v182_v12 = vld [vmem:[%s334_s0 + $0x7] sm:$0x1]   ;;  %s228_s9 = smov 72   ;;  %s229_s10 = smov 70   ;;  %v183_v13 = vld [vmem:[%s334_s0 + $0x13] sm:$0x1]  }
   0x7   :  { %v184_v14 = vld [vmem:[%s334_s0 + $0x6] sm:$0x1]   ;;  %s230_s15 = smov 62   ;;  %s231_s16 = smov 60   ;;  %v185_v15 = vld [vmem:[%s334_s0 + $0x12] sm:$0x1]  }
   0x8   :  { %20 = vrot.lane.b32.xlu0 %v174_v4, %s222_s18  ;;  %v186_v16 = vld [vmem:[%s334_s0 + $0x5] sm:$0x1]   ;;  %s232_s21 = smov 52   ;;  %s233_s22 = smov 50   ;;  %v187_v17 = vld [vmem:[%s334_s0 + $0x11] sm:$0x1]  }
   0x9   :  { %v188_v18 = vld [vmem:[%s334_s0 + $0x4] sm:$0x1]   ;;  %s234_s27 = smov 42   ;;  %s235_s28 = smov 40   ;;  %v189_v19 = vld [vmem:[%s334_s0 + $0x10] sm:$0x1]  }
   0xa   :  { %46 = vrot.lane.b32.xlu1 %v178_v7, %s225_s25  ;;  %v190_v20 = vld [vmem:[%s334_s0 + $0x3] sm:$0x1]   ;;  %s237_s5 = smov 30   ;;  %v191_v21 = vld [vmem:[%s334_s0 + $0xf] sm:$0x1]   ;;  %s239_s11 = smov 20  }
   0xb   :  { %v192_v22 = vld [vmem:[%s334_s0 + $0x2] sm:$0x1]   ;;  %v193_v23 = vld [vmem:[%s334_s0 + $0xe] sm:$0x1]   ;;  %v194_v24 = vld [vmem:[%s334_s0 + $0x1] sm:$0x1]  }
   0xc   :  { %39 = vrot.lane.b32.xlu0 %v177_v6, %s224_s24  ;;  %s241_s17 = smov 10   ;;  %v195_v25 = vld [vmem:[%s334_s0 + $0xd] sm:$0x1]   ;;  %s242_s0 = smov 2   ;;  %vm28_vm4 = vcmask 917296   ;;  %vm22_vm5 = vcmask 982896  }
   0xd   :  { %vm35_vm6 = vcmask 900896   ;;  %vm41_vm7 = vcmask 835296   ;;  %vm48_vm8 = vcmask 818896   ;;  %vm54_vm9 = vcmask 753296  }
   0xe   :  { %59 = vrot.lane.b32.xlu1 %v180_v9, %s227_s4  ;;  %s236_s4 = smov 32   ;;  %vm61_vm10 = vcmask 736896   ;;  %vm67_vm11 = vcmask 671296   ;;  %vm74_vm12 = vcmask 654896   ;;  %vm80_vm13 = vcmask 589296  }
   0xf   :  { %vm87_vm14 = vcmask 572896   ;;  %vm93_vm15 = vcmask 507296   ;;  %vm100_vm0 = vcmask 490896   ;;  %vm106_vm1 = vcmask 425296  }
  0x10   :  { %52 = vrot.lane.b32.xlu0 %v179_v8, %s226_s3 }
  0x12   :  { %72 = vrot.lane.b32.xlu1 %v182_v12, %s229_s10  ;;  %s238_s10 = smov 22  }
  0x14   :  { %65 = vrot.lane.b32.xlu0 %v181_v11, %s228_s9 }
  0x16   :  { %85 = vrot.lane.b32.xlu1 %v184_v14, %s231_s16  ;;  %s240_s16 = smov 12  }
  0x18   :  { %78 = vrot.lane.b32.xlu0 %v183_v13, %s230_s15 }
  0x1a   :  { %98 = vrot.lane.b32.xlu1 %v186_v16, %s233_s22 }
  0x1c   :  { %91 = vrot.lane.b32.xlu0 %v185_v15, %s232_s21 }
  0x1e   :  { %111 = vrot.lane.b32.xlu1 %v188_v18, %s235_s28 }
  0x20   :  { %104 = vrot.lane.b32.xlu0 %v187_v17, %s234_s27 }
  0x22   :  { %124 = vrot.lane.b32.xlu1 %v190_v20, %s237_s5 }
  0x24   :  { %117 = vrot.lane.b32.xlu0 %v189_v19, %s236_s4 }
  0x26   :  { %137 = vrot.lane.b32.xlu1 %v192_v22, %s239_s11 }
  0x28   :  { %130 = vrot.lane.b32.xlu0 %v191_v21, %s238_s10 }
  0x2a   :  { %150 = vrot.lane.b32.xlu1 %v194_v24, %s241_s17 }
  0x2c   :  { %143 = vrot.lane.b32.xlu0 %v193_v23, %s240_s16 }
  0x30   :  { %156 = vrot.lane.b32.xlu0 %v195_v25, %s242_s0 }
  0x74   :  { %v27_v27 = vpop.permute.xlu1 %26  }
  0x76   :  { %v12_v26 = vpop.permute.xlu0 %11  }
  0x77   :  { %15 = vst.msk [vmem:[#allocation0 + $0x8] sm:$0x1] %vm13_vm2, %v12_v26   ;;  %vm113_vm2 = vcmask 408896  }
  0x78   :  { %17 = vst.msk [vmem:[#allocation0] sm:$0x1] %vm16_vm3, %v12_v26   ;;  %v34_v29 = vpop.permute.xlu1 %33   ;;  %vm119_vm3 = vcmask 343296  }
  0x79   :  { %30 = vst.msk [vmem:[#allocation0 + $0x8] sm:$0x1] %vm28_vm4, %v27_v27   ;;  %vm126_vm4 = vcmask 326896  }
  0x7a   :  { %v21_v28 = vpop.permute.xlu0 %20  }
  0x7b   :  { %23 = vst.msk [vmem:[#allocation0] sm:$0x1] %vm22_vm5, %v21_v28   ;;  %vm132_vm5 = vcmask 261296  }
  0x7c   :  { %36 = vst.msk [vmem:[#allocation0] sm:$0x1] %vm35_vm6, %v34_v29   ;;  %v47_v31 = vpop.permute.xlu1 %46   ;;  %vm139_vm6 = vcmask 244896  }
  0x7d   :  { %49 = vst.msk [vmem:[#allocation0] sm:$0x1] %vm48_vm8, %v47_v31   ;;  %vm152_vm8 = vcmask 162896  }
  0x7e   :  { %v40_v30 = vpop.permute.xlu0 %39  }
  0x7f   :  { %43 = vst.msk [vmem:[#allocation0 + $0x8] sm:$0x1] %vm41_vm7, %v40_v30   ;;  %vm145_vm7 = vcmask 179296  }
  0x80   :  { %v60_v33 = vpop.permute.xlu1 %59  }
  0x81   :  { %62 = vst.msk [vmem:[#allocation0] sm:$0x1] %vm61_vm10, %v60_v33  }
  0x82   :  { %v53_v32 = vpop.permute.xlu0 %52  }
  0x83   :  { %56 = vst.msk [vmem:[#allocation0 + $0x8] sm:$0x1] %vm54_vm9, %v53_v32   ;;  %vm158_vm9 = vcmask 97296  }
  0x84   :  { %v73_v35 = vpop.permute.xlu1 %72  }
  0x85   :  { %75 = vst.msk [vmem:[#allocation0] sm:$0x1] %vm74_vm12, %v73_v35  }
  0x86   :  { %v66_v34 = vpop.permute.xlu0 %65  }
  0x87   :  { %69 = vst.msk [vmem:[#allocation0 + $0x8] sm:$0x1] %vm67_vm11, %v66_v34  }
  0x88   :  { %v86_v37 = vpop.permute.xlu1 %85  }
  0x89   :  { %88 = vst.msk [vmem:[#allocation0] sm:$0x1] %vm87_vm14, %v86_v37  }
  0x8a   :  { %v79_v36 = vpop.permute.xlu0 %78  }
  0x8b   :  { %82 = vst.msk [vmem:[#allocation0 + $0x8] sm:$0x1] %vm80_vm13, %v79_v36  }
  0x8c   :  { %v99_v39 = vpop.permute.xlu1 %98  }
  0x8d   :  { %101 = vst.msk [vmem:[#allocation0] sm:$0x1] %vm100_vm0, %v99_v39  }
  0x8e   :  { %v92_v38 = vpop.permute.xlu0 %91  }
  0x8f   :  { %95 = vst.msk [vmem:[#allocation0 + $0x8] sm:$0x1] %vm93_vm15, %v92_v38  }
  0x90   :  { %v112_v41 = vpop.permute.xlu1 %111  }
  0x91   :  { %114 = vst.msk [vmem:[#allocation0] sm:$0x1] %vm113_vm2, %v112_v41  }
  0x92   :  { %v105_v40 = vpop.permute.xlu0 %104  }
  0x93   :  { %108 = vst.msk [vmem:[#allocation0 + $0x8] sm:$0x1] %vm106_vm1, %v105_v40  }
  0x94   :  { %v125_v43 = vpop.permute.xlu1 %124  }
  0x95   :  { %127 = vst.msk [vmem:[#allocation0] sm:$0x1] %vm126_vm4, %v125_v43  }
  0x96   :  { %v118_v42 = vpop.permute.xlu0 %117  }
  0x97   :  { %121 = vst.msk [vmem:[#allocation0 + $0x8] sm:$0x1] %vm119_vm3, %v118_v42  }
  0x98   :  { %v138_v45 = vpop.permute.xlu1 %137  }
  0x99   :  { %140 = vst.msk [vmem:[#allocation0] sm:$0x1] %vm139_vm6, %v138_v45  }
  0x9a   :  { %v131_v44 = vpop.permute.xlu0 %130  }
  0x9b   :  { %134 = vst.msk [vmem:[#allocation0 + $0x8] sm:$0x1] %vm132_vm5, %v131_v44  }
  0x9c   :  { %v151_v47 = vpop.permute.xlu1 %150  }
  0x9d   :  { %153 = vst.msk [vmem:[#allocation0] sm:$0x1] %vm152_vm8, %v151_v47  }
  0x9e   :  { %v144_v46 = vpop.permute.xlu0 %143  }
  0x9f   :  { %147 = vst.msk [vmem:[#allocation0 + $0x8] sm:$0x1] %vm145_vm7, %v144_v46  }
  0xa2   :  { %v157_v48 = vpop.permute.xlu0 %156  }
  0xa3   :  { %160 = vst.msk [vmem:[#allocation0 + $0x8] sm:$0x1] %vm158_vm9, %v157_v48  }
  0xa4   :  { %v164_v49 = vld [vmem:[#allocation0] sm:$0x1] }
  0xa5   :  { %166 = vst [vmem:[%s335_s1] sm:$0x1] %v164_v49 }
  0xaa   :  { %v168_v50 = vld [vmem:[#allocation0 + $0x8] sm:$0x1] }
  0xab   :  { %196 = vst [vmem:[%s335_s1 + $0x1] sm:$0x1] %v168_v50 }

// kernel: tile.18
= control target key start
LH: loop header
LB: loop body
LE: loop exit
PB: predicated region body
PF: predicated region fallthrough
CT: control target
= control target key end

     0   :  { %s22_s0 = inlined_call_operand.vmem [shape: f32[20], index: 0, kind: input, shape index: {}]   ;;  %s23_s1 = inlined_call_operand.vmem [shape: f32[8,20], index: 1, kind: output, shape index: {}]  }
   0x1   :  { %v4_v0 = vld [vmem:[%s22_s0] ss:$0 sm:$0xff] }
   0x2   :  { %5 = vst [vmem:[%s23_s1] sm:$0xff] %v4_v0 }

// kernel: tile.19
= control target key start
LH: loop header
LB: loop body
LE: loop exit
PB: predicated region body
PF: predicated region fallthrough
CT: control target
= control target key end

     0   :  { %vm9_vm0 = vcmask 64512   ;;  %s82_s12 = smov 120   ;;  %s83_s13 = smov 80   ;;  %vm3_vm1 = vcmask 162816   ;;  %vm13_vm2 = vcmask 97280   ;;  %vm16_vm3 = vcmask 1048512   ;;  %s132_s0 = inlined_call_operand.vmem [shape: f32[8,20], index: 0, kind: input, shape index: {}]   ;;  %s133_s1 = inlined_call_operand.vmem [shape: f32[1,160], index: 1, kind: output, shape index: {}]  }
   0x1   :  { %v66_v0 = vld [vmem:[%s132_s0 + $0x6] sm:$0x1]   ;;  %v69_v3 = vld [vmem:[%s132_s0 + $0x4] sm:$0x1]   ;;  %v68_v4 = vld [vmem:[%s132_s0 + $0x5] sm:$0x1]  }
   0x2   :  { %v67_v1 = vld [vmem:[%s132_s0 + $0x6] sm:$0x1]   ;;  %26 = vrot.lane.b32.xlu1 %v69_v3, %s83_s13  ;;  %v70_v5 = vld [vmem:[%s132_s0 + $0x3] sm:$0x1]   ;;  %v2_v6 = vld [vmem:[%s132_s0] sm:$0x1]  }
   0x3   :  { %v10_v2 = vsel %vm9_vm0, %v67_v1, %v66_v0  ;;  %4 = vst.msk [vmem:[#allocation0] sm:$0x1] %vm3_vm1, %v2_v6   ;;  %s84_s20 = smov 100   ;;  %s85_s21 = smov 60   ;;  %v71_v7 = vld [vmem:[%s132_s0 + $0x2] sm:$0x1]  }
   0x4   :  { %11 = vrot.lane.b32.xlu0 %v10_v2, %s82_s12  ;;  %v72_v8 = vld [vmem:[%s132_s0 + $0x1] sm:$0x1]   ;;  %s86_s26 = smov 40   ;;  %s87_s27 = smov 20   ;;  %v73_v9 = vld [vmem:[%s132_s0 + $0x7] sm:$0x1]  }
   0x5   :  { %s88_s0 = smov 12   ;;  %vm22_vm4 = vcmask 982816   ;;  %vm28_vm5 = vcmask 818816   ;;  %vm34_vm6 = vcmask 654816   ;;  %vm40_vm7 = vcmask 490816  }
   0x6   :  { %32 = vrot.lane.b32.xlu1 %v70_v5, %s85_s21  ;;  %vm46_vm8 = vcmask 326816   ;;  %vm52_vm9 = vcmask 261216  }
   0x8   :  { %20 = vrot.lane.b32.xlu0 %v68_v4, %s84_s20 }
   0xa   :  { %44 = vrot.lane.b32.xlu1 %v72_v8, %s87_s27 }
   0xc   :  { %38 = vrot.lane.b32.xlu0 %v71_v7, %s86_s26 }
  0x10   :  { %50 = vrot.lane.b32.xlu0 %v73_v9, %s88_s0 }
  0x74   :  { %v27_v11 = vpop.permute.xlu1 %26  }
  0x76   :  { %v12_v10 = vpop.permute.xlu0 %11  }
  0x77   :  { %15 = vst.msk [vmem:[#allocation0 + $0x8] sm:$0x1] %vm13_vm2, %v12_v10  }
  0x78   :  { %17 = vst.msk [vmem:[#allocation0] sm:$0x1] %vm16_vm3, %v12_v10   ;;  %v33_v13 = vpop.permute.xlu1 %32  }
  0x7a   :  { %v21_v12 = vpop.permute.xlu0 %20  }
  0x7b   :  { %23 = vst.msk [vmem:[#allocation0] sm:$0x1] %vm22_vm4, %v21_v12  }
  0x7c   :  { %29 = vst.msk [vmem:[#allocation0] sm:$0x1] %vm28_vm5, %v27_v11   ;;  %v45_v15 = vpop.permute.xlu1 %44  }
  0x7d   :  { %35 = vst.msk [vmem:[#allocation0] sm:$0x1] %vm34_vm6, %v33_v13  }
  0x7e   :  { %v39_v14 = vpop.permute.xlu0 %38  }
  0x7f   :  { %41 = vst.msk [vmem:[#allocation0] sm:$0x1] %vm40_vm7, %v39_v14  }
  0x80   :  { %47 = vst.msk [vmem:[#allocation0] sm:$0x1] %vm46_vm8, %v45_v15  }
  0x82   :  { %v51_v16 = vpop.permute.xlu0 %50  }
  0x83   :  { %54 = vst.msk [vmem:[#allocation0 + $0x8] sm:$0x1] %vm52_vm9, %v51_v16  }
  0x87   :  { %v58_v17 = vld [vmem:[#allocation0] sm:$0x1] }
  0x88   :  { %60 = vst [vmem:[%s133_s1] sm:$0x1] %v58_v17 }
  0x8a   :  { %v62_v18 = vld [vmem:[#allocation0 + $0x8] sm:$0x1] }
  0x8b   :  { %74 = vst [vmem:[%s133_s1 + $0x1] sm:$0x1] %v62_v18 }

// kernel: net_forward.1
= control target key start
LH: loop header
LB: loop body
LE: loop exit
PB: predicated region body
PF: predicated region fallthrough
CT: control target
= control target key end

     0   :  { %v13962_v0 = vmov 0   ;;  %vm222_vm0 = vcmask 785408   ;;  %vm1708_vm1 = vcmask 1045504   ;;  %vm1671_vm2 = vcmask 228352   ;;  %s13947_s0 = inlined_call_operand.vmem [shape: f32[224,28], index: 0, kind: input, shape index: {}]   ;;  %s13948_s1 = inlined_call_operand.vmem [shape: bf16[5,192,224], index: 1, kind: input, shape index: {}]   ;;  %s13949_s2 = inlined_call_operand.vmem [shape: bf16[5,28,240], index: 2, kind: input, shape index: {}]   ;;  %s13950_s3 = inlined_call_operand.vmem [shape: bf16[5,28,240], index: 3, kind: input, shape index: {}]   ;;  %s13951_s5 = inlined_call_operand.vmem [shape: bf16[5,64,96], index: 5, kind: input, shape index: {}]   ;;  %s13952_s4 = inlined_call_operand.vmem [shape: f32[1,240], index: 4, kind: input, shape index: {}]   ;;  %s13953_s6 = inlined_call_operand.vmem [shape: bf16[5,240,160], index: 6, kind: input, shape index: {}]   ;;  %s13954_s7 = inlined_call_operand.vmem [shape: bf16[5,240,160], index: 7, kind: input, shape index: {}]   ;;  %s13955_s10 = inlined_call_operand.vmem [shape: bf16[4,160,50], index: 10, kind: input, shape index: {}]   ;;  %s13956_s8 = inlined_call_operand.vmem [shape: f32[1,160], index: 8, kind: input, shape index: {}]   ;;  %s13957_s9 = inlined_call_operand.vmem [shape: bf16[4,8,32], index: 9, kind: input, shape index: {}]   ;;  %s13958_s12 = inlined_call_operand.vmem [shape: bf16[50,10], index: 12, kind: input, shape index: {}]   ;;  %s13959_s11 = inlined_call_operand.vmem [shape: f32[1,50], index: 11, kind: input, shape index: {}]   ;;  %s13960_s13 = inlined_call_operand.vmem [shape: f32[1,10], index: 13, kind: input, shape index: {}]   ;;  %s13961_s14 = inlined_call_operand.vmem [shape: f32[8,10], index: 14, kind: output, shape index: {}]  }
   0x1   :  { %259 = vmatprep.subr.bf16.mxu0 %v13962_v0  ;;  %569 = vmatprep.subr.bf16.mxu1 %v13962_v0  ;;  %v48_v1 = vld [vmem:[%s13947_s0] sm:$0xff]  ;;  %v49_v2 = vld [vmem:[%s13947_s0 + $0x8] sm:$0xff]  ;;  %v50_v3 = vld [vmem:[%s13947_s0 + $0x10] sm:$0xff]  ;;  %vm4922_vm3 = vcmask 916480   ;;  %vm7433_vm4 = vcmask 261120   ;;  %vm8170_vm5 = vcmask 1040384  }
   0x2   :  { %v10860_v4 = vpack.c.bf16 %v49_v2, %v48_v1  ;;  %v51_v5 = vld [vmem:[%s13947_s0 + $0x18] sm:$0xff]  ;;  %v52_v7 = vld [vmem:[%s13947_s0 + $0x20] sm:$0xff]  ;;  %v53_v8 = vld [vmem:[%s13947_s0 + $0x28] sm:$0xff]  ;;  %vm10773_vm6 = vmmov 0   ;;  %vm8166_vm7 = vcmask 408576   ;;  %vm8214_vm8 = vcmask 80896  }
   0x3   :  { %v10867_v6 = vpack.c.bf16 %v51_v5, %v50_v3  ;;  %v10879_v9 = vpack.c.bf16 %v53_v8, %v52_v7  ;;  %v54_v10 = vld [vmem:[%s13947_s0 + $0x30] sm:$0xff]  ;;  %v55_v11 = vld [vmem:[%s13947_s0 + $0x38] sm:$0xff]  ;;  %v10015_v12 = vld [vmem:[%s13948_s1 + $0x4] ss:$8 sps:$4 sm:$0xff]  }
   0x4   :  { %260 = vmatpush1.bf16.msra.mxu0 %v10860_v4  ;;  %570 = vmatpush1.bf16.msra.mxu1 %v10860_v4  ;;  %v10894_v13 = vpack.c.bf16 %v55_v11, %v54_v10  ;;  %v56_v14 = vld [vmem:[%s13947_s0 + $0x40] sm:$0xff]  ;;  %v57_v16 = vld [vmem:[%s13947_s0 + $0x48] sm:$0xff]  ;;  %v58_v18 = vld [vmem:[%s13947_s0 + $0x50] sm:$0xff] }
   0x5   :  { %261 = vmatprep.subr.bf16.mxu0 %v13962_v0  ;;  %571 = vmatprep.subr.bf16.mxu1 %v13962_v0  ;;  %v10018_v15 = vld [vmem:[%s13948_s1 + $0xc4] ss:$8 sps:$4 sm:$0xff]   ;;  %v10911_v17 = vpack.c.bf16 %v57_v16, %v56_v14  ;;  %v59_v19 = vld [vmem:[%s13947_s0 + $0x58] sm:$0xff]  ;;  %v62_v24 = vld [vmem:[%s13947_s0 + $0x70] sm:$0xff] }
   0x6   :  { %8257 = vmatprep.mubr.msk.bf16.mxu0 %vm222_vm0, %v10015_v12  ;;  %8317 = vmatprep.mubr.msk.bf16.mxu1 %vm222_vm0, %v10018_v15  ;;  %v10923_v20 = vpack.c.bf16 %v59_v19, %v58_v18  ;;  %v60_v21 = vld [vmem:[%s13947_s0 + $0x60] sm:$0xff]  ;;  %v61_v22 = vld [vmem:[%s13947_s0 + $0x68] sm:$0xff]  ;;  %v63_v25 = vld [vmem:[%s13947_s0 + $0x78] sm:$0xff] }
   0x7   :  { %v10935_v23 = vpack.c.bf16 %v61_v22, %v60_v21  ;;  %v10947_v26 = vpack.c.bf16 %v63_v25, %v62_v24  ;;  %v64_v27 = vld [vmem:[%s13947_s0 + $0x80] sm:$0xff]  ;;  %v65_v28 = vld [vmem:[%s13947_s0 + $0x88] sm:$0xff]  ;;  %v66_v30 = vld [vmem:[%s13947_s0 + $0x90] sm:$0xff] }
   0x8   :  { %262 = vmatpush1.bf16.msra.mxu0 %v10867_v6  ;;  %572 = vmatpush1.bf16.msra.mxu1 %v10867_v6  ;;  %v10959_v29 = vpack.c.bf16 %v65_v28, %v64_v27  ;;  %v67_v31 = vld [vmem:[%s13947_s0 + $0x98] sm:$0xff]  ;;  %v68_v33 = vld [vmem:[%s13947_s0 + $0xa0] sm:$0xff]  ;;  %v69_v34 = vld [vmem:[%s13947_s0 + $0xa8] sm:$0xff] }
   0x9   :  { %263 = vmatprep.subr.bf16.mxu0 %v13962_v0  ;;  %573 = vmatprep.subr.bf16.mxu1 %v13962_v0  ;;  %v10971_v32 = vpack.c.bf16 %v67_v31, %v66_v30  ;;  %v10983_v35 = vpack.c.bf16 %v69_v34, %v68_v33  ;;  %v70_v36 = vld [vmem:[%s13947_s0 + $0xb0] sm:$0xff]  ;;  %v71_v37 = vld [vmem:[%s13947_s0 + $0xb8] sm:$0xff]  ;;  %v72_v39 = vld [vmem:[%s13947_s0 + $0xc0] sm:$0xff] }
   0xa   :  { %v10995_v38 = vpack.c.bf16 %v71_v37, %v70_v36  ;;  %v73_v40 = vld [vmem:[%s13947_s0 + $0xc8] sm:$0xff]  ;;  %v74_v42 = vld [vmem:[%s13947_s0 + $0xd0] sm:$0xff]  ;;  %v75_v43 = vld [vmem:[%s13947_s0 + $0xd8] sm:$0xff] }
   0xb   :  { %v11007_v41 = vpack.c.bf16 %v73_v40, %v72_v39  ;;  %v11019_v44 = vpack.c.bf16 %v75_v43, %v74_v42  ;;  %v10013_v45 = vld [vmem:[%s13948_s1] ss:$8 sps:$4 sm:$0xff]   ;;  %v10019_v47 = vld [vmem:[%s13948_s1 + $0x14] ss:$8 sps:$4 sm:$0xff]   ;;  %v10023_v49 = vld [vmem:[%s13948_s1 + $0x10] ss:$8 sps:$4 sm:$0xff]  }
   0xc   :  { %264 = vmatpush1.bf16.msra.mxu0 %v10879_v9  ;;  %574 = vmatpush1.bf16.msra.mxu1 %v10879_v9  ;;  %v10016_v46 = vld [vmem:[%s13948_s1 + $0xc0] ss:$8 sps:$4 sm:$0xff]   ;;  %v10021_v48 = vld [vmem:[%s13948_s1 + $0xd4] ss:$8 sps:$4 sm:$0xff]   ;;  %v10024_v50 = vld [vmem:[%s13948_s1 + $0xd0] ss:$8 sps:$4 sm:$0xff]  }
   0xd   :  { %265 = vmatprep.subr.bf16.mxu0 %v13962_v0  ;;  %575 = vmatprep.subr.bf16.mxu1 %v13962_v0  ;;  %v10025_v51 = vld [vmem:[%s13948_s1 + $0x24] ss:$8 sps:$4 sm:$0xff]   ;;  %v10029_v53 = vld [vmem:[%s13948_s1 + $0x20] ss:$8 sps:$4 sm:$0xff]   ;;  %v10031_v55 = vld [vmem:[%s13948_s1 + $0x34] ss:$8 sps:$4 sm:$0xff]  }
   0xe   :  { %v10027_v52 = vld [vmem:[%s13948_s1 + $0xe4] ss:$8 sps:$4 sm:$0xff]   ;;  %v10030_v54 = vld [vmem:[%s13948_s1 + $0xe0] ss:$8 sps:$4 sm:$0xff]   ;;  %v10033_v56 = vld [vmem:[%s13948_s1 + $0xf4] ss:$8 sps:$4 sm:$0xff]  }
   0xf   :  { %v10035_v57 = vld [vmem:[%s13948_s1 + $0x30] ss:$8 sps:$4 sm:$0xff]   ;;  %v10037_v59 = vld [vmem:[%s13948_s1 + $0x44] ss:$8 sps:$4 sm:$0xff]   ;;  %v10041_v61 = vld [vmem:[%s13948_s1 + $0x40] ss:$8 sps:$4 sm:$0xff]  }
  0x10   :  { %266 = vmatpush1.bf16.msra.mxu0 %v10894_v13  ;;  %576 = vmatpush1.bf16.msra.mxu1 %v10894_v13  ;;  %v10036_v58 = vld [vmem:[%s13948_s1 + $0xf0] ss:$8 sps:$4 sm:$0xff]   ;;  %v10039_v60 = vld [vmem:[%s13948_s1 + $0x104] ss:$8 sps:$4 sm:$0xff]   ;;  %v10042_v62 = vld [vmem:[%s13948_s1 + $0x100] ss:$8 sps:$4 sm:$0xff]  }
  0x11   :  { %267 = vmatprep.subr.bf16.mxu0 %v13962_v0  ;;  %577 = vmatprep.subr.bf16.mxu1 %v13962_v0  ;;  %v10043_v63 = vld [vmem:[%s13948_s1 + $0x54] ss:$8 sps:$4 sm:$0xff]   ;;  %v10047_v2 = vld [vmem:[%s13948_s1 + $0x50] ss:$8 sps:$4 sm:$0xff]   ;;  %v10049_v5 = vld [vmem:[%s13948_s1 + $0x64] ss:$8 sps:$4 sm:$0xff]  }
  0x12   :  { %v10045_v1 = vld [vmem:[%s13948_s1 + $0x114] ss:$8 sps:$4 sm:$0xff]   ;;  %v10048_v3 = vld [vmem:[%s13948_s1 + $0x110] ss:$8 sps:$4 sm:$0xff]   ;;  %v10051_v7 = vld [vmem:[%s13948_s1 + $0x124] ss:$8 sps:$4 sm:$0xff]  }
  0x13   :  { %v10053_v8 = vld [vmem:[%s13948_s1 + $0x60] ss:$8 sps:$4 sm:$0xff]   ;;  %v10055_v11 = vld [vmem:[%s13948_s1 + $0x74] ss:$8 sps:$4 sm:$0xff]   ;;  %v10059_v14 = vld [vmem:[%s13948_s1 + $0x70] ss:$8 sps:$4 sm:$0xff]  }
  0x14   :  { %268 = vmatpush1.bf16.msra.mxu0 %v10911_v17  ;;  %578 = vmatpush1.bf16.msra.mxu1 %v10911_v17  ;;  %v10054_v10 = vld [vmem:[%s13948_s1 + $0x120] ss:$8 sps:$4 sm:$0xff]   ;;  %v10057_v12 = vld [vmem:[%s13948_s1 + $0x134] ss:$8 sps:$4 sm:$0xff]   ;;  %v10060_v15 = vld [vmem:[%s13948_s1 + $0x130] ss:$8 sps:$4 sm:$0xff]  }
  0x15   :  { %269 = vmatprep.subr.bf16.mxu0 %v13962_v0  ;;  %579 = vmatprep.subr.bf16.mxu1 %v13962_v0  ;;  %v10061_v16 = vld [vmem:[%s13948_s1 + $0x84] ss:$8 sps:$4 sm:$0xff]   ;;  %v10065_v19 = vld [vmem:[%s13948_s1 + $0x80] ss:$8 sps:$4 sm:$0xff]   ;;  %v10067_v22 = vld [vmem:[%s13948_s1 + $0x94] ss:$8 sps:$4 sm:$0xff]  }
  0x16   :  { %v10063_v18 = vld [vmem:[%s13948_s1 + $0x144] ss:$8 sps:$4 sm:$0xff]   ;;  %v10066_v21 = vld [vmem:[%s13948_s1 + $0x140] ss:$8 sps:$4 sm:$0xff]   ;;  %v10069_v24 = vld [vmem:[%s13948_s1 + $0x154] ss:$8 sps:$4 sm:$0xff]  }
  0x17   :  { %v10071_v25 = vld [vmem:[%s13948_s1 + $0x90] ss:$8 sps:$4 sm:$0xff]   ;;  %v10073_v28 = vld [vmem:[%s13948_s1 + $0xa4] ss:$8 sps:$4 sm:$0xff]   ;;  %v10077_v31 = vld [vmem:[%s13948_s1 + $0xa0] ss:$8 sps:$4 sm:$0xff]  }
  0x18   :  { %270 = vmatpush1.bf16.msra.mxu0 %v10923_v20  ;;  %580 = vmatpush1.bf16.msra.mxu1 %v10923_v20  ;;  %v10072_v27 = vld [vmem:[%s13948_s1 + $0x150] ss:$8 sps:$4 sm:$0xff]   ;;  %v10075_v30 = vld [vmem:[%s13948_s1 + $0x164] ss:$8 sps:$4 sm:$0xff]   ;;  %v10078_v33 = vld [vmem:[%s13948_s1 + $0x160] ss:$8 sps:$4 sm:$0xff]  }
  0x19   :  { %271 = vmatprep.subr.bf16.mxu0 %v13962_v0  ;;  %581 = vmatprep.subr.bf16.mxu1 %v13962_v0  ;;  %v10079_v34 = vld [vmem:[%s13948_s1 + $0xb4] ss:$8 sps:$4 sm:$0xff]   ;;  %v10168_v37 = vld [vmem:[%s13949_s2 + $0x24] ss:$8 sps:$4 sm:$0xff]   ;;  %v10083_v39 = vld [vmem:[%s13948_s1 + $0xb0] ss:$8 sps:$4 sm:$0xff]  }
  0x1a   :  { %v10081_v36 = vld [vmem:[%s13948_s1 + $0x174] ss:$8 sps:$4 sm:$0xff]   ;;  %v10084_v40 = vld [vmem:[%s13948_s1 + $0x170] ss:$8 sps:$4 sm:$0xff]   ;;  %v10087_v42 = vld [vmem:[%s13948_s1 + $0x184] ss:$8 sps:$4 sm:$0xff]  }
  0x1b   :  { %v10098_v43 = vld [vmem:[%s13948_s1 + $0x244] ss:$8 sps:$4 sm:$0xff]  }
  0x1c   :  { %272 = vmatpush1.bf16.msra.mxu0 %v10935_v23  ;;  %582 = vmatpush1.bf16.msra.mxu1 %v10935_v23 }
  0x1d   :  { %273 = vmatprep.subr.bf16.mxu0 %v13962_v0  ;;  %583 = vmatprep.subr.bf16.mxu1 %v13962_v0 }
  0x20   :  { %274 = vmatpush1.bf16.msra.mxu0 %v10947_v26  ;;  %584 = vmatpush1.bf16.msra.mxu1 %v10947_v26 }
  0x21   :  { %275 = vmatprep.subr.bf16.mxu0 %v13962_v0  ;;  %585 = vmatprep.subr.bf16.mxu1 %v13962_v0 }
  0x24   :  { %276 = vmatpush1.bf16.msra.mxu0 %v10959_v29  ;;  %586 = vmatpush1.bf16.msra.mxu1 %v10959_v29 }
  0x25   :  { %277 = vmatprep.subr.bf16.mxu0 %v13962_v0  ;;  %587 = vmatprep.subr.bf16.mxu1 %v13962_v0 }
  0x28   :  { %278 = vmatpush1.bf16.msra.mxu0 %v10971_v32  ;;  %588 = vmatpush1.bf16.msra.mxu1 %v10971_v32 }
  0x29   :  { %279 = vmatprep.subr.bf16.mxu0 %v13962_v0  ;;  %589 = vmatprep.subr.bf16.mxu1 %v13962_v0 }
  0x2c   :  { %280 = vmatpush1.bf16.msra.mxu0 %v10983_v35  ;;  %590 = vmatpush1.bf16.msra.mxu1 %v10983_v35 }
  0x2d   :  { %281 = vmatprep.subr.bf16.mxu0 %v13962_v0  ;;  %591 = vmatprep.subr.bf16.mxu1 %v13962_v0 }
  0x30   :  { %282 = vmatpush1.bf16.msra.mxu0 %v10995_v38  ;;  %592 = vmatpush1.bf16.msra.mxu1 %v10995_v38 }
  0x31   :  { %283 = vmatprep.subr.bf16.mxu0 %v13962_v0  ;;  %593 = vmatprep.subr.bf16.mxu1 %v13962_v0 }
  0x34   :  { %284 = vmatpush1.bf16.msra.mxu0 %v11007_v41  ;;  %594 = vmatpush1.bf16.msra.mxu1 %v11007_v41 }
  0x35   :  { %285 = vmatprep.subr.bf16.mxu0 %v13962_v0  ;;  %595 = vmatprep.subr.bf16.mxu1 %v13962_v0 }
  0x38   :  { %286 = vmatpush1.bf16.msra.mxu0 %v11019_v44  ;;  %596 = vmatpush1.bf16.msra.mxu1 %v11019_v44 }
  0x39   :  { %879 = vmatprep.subr.bf16.mxu0 %v13962_v0  ;;  %1189 = vmatprep.subr.bf16.mxu1 %v13962_v0 }
  0x3b   :  { %292 = vmatmul.mubr.bf16.vlgmr.msra.gmra.mrb[0].mxu0 %v10013_v45  ;;  %602 = vmatmul.mubr.bf16.vlgmr.msra.gmra.mrb[0].mxu1 %v10016_v46  ;;  %v10085_v45 = vld [vmem:[%s13948_s1 + $0x180] ss:$8 sps:$4 sm:$0xff]  }
  0x3c   :  { %8258 = vmatprep.mubr.msk.bf16.mxu0 %vm222_vm0, %v10019_v47  ;;  %8318 = vmatprep.mubr.msk.bf16.mxu1 %vm222_vm0, %v10021_v48  ;;  %v10096_v46 = vld [vmem:[%s13948_s1 + $0x240] ss:$8 sps:$4 sm:$0xff]   ;;  %v10088_v47 = vld [vmem:[%s13948_s1 + $0x194] ss:$8 sps:$4 sm:$0xff]  }
  0x3d   :  { %880 = vmatpush1.bf16.msra.mxu0 %v10860_v4  ;;  %1190 = vmatpush1.bf16.msra.mxu1 %v10860_v4  ;;  %v10102_v48 = vld [vmem:[%s13948_s1 + $0x254] ss:$8 sps:$4 sm:$0xff]  }
  0x3e   :  { %881 = vmatprep.subr.bf16.mxu0 %v13962_v0  ;;  %1191 = vmatprep.subr.bf16.mxu1 %v13962_v0 }
  0x41   :  { %882 = vmatpush1.bf16.msra.mxu0 %v10867_v6  ;;  %1192 = vmatpush1.bf16.msra.mxu1 %v10867_v6 }
  0x42   :  { %883 = vmatprep.subr.bf16.mxu0 %v13962_v0  ;;  %1193 = vmatprep.subr.bf16.mxu1 %v13962_v0 }
  0x43   :  { %300 = vmatmul.mubr.bf16.gmra.mrb[4].mxu0 %v10023_v49  ;;  %610 = vmatmul.mubr.bf16.gmra.mrb[4].mxu1 %v10024_v50  ;;  %v10166_v49 = vld [vmem:[%s13949_s2 + $0x20] ss:$8 sps:$4 sm:$0xff]   ;;  %v10169_v50 = vld [vmem:[%s13949_s2 + $0x34] ss:$8 sps:$4 sm:$0x3f]  }
  0x44   :  { %8259 = vmatprep.mubr.msk.bf16.mxu0 %vm222_vm0, %v10025_v51  ;;  %8319 = vmatprep.mubr.msk.bf16.mxu1 %vm222_vm0, %v10027_v52  ;;  %v10171_v51 = vld [vmem:[%s13949_s2 + $0x30] ss:$8 sps:$4 sm:$0x3f]  }
  0x45   :  { %884 = vmatpush1.bf16.msra.mxu0 %v10879_v9  ;;  %1194 = vmatpush1.bf16.msra.mxu1 %v10879_v9  ;;  %v1710_v52 = vsel %vm1708_vm1, %v10171_v51, 0 }
  0x46   :  { %885 = vmatprep.subr.bf16.mxu0 %v13962_v0  ;;  %1195 = vmatprep.subr.bf16.mxu1 %v13962_v0 }
  0x49   :  { %886 = vmatpush1.bf16.msra.mxu0 %v10894_v13  ;;  %1196 = vmatpush1.bf16.msra.mxu1 %v10894_v13 }
  0x4a   :  { %887 = vmatprep.subr.bf16.mxu0 %v13962_v0  ;;  %1197 = vmatprep.subr.bf16.mxu1 %v13962_v0 }
  0x4b   :  { %308 = vmatmul.mubr.bf16.gmra.mrb[8].mxu0 %v10029_v53  ;;  %618 = vmatmul.mubr.bf16.gmra.mrb[8].mxu1 %v10030_v54  ;;  %v10090_v53 = vld [vmem:[%s13948_s1 + $0x190] ss:$8 sps:$4 sm:$0xff]  }
  0x4c   :  { %8260 = vmatprep.mubr.msk.bf16.mxu0 %vm222_vm0, %v10031_v55  ;;  %8320 = vmatprep.mubr.msk.bf16.mxu1 %vm222_vm0, %v10033_v56  ;;  %v10105_v54 = vld [vmem:[%s13948_s1 + $0x250] ss:$8 sps:$4 sm:$0xff]   ;;  %v10091_v55 = vld [vmem:[%s13948_s1 + $0x1a4] ss:$8 sps:$4 sm:$0xff]   ;;  %v10093_v56 = vld [vmem:[%s13948_s1 + $0x1a0] ss:$8 sps:$4 sm:$0xff]  }
  0x4d   :  { %888 = vmatpush1.bf16.msra.mxu0 %v10911_v17  ;;  %1198 = vmatpush1.bf16.msra.mxu1 %v10911_v17 }
  0x4e   :  { %889 = vmatprep.subr.bf16.mxu0 %v13962_v0  ;;  %1199 = vmatprep.subr.bf16.mxu1 %v13962_v0 }
  0x51   :  { %890 = vmatpush1.bf16.msra.mxu0 %v10923_v20  ;;  %1200 = vmatpush1.bf16.msra.mxu1 %v10923_v20 }
  0x52   :  { %891 = vmatprep.subr.bf16.mxu0 %v13962_v0  ;;  %1201 = vmatprep.subr.bf16.mxu1 %v13962_v0 }
  0x53   :  { %316 = vmatmul.mubr.bf16.gmra.mrb[12].mxu0 %v10035_v57  ;;  %626 = vmatmul.mubr.bf16.gmra.mrb[12].mxu1 %v10036_v58  ;;  %v10094_v57 = vld [vmem:[%s13948_s1 + $0x1b4] ss:$8 sps:$4 sm:$0xff]  }
  0x54   :  { %8261 = vmatprep.mubr.msk.bf16.mxu0 %vm222_vm0, %v10037_v59  ;;  %8321 = vmatprep.mubr.msk.bf16.mxu1 %vm222_vm0, %v10039_v60  ;;  %v10114_v58 = vld [vmem:[%s13948_s1 + $0x274] ss:$8 sps:$4 sm:$0xff]   ;;  %v10117_v59 = vld [vmem:[%s13948_s1 + $0x270] ss:$8 sps:$4 sm:$0xff]   ;;  %v10120_v60 = vld [vmem:[%s13948_s1 + $0x284] ss:$8 sps:$4 sm:$0xff]  }
  0x55   :  { %892 = vmatpush1.bf16.msra.mxu0 %v10935_v23  ;;  %1202 = vmatpush1.bf16.msra.mxu1 %v10935_v23 }
  0x56   :  { %893 = vmatprep.subr.bf16.mxu0 %v13962_v0  ;;  %1203 = vmatprep.subr.bf16.mxu1 %v13962_v0 }
  0x59   :  { %894 = vmatpush1.bf16.msra.mxu0 %v10947_v26  ;;  %1204 = vmatpush1.bf16.msra.mxu1 %v10947_v26 }
  0x5a   :  { %895 = vmatprep.subr.bf16.mxu0 %v13962_v0  ;;  %1205 = vmatprep.subr.bf16.mxu1 %v13962_v0 }
  0x5b   :  { %324 = vmatmul.mubr.bf16.gmra.mrb[16].mxu0 %v10041_v61  ;;  %634 = vmatmul.mubr.bf16.gmra.mrb[16].mxu1 %v10042_v62  ;;  %v10123_v61 = vld [vmem:[%s13948_s1 + $0x280] ss:$8 sps:$4 sm:$0xff]   ;;  %v10126_v62 = vld [vmem:[%s13948_s1 + $0x294] ss:$8 sps:$4 sm:$0xff]  }
  0x5c   :  { %8262 = vmatprep.mubr.msk.bf16.mxu0 %vm222_vm0, %v10043_v63  ;;  %8322 = vmatprep.mubr.msk.bf16.mxu1 %vm222_vm0, %v10045_v1  ;;  %v10112_v63 = vld [vmem:[%s13948_s1 + $0x1e4] ss:$8 sps:$4 sm:$0xff]  }
  0x5d   :  { %896 = vmatpush1.bf16.msra.mxu0 %v10959_v29  ;;  %1206 = vmatpush1.bf16.msra.mxu1 %v10959_v29  ;;  %v10132_v1 = vld [vmem:[%s13948_s1 + $0x2a4] ss:$8 sps:$4 sm:$0xff]  }
  0x5e   :  { %897 = vmatprep.subr.bf16.mxu0 %v13962_v0  ;;  %1207 = vmatprep.subr.bf16.mxu1 %v13962_v0 }
  0x61   :  { %898 = vmatpush1.bf16.msra.mxu0 %v10971_v32  ;;  %1208 = vmatpush1.bf16.msra.mxu1 %v10971_v32 }
  0x62   :  { %899 = vmatprep.subr.bf16.mxu0 %v13962_v0  ;;  %1209 = vmatprep.subr.bf16.mxu1 %v13962_v0 }
  0x63   :  { %332 = vmatmul.mubr.bf16.gmra.mrb[20].mxu0 %v10047_v2  ;;  %642 = vmatmul.mubr.bf16.gmra.mrb[20].mxu1 %v10048_v3  ;;  %v10118_v2 = vld [vmem:[%s13948_s1 + $0x1f4] ss:$8 sps:$4 sm:$0xff]  }
  0x64   :  { %8263 = vmatprep.mubr.msk.bf16.mxu0 %vm222_vm0, %v10049_v5  ;;  %8323 = vmatprep.mubr.msk.bf16.mxu1 %vm222_vm0, %v10051_v7  ;;  %v10138_v3 = vld [vmem:[%s13948_s1 + $0x2b4] ss:$8 sps:$4 sm:$0xff]   ;;  %v10141_v5 = vld [vmem:[%s13948_s1 + $0x2b0] ss:$8 sps:$4 sm:$0xff]   ;;  %v10124_v7 = vld [vmem:[%s13948_s1 + $0x204] ss:$8 sps:$4 sm:$0xff]  }
  0x65   :  { %900 = vmatpush1.bf16.msra.mxu0 %v10983_v35  ;;  %1210 = vmatpush1.bf16.msra.mxu1 %v10983_v35 }
  0x66   :  { %901 = vmatprep.subr.bf16.mxu0 %v13962_v0  ;;  %1211 = vmatprep.subr.bf16.mxu1 %v13962_v0 }
  0x69   :  { %902 = vmatpush1.bf16.msra.mxu0 %v10995_v38  ;;  %1212 = vmatpush1.bf16.msra.mxu1 %v10995_v38 }
  0x6a   :  { %903 = vmatprep.subr.bf16.mxu0 %v13962_v0  ;;  %1213 = vmatprep.subr.bf16.mxu1 %v13962_v0 }
  0x6b   :  { %340 = vmatmul.mubr.bf16.gmra.mrb[24].mxu0 %v10053_v8  ;;  %650 = vmatmul.mubr.bf16.gmra.mrb[24].mxu1 %v10054_v10  ;;  %v10128_v8 = vld [vmem:[%s13948_s1 + $0x200] ss:$8 sps:$4 sm:$0xff]  }
  0x6c   :  { %8264 = vmatprep.mubr.msk.bf16.mxu0 %vm222_vm0, %v10055_v11  ;;  %8324 = vmatprep.mubr.msk.bf16.mxu1 %vm222_vm0, %v10057_v12  ;;  %v10147_v10 = vld [vmem:[%s13948_s1 + $0x2c0] ss:$8 sps:$4 sm:$0xff]   ;;  %v10130_v11 = vld [vmem:[%s13948_s1 + $0x214] ss:$8 sps:$4 sm:$0xff]   ;;  %v10134_v12 = vld [vmem:[%s13948_s1 + $0x210] ss:$8 sps:$4 sm:$0xff]  }
  0x6d   :  { %904 = vmatpush1.bf16.msra.mxu0 %v11007_v41  ;;  %1214 = vmatpush1.bf16.msra.mxu1 %v11007_v41 }
  0x6e   :  { %905 = vmatprep.subr.bf16.mxu0 %v13962_v0  ;;  %1215 = vmatprep.subr.bf16.mxu1 %v13962_v0 }
  0x71   :  { %906 = vmatpush1.bf16.msra.mxu0 %v11019_v44  ;;  %1216 = vmatpush1.bf16.msra.mxu1 %v11019_v44 }
  0x72   :  { %1499 = vmatprep.subr.bf16.mxu0 %v13962_v0  ;;  %1715 = vmatprep.subr.bf16.mxu1 %v10168_v37 }
  0x73   :  { %348 = vmatmul.mubr.bf16.gmra.mrb[28].mxu0 %v10059_v14  ;;  %658 = vmatmul.mubr.bf16.gmra.mrb[28].mxu1 %v10060_v15  ;;  %v10153_v14 = vld [vmem:[%s13948_s1 + $0x2d0] ss:$8 sps:$4 sm:$0xff]   ;;  %v10136_v15 = vld [vmem:[%s13948_s1 + $0x224] ss:$8 sps:$4 sm:$0xff]  }
  0x74   :  { %8265 = vmatprep.mubr.msk.bf16.mxu0 %vm222_vm0, %v10061_v16  ;;  %8325 = vmatprep.mubr.msk.bf16.mxu1 %vm222_vm0, %v10063_v18  ;;  %v10154_v16 = vld [vmem:[%s13948_s1 + $0x2e4] ss:$8 sps:$4 sm:$0xff]   ;;  %v10140_v18 = vld [vmem:[%s13948_s1 + $0x220] ss:$8 sps:$4 sm:$0xff]  }
  0x7b   :  { %356 = vmatmul.mubr.bf16.gmra.mrb[32].mxu0 %v10065_v19  ;;  %666 = vmatmul.mubr.bf16.gmra.mrb[32].mxu1 %v10066_v21  ;;  %v10158_v19 = vld [vmem:[%s13948_s1 + $0x2e0] ss:$8 sps:$4 sm:$0xff]   ;;  %v10142_v21 = vld [vmem:[%s13948_s1 + $0x234] ss:$8 sps:$4 sm:$0xff]  }
  0x7c   :  { %8266 = vmatprep.mubr.msk.bf16.mxu0 %vm222_vm0, %v10067_v22  ;;  %8326 = vmatprep.mubr.msk.bf16.mxu1 %vm222_vm0, %v10069_v24  ;;  %v10160_v22 = vld [vmem:[%s13948_s1 + $0x2f4] ss:$8 sps:$4 sm:$0xff]   ;;  %v10207_v24 = vld [vmem:[%s13949_s2 + $0x4] ss:$8 sps:$4 sm:$0xff]  }
  0x83   :  { %364 = vmatmul.mubr.bf16.gmra.mrb[36].mxu0 %v10071_v25  ;;  %674 = vmatmul.mubr.bf16.gmra.mrb[36].mxu1 %v10072_v27  ;;  %v10146_v25 = vld [vmem:[%s13948_s1 + $0x230] ss:$8 sps:$4 sm:$0xff]  }
  0x84   :  { %8267 = vmatprep.mubr.msk.bf16.mxu0 %vm222_vm0, %v10073_v28  ;;  %8327 = vmatprep.mubr.msk.bf16.mxu1 %vm222_vm0, %v10075_v30  ;;  %v10164_v27 = vld [vmem:[%s13948_s1 + $0x2f0] ss:$8 sps:$4 sm:$0xff]   ;;  %v10152_v28 = vld [vmem:[%s13948_s1 + $0x304] ss:$8 sps:$4 sm:$0xff]   ;;  %v10150_v30 = vld [vmem:[%s13948_s1 + $0x300] ss:$8 sps:$4 sm:$0xff]  }
  0x8b   :  { %372 = vmatmul.mubr.bf16.gmra.mrb[40].mxu0 %v10077_v31  ;;  %682 = vmatmul.mubr.bf16.gmra.mrb[40].mxu1 %v10078_v33  ;;  %v10156_v31 = vld [vmem:[%s13948_s1 + $0x314] ss:$8 sps:$4 sm:$0xff]   ;;  %v10184_v33 = vld [vmem:[%s13950_s3 + $0x20] ss:$8 sps:$4 sm:$0xff]  }
  0x8c   :  { %8268 = vmatprep.mubr.msk.bf16.mxu0 %vm222_vm0, %v10079_v34  ;;  %8328 = vmatprep.mubr.msk.bf16.mxu1 %vm222_vm0, %v10081_v36  ;;  %v10202_v34 = vld [vmem:[%s13950_s3 + $0x34] ss:$8 sps:$4 sm:$0x3f]   ;;  %v10204_v36 = vld [vmem:[%s13950_s3 + $0x30] ss:$8 sps:$4 sm:$0x3f]  }
  0x8d   :  { %v2105_v37 = vsel %vm1708_vm1, %v10204_v36, 0  ;;  %v10189_v36 = vld [vmem:[%s13948_s1 + $0x370] ss:$8 sps:$4 sm:$0xff]  }
  0x93   :  { %380 = vmatmul.mubr.bf16.gmra.mrb[44].mxu0 %v10083_v39  ;;  %690 = vmatmul.mubr.bf16.gmra.mrb[44].mxu1 %v10084_v40  ;;  %v10159_v39 = vld [vmem:[%s13948_s1 + $0x310] ss:$8 sps:$4 sm:$0xff]   ;;  %v10162_v40 = vld [vmem:[%s13948_s1 + $0x324] ss:$8 sps:$4 sm:$0xff]  }
  0x94   :  { %8377 = vmatprep.mubr.msk.bf16.mxu0 %vm222_vm0, %v10087_v42  ;;  %8437 = vmatprep.mubr.msk.bf16.mxu1 %vm222_vm0, %v10098_v43  ;;  %v10165_v42 = vld [vmem:[%s13948_s1 + $0x320] ss:$8 sps:$4 sm:$0xff]   ;;  %v10172_v43 = vld [vmem:[%s13948_s1 + $0x334] ss:$8 sps:$4 sm:$0xff]  }
  0x9b   :  { %912 = vmatmul.mubr.bf16.vlgmr.msra.gmra.mrb[48].mxu0 %v10085_v45  ;;  %1222 = vmatmul.mubr.bf16.vlgmr.msra.gmra.mrb[48].mxu1 %v10096_v46 }
  0x9c   :  { %8378 = vmatprep.mubr.msk.bf16.mxu0 %vm222_vm0, %v10088_v47  ;;  %8438 = vmatprep.mubr.msk.bf16.mxu1 %vm222_vm0, %v10102_v48 }
  0x9d   :  { %1500 = vmatpush1.bf16.msra.mxu0 %v10860_v4  ;;  %1716 = vmatpush1.bf16.msra.mxu1 %v10166_v49  ;;  %v10108_v4 = vld [vmem:[%s13948_s1 + $0x264] ss:$8 sps:$4 sm:$0xff]   ;;  %v10174_v49 = vld [vmem:[%s13948_s1 + $0x330] ss:$8 sps:$4 sm:$0xff]  }
  0x9e   :  { %1501 = vmatprep.subr.bf16.mxu0 %v13962_v0  ;;  %8517 = vmatprep.subr.msk.bf16.mxu1 %vm1708_vm1, %v10169_v50  ;;  %v10213_v50 = vld [vmem:[%s13950_s3 + $0x4] ss:$8 sps:$4 sm:$0xff]  }
  0xa1   :  { %1502 = vmatpush1.bf16.msra.mxu0 %v10867_v6  ;;  %1718 = vmatpush1.bf16.msra.mxu1 %v1710_v52  ;;  %v10111_v6 = vld [vmem:[%s13948_s1 + $0x260] ss:$8 sps:$4 sm:$0xff]  }
  0xa2   :  { %1503 = vmatprep.subr.bf16.mxu0 %v13962_v0  ;;  %1928 = vmatprep.subr.bf16.mxu1 %v10207_v24 }
  0xa3   :  { %920 = vmatmul.mubr.bf16.gmra.mrb[52].mxu0 %v10090_v53  ;;  %1230 = vmatmul.mubr.bf16.gmra.mrb[52].mxu1 %v10105_v54  ;;  %v10175_v53 = vld [vmem:[%s13948_s1 + $0x344] ss:$8 sps:$4 sm:$0xff]  }
  0xa4   :  { %8379 = vmatprep.mubr.msk.bf16.mxu0 %vm222_vm0, %v10091_v55  ;;  %8439 = vmatprep.mubr.msk.bf16.mxu1 %vm222_vm0, %v10108_v4 }
  0xa5   :  { %1504 = vmatpush1.bf16.msra.mxu0 %v10879_v9  ;;  %v10099_v9 = vld [vmem:[%s13948_s1 + $0x1b0] ss:$8 sps:$4 sm:$0xff]  }
  0xa6   :  { %1505 = vmatprep.subr.bf16.mxu0 %v13962_v0 }
  0xa9   :  { %1506 = vmatpush1.bf16.msra.mxu0 %v10894_v13  ;;  %v10100_v13 = vld [vmem:[%s13948_s1 + $0x1c4] ss:$8 sps:$4 sm:$0xff]  }
  0xaa   :  { %1507 = vmatprep.subr.bf16.mxu0 %v13962_v0 }
  0xab   :  { %928 = vmatmul.mubr.bf16.gmra.mrb[56].mxu0 %v10093_v56  ;;  %1238 = vmatmul.mubr.bf16.gmra.mrb[56].mxu1 %v10111_v6  ;;  %v10205_v6 = vld [vmem:[%s13949_s2] ss:$8 sps:$4 sm:$0xff]  }
  0xac   :  { %8380 = vmatprep.mubr.msk.bf16.mxu0 %vm222_vm0, %v10094_v57  ;;  %8440 = vmatprep.mubr.msk.bf16.mxu1 %vm222_vm0, %v10114_v58  ;;  %v10208_v57 = vld [vmem:[%s13949_s2 + $0x14] ss:$8 sps:$4 sm:$0x3f]   ;;  %v10210_v58 = vld [vmem:[%s13949_s2 + $0x10] ss:$8 sps:$4 sm:$0x3f]  }
  0xad   :  { %1508 = vmatpush1.bf16.msra.mxu0 %v10911_v17  ;;  %v10104_v17 = vld [vmem:[%s13948_s1 + $0x1c0] ss:$8 sps:$4 sm:$0xff]  }
  0xae   :  { %1509 = vmatprep.subr.bf16.mxu0 %v13962_v0 }
  0xb1   :  { %1510 = vmatpush1.bf16.msra.mxu0 %v10923_v20  ;;  %v10106_v20 = vld [vmem:[%s13948_s1 + $0x1d4] ss:$8 sps:$4 sm:$0xff]  }
  0xb2   :  { %1511 = vmatprep.subr.bf16.mxu0 %v13962_v0 }
  0xb3   :  { %936 = vmatmul.mubr.bf16.gmra.mrb[60].mxu0 %v10099_v9  ;;  %1246 = vmatmul.mubr.bf16.gmra.mrb[60].mxu1 %v10117_v59  ;;  %v1923_v59 = vsel %vm1708_vm1, %v10210_v58, 0 }
  0xb4   :  { %8381 = vmatprep.mubr.msk.bf16.mxu0 %vm222_vm0, %v10100_v13  ;;  %8441 = vmatprep.mubr.msk.bf16.mxu1 %vm222_vm0, %v10120_v60 }
  0xb5   :  { %1512 = vmatpush1.bf16.msra.mxu0 %v10935_v23  ;;  %v10110_v23 = vld [vmem:[%s13948_s1 + $0x1d0] ss:$8 sps:$4 sm:$0xff]  }
  0xb6   :  { %1513 = vmatprep.subr.bf16.mxu0 %v13962_v0 }
  0xb9   :  { %1514 = vmatpush1.bf16.msra.mxu0 %v10947_v26  ;;  %v10129_v26 = vld [vmem:[%s13948_s1 + $0x290] ss:$8 sps:$4 sm:$0xff]  }
  0xba   :  { %1515 = vmatprep.subr.bf16.mxu0 %v13962_v0 }
  0xbb   :  { %944 = vmatmul.mubr.bf16.gmra.mrb[64].mxu0 %v10104_v17  ;;  %1254 = vmatmul.mubr.bf16.gmra.mrb[64].mxu1 %v10123_v61  ;;  %v10177_v61 = vld [vmem:[%s13948_s1 + $0x340] ss:$8 sps:$4 sm:$0xff]  }
  0xbc   :  { %8382 = vmatprep.mubr.msk.bf16.mxu0 %vm222_vm0, %v10106_v20  ;;  %8442 = vmatprep.mubr.msk.bf16.mxu1 %vm222_vm0, %v10126_v62 }
  0xbd   :  { %1516 = vmatpush1.bf16.msra.mxu0 %v10959_v29  ;;  %v10116_v29 = vld [vmem:[%s13948_s1 + $0x1e0] ss:$8 sps:$4 sm:$0xff]  }
  0xbe   :  { %1517 = vmatprep.subr.bf16.mxu0 %v13962_v0 }
  0xc1   :  { %1518 = vmatpush1.bf16.msra.mxu0 %v10971_v32  ;;  %v10135_v32 = vld [vmem:[%s13948_s1 + $0x2a0] ss:$8 sps:$4 sm:$0xff]  }
  0xc2   :  { %1519 = vmatprep.subr.bf16.mxu0 %v13962_v0 }
  0xc3   :  { %952 = vmatmul.mubr.bf16.gmra.mrb[68].mxu0 %v10110_v23  ;;  %1262 = vmatmul.mubr.bf16.gmra.mrb[68].mxu1 %v10129_v26  ;;  %v10178_v23 = vld [vmem:[%s13948_s1 + $0x354] ss:$8 sps:$4 sm:$0xff]  }
  0xc4   :  { %8383 = vmatprep.mubr.msk.bf16.mxu0 %vm222_vm0, %v10112_v63  ;;  %8443 = vmatprep.mubr.msk.bf16.mxu1 %vm222_vm0, %v10132_v1 }
  0xc5   :  { %1520 = vmatpush1.bf16.msra.mxu0 %v10983_v35  ;;  %v10186_v35 = vld [vmem:[%s13950_s3 + $0x24] ss:$8 sps:$4 sm:$0xff]  }
  0xc6   :  { %1521 = vmatprep.subr.bf16.mxu0 %v13962_v0 }
  0xc9   :  { %1522 = vmatpush1.bf16.msra.mxu0 %v10995_v38  ;;  %v10122_v38 = vld [vmem:[%s13948_s1 + $0x1f0] ss:$8 sps:$4 sm:$0xff]  }
  0xca   :  { %1523 = vmatprep.subr.bf16.mxu0 %v13962_v0 }
  0xcb   :  { %960 = vmatmul.mubr.bf16.gmra.mrb[72].mxu0 %v10116_v29  ;;  %1270 = vmatmul.mubr.bf16.gmra.mrb[72].mxu1 %v10135_v32 }
  0xcc   :  { %8384 = vmatprep.mubr.msk.bf16.mxu0 %vm222_vm0, %v10118_v2  ;;  %8444 = vmatprep.mubr.msk.bf16.mxu1 %vm222_vm0, %v10138_v3 }
  0xcd   :  { %1524 = vmatpush1.bf16.msra.mxu0 %v11007_v41  ;;  %v10144_v41 = vld [vmem:[%s13948_s1 + $0x2c4] ss:$8 sps:$4 sm:$0xff]  }
  0xce   :  { %1525 = vmatprep.subr.bf16.mxu0 %v13962_v0 }
  0xd1   :  { %1526 = vmatpush1.bf16.msra.mxu0 %v11019_v44  ;;  %v10148_v44 = vld [vmem:[%s13948_s1 + $0x2d4] ss:$8 sps:$4 sm:$0xff]  }
  0xd2   :  { %2110 = vmatprep.subr.bf16.mxu0 %v10186_v35 }
  0xd3   :  { %968 = vmatmul.mubr.bf16.gmra.mrb[76].mxu0 %v10122_v38  ;;  %1278 = vmatmul.mubr.bf16.gmra.mrb[76].mxu1 %v10141_v5  ;;  %v10180_v38 = vld [vmem:[%s13948_s1 + $0x350] ss:$8 sps:$4 sm:$0xff]  }
  0xd4   :  { %8385 = vmatprep.mubr.msk.bf16.mxu0 %vm222_vm0, %v10124_v7  ;;  %8445 = vmatprep.mubr.msk.bf16.mxu1 %vm222_vm0, %v10144_v41  ;;  %v10181_v41 = vld [vmem:[%s13948_s1 + $0x364] ss:$8 sps:$4 sm:$0xff]  }
  0xdb   :  { %976 = vmatmul.mubr.bf16.gmra.mrb[80].mxu0 %v10128_v8  ;;  %1286 = vmatmul.mubr.bf16.gmra.mrb[80].mxu1 %v10147_v10 }
  0xdc   :  { %8386 = vmatprep.mubr.msk.bf16.mxu0 %vm222_vm0, %v10130_v11  ;;  %8446 = vmatprep.mubr.msk.bf16.mxu1 %vm222_vm0, %v10148_v44 }
  0xe3   :  { %984 = vmatmul.mubr.bf16.gmra.mrb[84].mxu0 %v10134_v12  ;;  %1294 = vmatmul.mubr.bf16.gmra.mrb[84].mxu1 %v10153_v14 }
  0xe4   :  { %8387 = vmatprep.mubr.msk.bf16.mxu0 %vm222_vm0, %v10136_v15  ;;  %8447 = vmatprep.mubr.msk.bf16.mxu1 %vm222_vm0, %v10154_v16 }
  0xeb   :  { %992 = vmatmul.mubr.bf16.gmra.mrb[88].mxu0 %v10140_v18  ;;  %1302 = vmatmul.mubr.bf16.gmra.mrb[88].mxu1 %v10158_v19  ;;  %v10183_v18 = vld [vmem:[%s13948_s1 + $0x360] ss:$8 sps:$4 sm:$0xff]  }
  0xec   :  { %8388 = vmatprep.mubr.msk.bf16.mxu0 %vm222_vm0, %v10142_v21  ;;  %8448 = vmatprep.mubr.msk.bf16.mxu1 %vm222_vm0, %v10160_v22  ;;  %v10187_v22 = vld [vmem:[%s13948_s1 + $0x374] ss:$8 sps:$4 sm:$0xff]  }
  0xf3   :  { %1000 = vmatmul.mubr.bf16.gmra.mrb[92].mxu0 %v10146_v25  ;;  %1310 = vmatmul.mubr.bf16.gmra.mrb[92].mxu1 %v10164_v27 }
  0xf4   :  { %8497 = vmatprep.mubr.msk.bf16.mxu0 %vm222_vm0, %v10152_v28  ;;  %1747 = vmatprep.mubr.bf16.mxu1 %v13962_v0 }
  0xfb   :  { %1532 = vmatmul.mubr.bf16.vlgmr.msra.gmra.mrb[96].mxu0 %v10150_v30 }
  0xfc   :  { %8498 = vmatprep.mubr.msk.bf16.mxu0 %vm222_vm0, %v10156_v31  ;;  %2111 = vmatpush1.bf16.msra.mxu0 %v10184_v33 }
  0xfd   :  { %8555 = vmatprep.subr.msk.bf16.mxu0 %vm1708_vm1, %v10202_v34 }
 0x100   :  { %2113 = vmatpush1.bf16.msra.mxu0 %v2105_v37 }
 0x101   :  { %2287 = vmatprep.subr.bf16.mxu0 %v10213_v50 }
 0x103   :  { %1540 = vmatmul.mubr.bf16.gmra.mrb[100].mxu0 %v10159_v39 }
 0x104   :  { %8499 = vmatprep.mubr.msk.bf16.mxu0 %vm222_vm0, %v10162_v40  ;;  %v10190_v40 = vld [vmem:[%s13948_s1 + $0x384] ss:$8 sps:$4 sm:$0xff]  }
 0x10b   :  { %1548 = vmatmul.mubr.bf16.gmra.mrb[104].mxu0 %v10165_v42 }
 0x10c   :  { %8500 = vmatprep.mubr.msk.bf16.mxu0 %vm222_vm0, %v10172_v43 }
 0x10e   :  { %v293_v45 = vpop.f32.mrb[0].mxu0  ;;  %v603_v46 = vpop.f32.mrb[0].mxu1 }
 0x10f   :  { %v295_v47 = vpop.f32.mrb[1].mxu0  ;;  %v605_v48 = vpop.f32.mrb[1].mxu1 }
 0x110   :  { %v296_v51 = vpop.f32.mrb[2].mxu0  ;;  %v606_v52 = vpop.f32.mrb[2].mxu1 }
 0x111   :  { %v11503_v54 = vpack.c.bf16 %v296_v51, %v293_v45  ;;  %v11505_v55 = vpack.c.bf16 %v606_v52, %v603_v46  ;;  %v298_v4 = vpop.f32.mrb[3].mxu0  ;;  %v608_v56 = vpop.f32.mrb[3].mxu1  ;;  %v10192_v51 = vld [vmem:[%s13948_s1 + $0x380] ss:$8 sps:$4 sm:$0xff]  }
 0x112   :  { %v10193_v4 = vld [vmem:[%s13948_s1 + $0x394] ss:$8 sps:$4 sm:$0xff]  }
 0x113   :  { %1556 = vmatmul.mubr.bf16.gmra.mrb[108].mxu0 %v10174_v49  ;;  %8518 = vmatmul.mubr.msk.bf16.vlgmr.msra.gmra.mrb[96].mxu1 %vm1671_vm2, %v11505_v55 }
 0x114   :  { %8501 = vmatprep.mubr.msk.bf16.mxu0 %vm222_vm0, %v10175_v53  ;;  %1757 = vmatprep.mubr.bf16.mxu1 %v13962_v0 }
 0x115   :  { %1929 = vmatpush1.bf16.msra.mxu1 %v10205_v6 }
 0x116   :  { %v301_v9 = vpop.f32.mrb[4].mxu0  ;;  %v611_v13 = vpop.f32.mrb[4].mxu1  ;;  %8534 = vmatprep.subr.msk.bf16.mxu1 %vm1708_vm1, %v10208_v57 }
 0x117   :  { %v303_v60 = vpop.f32.mrb[5].mxu0  ;;  %v613_v17 = vpop.f32.mrb[5].mxu1 }
 0x118   :  { %v304_v20 = vpop.f32.mrb[6].mxu0  ;;  %v614_v62 = vpop.f32.mrb[6].mxu1  ;;  %v10195_v17 = vld [vmem:[%s13948_s1 + $0x390] ss:$8 sps:$4 sm:$0xff]  }
 0x119   :  { %v11528_v26 = vpack.c.bf16 %v304_v20, %v301_v9  ;;  %v11530_v63 = vpack.c.bf16 %v614_v62, %v611_v13  ;;  %v306_v1 = vpop.f32.mrb[7].mxu0  ;;  %v616_v29 = vpop.f32.mrb[7].mxu1  ;;  %1931 = vmatpush1.bf16.msra.mxu1 %v1923_v59  ;;  %v10196_v62 = vld [vmem:[%s13948_s1 + $0x3a4] ss:$8 sps:$4 sm:$0xff]  }
 0x11b   :  { %1564 = vmatmul.mubr.bf16.gmra.mrb[112].mxu0 %v10177_v61  ;;  %8519 = vmatmul.mubr.msk.bf16.gmra.mrb[100].mxu1 %vm1671_vm2, %v11530_v63 }
 0x11c   :  { %8502 = vmatprep.mubr.msk.bf16.mxu0 %vm222_vm0, %v10178_v23  ;;  %1767 = vmatprep.mubr.bf16.mxu1 %v13962_v0 }
 0x11e   :  { %v309_v32 = vpop.f32.mrb[8].mxu0  ;;  %v619_v2 = vpop.f32.mrb[8].mxu1 }
 0x11f   :  { %v311_v3 = vpop.f32.mrb[9].mxu0  ;;  %v621_v35 = vpop.f32.mrb[9].mxu1 }
 0x120   :  { %v312_v5 = vpop.f32.mrb[10].mxu0  ;;  %v622_v7 = vpop.f32.mrb[10].mxu1 }
 0x121   :  { %v11542_v8 = vpack.c.bf16 %v312_v5, %v309_v32  ;;  %v11544_v10 = vpack.c.bf16 %v622_v7, %v619_v2  ;;  %v314_v11 = vpop.f32.mrb[11].mxu0  ;;  %v624_v44 = vpop.f32.mrb[11].mxu1  ;;  %v10198_v5 = vld [vmem:[%s13948_s1 + $0x3a0] ss:$8 sps:$4 sm:$0xff]  }
 0x122   :  { %v10199_v11 = vld [vmem:[%s13948_s1 + $0x3b4] ss:$8 sps:$4 sm:$0xff]  }
 0x123   :  { %1572 = vmatmul.mubr.bf16.gmra.mrb[116].mxu0 %v10180_v38  ;;  %8520 = vmatmul.mubr.msk.bf16.gmra.mrb[104].mxu1 %vm1671_vm2, %v11544_v10 }
 0x124   :  { %8503 = vmatprep.mubr.msk.bf16.mxu0 %vm222_vm0, %v10181_v41  ;;  %1777 = vmatprep.mubr.bf16.mxu1 %v13962_v0 }
 0x126   :  { %v317_v12 = vpop.f32.mrb[12].mxu0  ;;  %v627_v14 = vpop.f32.mrb[12].mxu1 }
 0x127   :  { %v319_v15 = vpop.f32.mrb[13].mxu0  ;;  %v629_v16 = vpop.f32.mrb[13].mxu1 }
 0x128   :  { %v320_v19 = vpop.f32.mrb[14].mxu0  ;;  %v630_v21 = vpop.f32.mrb[14].mxu1  ;;  %v10219_v16 = vld [vmem:[%s13949_s2 + $0x44] ss:$8 sps:$4 sm:$0xff]  }
 0x129   :  { %v11556_v24 = vpack.c.bf16 %v320_v19, %v317_v12  ;;  %v11558_v25 = vpack.c.bf16 %v630_v21, %v627_v14  ;;  %v322_v27 = vpop.f32.mrb[15].mxu0  ;;  %v632_v28 = vpop.f32.mrb[15].mxu1  ;;  %2505 = vmatprep.subr.bf16.mxu1 %v10219_v16 }
 0x12a   :  { %v10201_v27 = vld [vmem:[%s13948_s1 + $0x3b0] ss:$8 sps:$4 sm:$0xff]  }
 0x12b   :  { %1580 = vmatmul.mubr.bf16.gmra.mrb[120].mxu0 %v10183_v18  ;;  %8521 = vmatmul.mubr.msk.bf16.gmra.mrb[108].mxu1 %vm1671_vm2, %v11558_v25 }
 0x12c   :  { %8504 = vmatprep.mubr.msk.bf16.mxu0 %vm222_vm0, %v10187_v22  ;;  %1787 = vmatprep.mubr.bf16.mxu1 %v13962_v0 }
 0x12e   :  { %v325_v30 = vpop.f32.mrb[16].mxu0  ;;  %v635_v31 = vpop.f32.mrb[16].mxu1 }
 0x12f   :  { %v327_v33 = vpop.f32.mrb[17].mxu0  ;;  %v637_v34 = vpop.f32.mrb[17].mxu1 }
 0x130   :  { %v328_v37 = vpop.f32.mrb[18].mxu0  ;;  %v638_v39 = vpop.f32.mrb[18].mxu1 }
 0x131   :  { %v11570_v42 = vpack.c.bf16 %v328_v37, %v325_v30  ;;  %v11572_v43 = vpack.c.bf16 %v638_v39, %v635_v31  ;;  %v330_v45 = vpop.f32.mrb[19].mxu0  ;;  %v640_v46 = vpop.f32.mrb[19].mxu1 }
 0x133   :  { %1588 = vmatmul.mubr.bf16.gmra.mrb[124].mxu0 %v10189_v36  ;;  %8522 = vmatmul.mubr.msk.bf16.gmra.mrb[112].mxu1 %vm1671_vm2, %v11572_v43 }
 0x134   :  { %8505 = vmatprep.mubr.msk.bf16.mxu0 %vm222_vm0, %v10190_v40  ;;  %1797 = vmatprep.mubr.bf16.mxu1 %v13962_v0 }
 0x136   :  { %v333_v47 = vpop.f32.mrb[20].mxu0  ;;  %v643_v48 = vpop.f32.mrb[20].mxu1 }
 0x137   :  { %v335_v49 = vpop.f32.mrb[21].mxu0  ;;  %v645_v50 = vpop.f32.mrb[21].mxu1 }
 0x138   :  { %v336_v52 = vpop.f32.mrb[22].mxu0  ;;  %v646_v53 = vpop.f32.mrb[22].mxu1 }
 0x139   :  { %v11584_v56 = vpack.c.bf16 %v336_v52, %v333_v47  ;;  %v11586_v6 = vpack.c.bf16 %v646_v53, %v643_v48  ;;  %v338_v57 = vpop.f32.mrb[23].mxu0  ;;  %v648_v58 = vpop.f32.mrb[23].mxu1  ;;  %v10211_v52 = vld [vmem:[%s13950_s3] ss:$8 sps:$4 sm:$0xff]  }
 0x13a   :  { %v10214_v53 = vld [vmem:[%s13950_s3 + $0x14] ss:$8 sps:$4 sm:$0x3f]  }
 0x13b   :  { %1596 = vmatmul.mubr.bf16.gmra.mrb[128].mxu0 %v10192_v51  ;;  %8523 = vmatmul.mubr.msk.bf16.gmra.mrb[116].mxu1 %vm1671_vm2, %v11586_v6 }
 0x13c   :  { %8506 = vmatprep.mubr.msk.bf16.mxu0 %vm222_vm0, %v10193_v4  ;;  %1807 = vmatprep.mubr.bf16.mxu1 %v13962_v0  ;;  %v10216_v4 = vld [vmem:[%s13950_s3 + $0x10] ss:$8 sps:$4 sm:$0x3f]  }
 0x13e   :  { %v341_v9 = vpop.f32.mrb[24].mxu0  ;;  %v651_v13 = vpop.f32.mrb[24].mxu1 }
 0x13f   :  { %v343_v59 = vpop.f32.mrb[25].mxu0  ;;  %v653_v60 = vpop.f32.mrb[25].mxu1 }
 0x140   :  { %v344_v61 = vpop.f32.mrb[26].mxu0  ;;  %v654_v20 = vpop.f32.mrb[26].mxu1 }
 0x141   :  { %v11598_v23 = vpack.c.bf16 %v344_v61, %v341_v9  ;;  %v11600_v1 = vpack.c.bf16 %v654_v20, %v651_v13  ;;  %v346_v29 = vpop.f32.mrb[27].mxu0  ;;  %v656_v32 = vpop.f32.mrb[27].mxu1  ;;  %v2282_v9 = vsel %vm1708_vm1, %v10216_v4, 0 }
 0x143   :  { %1604 = vmatmul.mubr.bf16.gmra.mrb[132].mxu0 %v10195_v17  ;;  %8524 = vmatmul.mubr.msk.bf16.gmra.mrb[120].mxu1 %vm1671_vm2, %v11600_v1 }
 0x144   :  { %8507 = vmatprep.mubr.msk.bf16.mxu0 %vm222_vm0, %v10196_v62  ;;  %1817 = vmatprep.mubr.bf16.mxu1 %v13962_v0 }
 0x146   :  { %v349_v2 = vpop.f32.mrb[28].mxu0  ;;  %v659_v3 = vpop.f32.mrb[28].mxu1 }
 0x147   :  { %v351_v35 = vpop.f32.mrb[29].mxu0  ;;  %v661_v38 = vpop.f32.mrb[29].mxu1 }
 0x148   :  { %v352_v7 = vpop.f32.mrb[30].mxu0  ;;  %v662_v41 = vpop.f32.mrb[30].mxu1 }
 0x149   :  { %v11612_v44 = vpack.c.bf16 %v352_v7, %v349_v2  ;;  %v11614_v12 = vpack.c.bf16 %v662_v41, %v659_v3  ;;  %v354_v14 = vpop.f32.mrb[31].mxu0  ;;  %v664_v15 = vpop.f32.mrb[31].mxu1 }
 0x14b   :  { %1612 = vmatmul.mubr.bf16.gmra.mrb[136].mxu0 %v10198_v5  ;;  %8525 = vmatmul.mubr.msk.bf16.gmra.mrb[124].mxu1 %vm1671_vm2, %v11614_v12 }
 0x14c   :  { %8508 = vmatprep.mubr.msk.bf16.mxu0 %vm222_vm0, %v10199_v11  ;;  %1827 = vmatprep.mubr.bf16.mxu1 %v13962_v0 }
 0x14e   :  { %v357_v18 = vpop.f32.mrb[32].mxu0  ;;  %v667_v19 = vpop.f32.mrb[32].mxu1 }
 0x14f   :  { %v359_v21 = vpop.f32.mrb[33].mxu0  ;;  %v669_v22 = vpop.f32.mrb[33].mxu1 }
 0x150   :  { %v360_v28 = vpop.f32.mrb[34].mxu0  ;;  %v670_v30 = vpop.f32.mrb[34].mxu1 }
 0x151   :  { %v11626_v31 = vpack.c.bf16 %v360_v28, %v357_v18  ;;  %v11628_v33 = vpack.c.bf16 %v670_v30, %v667_v19  ;;  %v362_v34 = vpop.f32.mrb[35].mxu0  ;;  %v672_v36 = vpop.f32.mrb[35].mxu1  ;;  %v10225_v18 = vld [vmem:[%s13950_s3 + $0x44] ss:$8 sps:$4 sm:$0xff]  }
 0x152   :  { %v10220_v34 = vld [vmem:[%s13949_s2 + $0x54] ss:$8 sps:$4 sm:$0x3f]   ;;  %v10222_v36 = vld [vmem:[%s13949_s2 + $0x50] ss:$8 sps:$4 sm:$0x3f]  }
 0x153   :  { %1620 = vmatmul.mubr.bf16.gmra.mrb[140].mxu0 %v10201_v27  ;;  %8526 = vmatmul.mubr.msk.bf16.gmra.mrb[128].mxu1 %vm1671_vm2, %v11628_v33 }
 0x154   :  { %1837 = vmatprep.mubr.bf16.mxu1 %v13962_v0  ;;  %2142 = vmatprep.mubr.bf16.mxu0 %v13962_v0 }
 0x156   :  { %v365_v37 = vpop.f32.mrb[36].mxu0  ;;  %v675_v39 = vpop.f32.mrb[36].mxu1 }
 0x157   :  { %v367_v40 = vpop.f32.mrb[37].mxu0  ;;  %v677_v45 = vpop.f32.mrb[37].mxu1 }
 0x158   :  { %v368_v46 = vpop.f32.mrb[38].mxu0  ;;  %v678_v47 = vpop.f32.mrb[38].mxu1 }
 0x159   :  { %v11634_v48 = vpack.c.bf16 %v368_v46, %v365_v37  ;;  %v11636_v49 = vpack.c.bf16 %v678_v47, %v675_v39  ;;  %v370_v50 = vpop.f32.mrb[39].mxu0  ;;  %v680_v51 = vpop.f32.mrb[39].mxu1  ;;  %v2500_v39 = vsel %vm1708_vm1, %v10222_v36, 0 }
 0x15b   :  { %8527 = vmatmul.mubr.msk.bf16.gmra.mrb[132].mxu1 %vm1671_vm2, %v11636_v49  ;;  %8556 = vmatmul.mubr.msk.bf16.vlgmr.msra.gmra.mrb[144].mxu0 %vm1671_vm2, %v11505_v55 }
 0x15c   :  { %1847 = vmatprep.mubr.bf16.mxu1 %v13962_v0  ;;  %2152 = vmatprep.mubr.bf16.mxu0 %v13962_v0 }
 0x15d   :  { %2288 = vmatpush1.bf16.msra.mxu0 %v10211_v52 }
 0x15e   :  { %v373_v57 = vpop.f32.mrb[40].mxu0  ;;  %v683_v58 = vpop.f32.mrb[40].mxu1  ;;  %8572 = vmatprep.subr.msk.bf16.mxu0 %vm1708_vm1, %v10214_v53 }
 0x15f   :  { %v375_v13 = vpop.f32.mrb[41].mxu0  ;;  %v685_v59 = vpop.f32.mrb[41].mxu1 }
 0x160   :  { %v376_v60 = vpop.f32.mrb[42].mxu0  ;;  %v686_v17 = vpop.f32.mrb[42].mxu1 }
 0x161   :  { %v11655_v61 = vpack.c.bf16 %v376_v60, %v373_v57  ;;  %v11657_v20 = vpack.c.bf16 %v686_v17, %v683_v58  ;;  %v378_v55 = vpop.f32.mrb[43].mxu0  ;;  %v688_v62 = vpop.f32.mrb[43].mxu1  ;;  %2290 = vmatpush1.bf16.msra.mxu0 %v2282_v9 }
 0x162   :  { %2735 = vmatprep.subr.bf16.mxu0 %v10225_v18 }
 0x163   :  { %8528 = vmatmul.mubr.msk.bf16.gmra.mrb[136].mxu1 %vm1671_vm2, %v11657_v20  ;;  %8557 = vmatmul.mubr.msk.bf16.gmra.mrb[148].mxu0 %vm1671_vm2, %v11530_v63 }
 0x164   :  { %1857 = vmatprep.mubr.bf16.mxu1 %v13962_v0  ;;  %2162 = vmatprep.mubr.bf16.mxu0 %v13962_v0 }
 0x166   :  { %v381_v29 = vpop.f32.mrb[44].mxu0  ;;  %v691_v32 = vpop.f32.mrb[44].mxu1 }
 0x167   :  { %v383_v2 = vpop.f32.mrb[45].mxu0  ;;  %v693_v3 = vpop.f32.mrb[45].mxu1 }
 0x168   :  { %v384_v35 = vpop.f32.mrb[46].mxu0  ;;  %v694_v38 = vpop.f32.mrb[46].mxu1 }
 0x169   :  { %v11665_v5 = vpack.c.bf16 %v384_v35, %v381_v29  ;;  %v11667_v7 = vpack.c.bf16 %v694_v38, %v691_v32  ;;  %v386_v41 = vpop.f32.mrb[47].mxu0  ;;  %v696_v11 = vpop.f32.mrb[47].mxu1 }
 0x16b   :  { %8529 = vmatmul.mubr.msk.bf16.gmra.mrb[140].mxu1 %vm1671_vm2, %v11667_v7  ;;  %8558 = vmatmul.mubr.msk.bf16.gmra.mrb[152].mxu0 %vm1671_vm2, %v11544_v10  ;;  %v10217_v10 = vld [vmem:[%s13949_s2 + $0x40] ss:$8 sps:$4 sm:$0xff]  }
 0x16c   :  { %1960 = vmatprep.mubr.bf16.mxu1 %v13962_v0  ;;  %2172 = vmatprep.mubr.bf16.mxu0 %v13962_v0 }
 0x16e   :  { %v913_v63 = vpop.f32.mrb[48].mxu0  ;;  %v1223_v14 = vpop.f32.mrb[48].mxu1 }
 0x16f   :  { %v915_v15 = vpop.f32.mrb[49].mxu0  ;;  %v1225_v16 = vpop.f32.mrb[49].mxu1 }
 0x170   :  { %v916_v19 = vpop.f32.mrb[50].mxu0  ;;  %v1226_v21 = vpop.f32.mrb[50].mxu1 }
 0x171   :  { %v11678_v22 = vpack.c.bf16 %v916_v19, %v913_v63  ;;  %v918_v27 = vpop.f32.mrb[51].mxu0  ;;  %v11683_v28 = vpack.c.bf16 %v1226_v21, %v1223_v14  ;;  %v1228_v30 = vpop.f32.mrb[51].mxu1 }
 0x173   :  { %8535 = vmatmul.mubr.msk.bf16.vlgmr.msra.gmra.mrb[96].mxu1 %vm1671_vm2, %v11503_v54  ;;  %8559 = vmatmul.mubr.msk.bf16.gmra.mrb[156].mxu0 %vm1671_vm2, %v11558_v25 }
 0x174   :  { %1970 = vmatprep.mubr.bf16.mxu1 %v13962_v0  ;;  %2182 = vmatprep.mubr.bf16.mxu0 %v13962_v0 }
 0x175   :  { %2506 = vmatpush1.bf16.msra.mxu1 %v10217_v10 }
 0x176   :  { %v921_v37 = vpop.f32.mrb[52].mxu0  ;;  %8593 = vmatprep.subr.msk.bf16.mxu1 %vm1708_vm1, %v10220_v34  ;;  %v1231_v40 = vpop.f32.mrb[52].mxu1 }
 0x177   :  { %v923_v45 = vpop.f32.mrb[53].mxu0  ;;  %v1233_v46 = vpop.f32.mrb[53].mxu1 }
 0x178   :  { %v924_v47 = vpop.f32.mrb[54].mxu0  ;;  %v1234_v50 = vpop.f32.mrb[54].mxu1 }
 0x179   :  { %v11699_v51 = vpack.c.bf16 %v924_v47, %v921_v37  ;;  %v926_v52 = vpop.f32.mrb[55].mxu0  ;;  %2508 = vmatpush1.bf16.msra.mxu1 %v2500_v39  ;;  %v11701_v25 = vpack.c.bf16 %v1234_v50, %v1231_v40  ;;  %v1236_v53 = vpop.f32.mrb[55].mxu1 }
 0x17b   :  { %8536 = vmatmul.mubr.msk.bf16.gmra.mrb[100].mxu1 %vm1671_vm2, %v11528_v26  ;;  %8560 = vmatmul.mubr.msk.bf16.gmra.mrb[160].mxu0 %vm1671_vm2, %v11572_v43 }
 0x17c   :  { %1980 = vmatprep.mubr.bf16.mxu1 %v13962_v0  ;;  %2192 = vmatprep.mubr.bf16.mxu0 %v13962_v0 }
 0x17e   :  { %v929_v4 = vpop.f32.mrb[56].mxu0  ;;  %v1239_v57 = vpop.f32.mrb[56].mxu1 }
 0x17f   :  { %v931_v58 = vpop.f32.mrb[57].mxu0  ;;  %v1241_v9 = vpop.f32.mrb[57].mxu1 }
 0x180   :  { %v932_v13 = vpop.f32.mrb[58].mxu0  ;;  %v1242_v59 = vpop.f32.mrb[58].mxu1 }
 0x181   :  { %v11709_v60 = vpack.c.bf16 %v932_v13, %v929_v4  ;;  %v934_v17 = vpop.f32.mrb[59].mxu0  ;;  %v11711_v55 = vpack.c.bf16 %v1242_v59, %v1239_v57  ;;  %v1244_v62 = vpop.f32.mrb[59].mxu1 }
 0x183   :  { %8537 = vmatmul.mubr.msk.bf16.gmra.mrb[104].mxu1 %vm1671_vm2, %v11542_v8  ;;  %8561 = vmatmul.mubr.msk.bf16.gmra.mrb[164].mxu0 %vm1671_vm2, %v11586_v6 }
 0x184   :  { %1990 = vmatprep.mubr.bf16.mxu1 %v13962_v0  ;;  %2202 = vmatprep.mubr.bf16.mxu0 %v13962_v0 }
 0x186   :  { %v937_v43 = vpop.f32.mrb[60].mxu0  ;;  %v1247_v29 = vpop.f32.mrb[60].mxu1 }
 0x187   :  { %v939_v32 = vpop.f32.mrb[61].mxu0  ;;  %v1249_v2 = vpop.f32.mrb[61].mxu1 }
 0x188   :  { %v940_v3 = vpop.f32.mrb[62].mxu0  ;;  %v1250_v35 = vpop.f32.mrb[62].mxu1 }
 0x189   :  { %v11719_v38 = vpack.c.bf16 %v940_v3, %v937_v43  ;;  %v942_v41 = vpop.f32.mrb[63].mxu0  ;;  %v11721_v11 = vpack.c.bf16 %v1250_v35, %v1247_v29  ;;  %v1252_v63 = vpop.f32.mrb[63].mxu1 }
 0x18b   :  { %8538 = vmatmul.mubr.msk.bf16.gmra.mrb[108].mxu1 %vm1671_vm2, %v11556_v24  ;;  %8562 = vmatmul.mubr.msk.bf16.gmra.mrb[168].mxu0 %vm1671_vm2, %v11600_v1 }
 0x18c   :  { %2000 = vmatprep.mubr.bf16.mxu1 %v13962_v0  ;;  %2212 = vmatprep.mubr.bf16.mxu0 %v13962_v0 }
 0x18e   :  { %v945_v6 = vpop.f32.mrb[64].mxu0  ;;  %v1255_v14 = vpop.f32.mrb[64].mxu1 }
 0x18f   :  { %v947_v15 = vpop.f32.mrb[65].mxu0  ;;  %v1257_v16 = vpop.f32.mrb[65].mxu1 }
 0x190   :  { %v948_v18 = vpop.f32.mrb[66].mxu0  ;;  %v1258_v19 = vpop.f32.mrb[66].mxu1 }
 0x191   :  { %v11729_v21 = vpack.c.bf16 %v948_v18, %v945_v6  ;;  %v950_v27 = vpop.f32.mrb[67].mxu0  ;;  %v11731_v10 = vpack.c.bf16 %v1258_v19, %v1255_v14  ;;  %v1260_v30 = vpop.f32.mrb[67].mxu1 }
 0x193   :  { %8539 = vmatmul.mubr.msk.bf16.gmra.mrb[112].mxu1 %vm1671_vm2, %v11570_v42  ;;  %8563 = vmatmul.mubr.msk.bf16.gmra.mrb[172].mxu0 %vm1671_vm2, %v11614_v12 }
 0x194   :  { %2010 = vmatprep.mubr.bf16.mxu1 %v13962_v0  ;;  %2222 = vmatprep.mubr.bf16.mxu0 %v13962_v0 }
 0x196   :  { %v953_v1 = vpop.f32.mrb[68].mxu0  ;;  %v1263_v34 = vpop.f32.mrb[68].mxu1 }
 0x197   :  { %v955_v36 = vpop.f32.mrb[69].mxu0  ;;  %v1265_v37 = vpop.f32.mrb[69].mxu1 }
 0x198   :  { %v956_v39 = vpop.f32.mrb[70].mxu0  ;;  %v1266_v40 = vpop.f32.mrb[70].mxu1 }
 0x199   :  { %v11739_v45 = vpack.c.bf16 %v956_v39, %v953_v1  ;;  %v958_v46 = vpop.f32.mrb[71].mxu0  ;;  %v11741_v47 = vpack.c.bf16 %v1266_v40, %v1263_v34  ;;  %v1268_v50 = vpop.f32.mrb[71].mxu1 }
 0x19b   :  { %8540 = vmatmul.mubr.msk.bf16.gmra.mrb[116].mxu1 %vm1671_vm2, %v11584_v56  ;;  %8564 = vmatmul.mubr.msk.bf16.gmra.mrb[176].mxu0 %vm1671_vm2, %v11628_v33 }
 0x19c   :  { %2020 = vmatprep.mubr.bf16.mxu1 %v13962_v0  ;;  %2232 = vmatprep.mubr.bf16.mxu0 %v13962_v0 }
 0x19e   :  { %v961_v12 = vpop.f32.mrb[72].mxu0  ;;  %v1271_v52 = vpop.f32.mrb[72].mxu1 }
 0x19f   :  { %v963_v53 = vpop.f32.mrb[73].mxu0  ;;  %v1273_v4 = vpop.f32.mrb[73].mxu1 }
 0x1a0   :  { %v964_v57 = vpop.f32.mrb[74].mxu0  ;;  %v1274_v58 = vpop.f32.mrb[74].mxu1  ;;  %v10226_v4 = vld [vmem:[%s13950_s3 + $0x54] ss:$8 sps:$4 sm:$0x3f]  }
 0x1a1   :  { %v11749_v9 = vpack.c.bf16 %v964_v57, %v961_v12  ;;  %v966_v13 = vpop.f32.mrb[75].mxu0  ;;  %v11751_v59 = vpack.c.bf16 %v1274_v58, %v1271_v52  ;;  %v1276_v17 = vpop.f32.mrb[75].mxu1  ;;  %v10223_v52 = vld [vmem:[%s13950_s3 + $0x40] ss:$8 sps:$4 sm:$0xff]  }
 0x1a2   :  { %v10228_v57 = vld [vmem:[%s13950_s3 + $0x50] ss:$8 sps:$4 sm:$0x3f]  }
 0x1a3   :  { %8541 = vmatmul.mubr.msk.bf16.gmra.mrb[120].mxu1 %vm1671_vm2, %v11598_v23  ;;  %8565 = vmatmul.mubr.msk.bf16.gmra.mrb[180].mxu0 %vm1671_vm2, %v11636_v49  ;;  %v10231_v49 = vld [vmem:[%s13949_s2 + $0x64] ss:$8 sps:$4 sm:$0xff]   ;;  %v2730_v13 = vsel %vm1708_vm1, %v10228_v57, 0 }
 0x1a4   :  { %2030 = vmatprep.mubr.bf16.mxu1 %v13962_v0  ;;  %2242 = vmatprep.mubr.bf16.mxu0 %v13962_v0 }
 0x1a5   :  { %3001 = vmatprep.subr.bf16.mxu1 %v10231_v49 }
 0x1a6   :  { %v969_v33 = vpop.f32.mrb[76].mxu0  ;;  %v1279_v62 = vpop.f32.mrb[76].mxu1 }
 0x1a7   :  { %v971_v43 = vpop.f32.mrb[77].mxu0  ;;  %v1281_v29 = vpop.f32.mrb[77].mxu1 }
 0x1a8   :  { %v972_v32 = vpop.f32.mrb[78].mxu0  ;;  %v1282_v2 = vpop.f32.mrb[78].mxu1 }
 0x1a9   :  { %v11759_v3 = vpack.c.bf16 %v972_v32, %v969_v33  ;;  %v974_v35 = vpop.f32.mrb[79].mxu0  ;;  %v11761_v41 = vpack.c.bf16 %v1282_v2, %v1279_v62  ;;  %v1284_v63 = vpop.f32.mrb[79].mxu1 }
 0x1ab   :  { %8542 = vmatmul.mubr.msk.bf16.gmra.mrb[124].mxu1 %vm1671_vm2, %v11612_v44  ;;  %8566 = vmatmul.mubr.msk.bf16.gmra.mrb[184].mxu0 %vm1671_vm2, %v11657_v20 }
 0x1ac   :  { %2040 = vmatprep.mubr.bf16.mxu1 %v13962_v0  ;;  %2252 = vmatprep.mubr.bf16.mxu0 %v13962_v0 }
 0x1ae   :  { %v977_v6 = vpop.f32.mrb[80].mxu0  ;;  %v1287_v14 = vpop.f32.mrb[80].mxu1 }
 0x1af   :  { %v979_v15 = vpop.f32.mrb[81].mxu0  ;;  %v1289_v16 = vpop.f32.mrb[81].mxu1 }
 0x1b0   :  { %v980_v18 = vpop.f32.mrb[82].mxu0  ;;  %v1290_v19 = vpop.f32.mrb[82].mxu1 }
 0x1b1   :  { %v11772_v27 = vpack.c.bf16 %v980_v18, %v977_v6  ;;  %v982_v30 = vpop.f32.mrb[83].mxu0  ;;  %v11774_v1 = vpack.c.bf16 %v1290_v19, %v1287_v14  ;;  %v1292_v34 = vpop.f32.mrb[83].mxu1 }
 0x1b3   :  { %8543 = vmatmul.mubr.msk.bf16.gmra.mrb[128].mxu1 %vm1671_vm2, %v11626_v31  ;;  %8567 = vmatmul.mubr.msk.bf16.gmra.mrb[188].mxu0 %vm1671_vm2, %v11667_v7 }
 0x1b4   :  { %2050 = vmatprep.mubr.bf16.mxu1 %v13962_v0  ;;  %2319 = vmatprep.mubr.bf16.mxu0 %v13962_v0 }
 0x1b6   :  { %v985_v20 = vpop.f32.mrb[84].mxu0  ;;  %v1295_v36 = vpop.f32.mrb[84].mxu1 }
 0x1b7   :  { %v987_v37 = vpop.f32.mrb[85].mxu0  ;;  %v1297_v39 = vpop.f32.mrb[85].mxu1 }
 0x1b8   :  { %v988_v40 = vpop.f32.mrb[86].mxu0  ;;  %v1298_v46 = vpop.f32.mrb[86].mxu1 }
 0x1b9   :  { %v11782_v50 = vpack.c.bf16 %v988_v40, %v985_v20  ;;  %v990_v12 = vpop.f32.mrb[87].mxu0  ;;  %v11787_v53 = vpack.c.bf16 %v1298_v46, %v1295_v36  ;;  %v1300_v7 = vpop.f32.mrb[87].mxu1  ;;  %v10229_v46 = vld [vmem:[%s13949_s2 + $0x60] ss:$8 sps:$4 sm:$0xff]  }
 0x1ba   :  { %v10234_v12 = vld [vmem:[%s13949_s2 + $0x70] ss:$8 sps:$4 sm:$0x3f]  }
 0x1bb   :  { %8544 = vmatmul.mubr.msk.bf16.gmra.mrb[132].mxu1 %vm1671_vm2, %v11634_v48  ;;  %8573 = vmatmul.mubr.msk.bf16.vlgmr.msra.gmra.mrb[144].mxu0 %vm1671_vm2, %v11503_v54  ;;  %v2996_v7 = vsel %vm1708_vm1, %v10234_v12, 0 }
 0x1bc   :  { %2060 = vmatprep.mubr.bf16.mxu1 %v13962_v0  ;;  %2329 = vmatprep.mubr.bf16.mxu0 %v13962_v0 }
 0x1bd   :  { %2736 = vmatpush1.bf16.msra.mxu0 %v10223_v52 }
 0x1be   :  { %v993_v58 = vpop.f32.mrb[88].mxu0  ;;  %8614 = vmatprep.subr.msk.bf16.mxu0 %vm1708_vm1, %v10226_v4  ;;  %v1303_v17 = vpop.f32.mrb[88].mxu1 }
 0x1bf   :  { %v995_v33 = vpop.f32.mrb[89].mxu0  ;;  %v1305_v62 = vpop.f32.mrb[89].mxu1 }
 0x1c0   :  { %v996_v43 = vpop.f32.mrb[90].mxu0  ;;  %v1306_v29 = vpop.f32.mrb[90].mxu1 }
 0x1c1   :  { %v11803_v32 = vpack.c.bf16 %v996_v43, %v993_v58  ;;  %v998_v2 = vpop.f32.mrb[91].mxu0  ;;  %2738 = vmatpush1.bf16.msra.mxu0 %v2730_v13  ;;  %v11805_v54 = vpack.c.bf16 %v1306_v29, %v1303_v17  ;;  %v1308_v35 = vpop.f32.mrb[91].mxu1 }
 0x1c3   :  { %8545 = vmatmul.mubr.msk.bf16.gmra.mrb[136].mxu1 %vm1671_vm2, %v11655_v61  ;;  %8574 = vmatmul.mubr.msk.bf16.gmra.mrb[148].mxu0 %vm1671_vm2, %v11528_v26  ;;  %v10237_v26 = vld [vmem:[%s13950_s3 + $0x64] ss:$8 sps:$4 sm:$0xff]  }
 0x1c4   :  { %2070 = vmatprep.mubr.bf16.mxu1 %v13962_v0  ;;  %2339 = vmatprep.mubr.bf16.mxu0 %v13962_v0 }
 0x1c5   :  { %3231 = vmatprep.subr.bf16.mxu0 %v10237_v26 }
 0x1c6   :  { %v1001_v63 = vpop.f32.mrb[92].mxu0  ;;  %v1311_v49 = vpop.f32.mrb[92].mxu1 }
 0x1c7   :  { %v1003_v6 = vpop.f32.mrb[93].mxu0  ;;  %v1313_v14 = vpop.f32.mrb[93].mxu1 }
 0x1c8   :  { %v1004_v15 = vpop.f32.mrb[94].mxu0  ;;  %v1314_v16 = vpop.f32.mrb[94].mxu1 }
 0x1c9   :  { %v11813_v18 = vpack.c.bf16 %v1004_v15, %v1001_v63  ;;  %v1006_v19 = vpop.f32.mrb[95].mxu0  ;;  %v11815_v30 = vpack.c.bf16 %v1314_v16, %v1311_v49  ;;  %v1316_v34 = vpop.f32.mrb[95].mxu1 }
 0x1cb   :  { %8546 = vmatmul.mubr.msk.bf16.gmra.mrb[140].mxu1 %vm1671_vm2, %v11665_v5  ;;  %8575 = vmatmul.mubr.msk.bf16.gmra.mrb[152].mxu0 %vm1671_vm2, %v11542_v8  ;;  %v10232_v8 = vld [vmem:[%s13949_s2 + $0x74] ss:$8 sps:$4 sm:$0x3f]  }
 0x1cc   :  { %2349 = vmatprep.mubr.bf16.mxu0 %v13962_v0  ;;  %2537 = vmatprep.mubr.bf16.mxu1 %v13962_v0 }
 0x1ce   :  { %v1533_v20 = vpop.f32.mrb[96].mxu0 }
 0x1cf   :  { %v1535_v36 = vpop.f32.mrb[97].mxu0 }
 0x1d0   :  { %v1536_v37 = vpop.f32.mrb[98].mxu0 }
 0x1d1   :  { %v11826_v39 = vpack.c.bf16 %v1536_v37, %v1533_v20  ;;  %v1538_v40 = vpop.f32.mrb[99].mxu0 }
 0x1d3   :  { %8576 = vmatmul.mubr.msk.bf16.gmra.mrb[156].mxu0 %vm1671_vm2, %v11556_v24  ;;  %8594 = vmatmul.mubr.msk.bf16.vlgmr.msra.gmra.mrb[96].mxu1 %vm1671_vm2, %v11678_v22 }
 0x1d4   :  { %2359 = vmatprep.mubr.bf16.mxu0 %v13962_v0  ;;  %2547 = vmatprep.mubr.bf16.mxu1 %v13962_v0 }
 0x1d5   :  { %3002 = vmatpush1.bf16.msra.mxu1 %v10229_v46 }
 0x1d6   :  { %v1541_v52 = vpop.f32.mrb[100].mxu0  ;;  %8635 = vmatprep.subr.msk.bf16.mxu1 %vm1708_vm1, %v10232_v8 }
 0x1d7   :  { %v1543_v4 = vpop.f32.mrb[101].mxu0 }
 0x1d8   :  { %v1544_v57 = vpop.f32.mrb[102].mxu0 }
 0x1d9   :  { %v11845_v58 = vpack.c.bf16 %v1544_v57, %v1541_v52  ;;  %v1546_v13 = vpop.f32.mrb[103].mxu0  ;;  %3004 = vmatpush1.bf16.msra.mxu1 %v2996_v7  ;;  %v10243_v7 = vld [vmem:[%s13949_s2 + $0x84] ss:$8 sps:$4 sm:$0xff]  }
 0x1da   :  { %3497 = vmatprep.subr.bf16.mxu1 %v10243_v7 }
 0x1db   :  { %8577 = vmatmul.mubr.msk.bf16.gmra.mrb[160].mxu0 %vm1671_vm2, %v11570_v42  ;;  %8595 = vmatmul.mubr.msk.bf16.gmra.mrb[100].mxu1 %vm1671_vm2, %v11699_v51 }
 0x1dc   :  { %2369 = vmatprep.mubr.bf16.mxu0 %v13962_v0  ;;  %2557 = vmatprep.mubr.bf16.mxu1 %v13962_v0 }
 0x1de   :  { %v1549_v24 = vpop.f32.mrb[104].mxu0 }
 0x1df   :  { %v1551_v17 = vpop.f32.mrb[105].mxu0 }
 0x1e0   :  { %v1552_v33 = vpop.f32.mrb[106].mxu0 }
 0x1e1   :  { %v11853_v62 = vpack.c.bf16 %v1552_v33, %v1549_v24  ;;  %v1554_v43 = vpop.f32.mrb[107].mxu0 }
 0x1e3   :  { %8578 = vmatmul.mubr.msk.bf16.gmra.mrb[164].mxu0 %vm1671_vm2, %v11584_v56  ;;  %8596 = vmatmul.mubr.msk.bf16.gmra.mrb[104].mxu1 %vm1671_vm2, %v11709_v60 }
 0x1e4   :  { %2379 = vmatprep.mubr.bf16.mxu0 %v13962_v0  ;;  %2567 = vmatprep.mubr.bf16.mxu1 %v13962_v0 }
 0x1e6   :  { %v1557_v42 = vpop.f32.mrb[108].mxu0 }
 0x1e7   :  { %v1559_v29 = vpop.f32.mrb[109].mxu0 }
 0x1e8   :  { %v1560_v2 = vpop.f32.mrb[110].mxu0  ;;  %v10235_v29 = vld [vmem:[%s13950_s3 + $0x60] ss:$8 sps:$4 sm:$0xff]  }
 0x1e9   :  { %v11861_v35 = vpack.c.bf16 %v1560_v2, %v1557_v42  ;;  %v1562_v63 = vpop.f32.mrb[111].mxu0  ;;  %v10240_v2 = vld [vmem:[%s13950_s3 + $0x70] ss:$8 sps:$4 sm:$0x3f]  }
 0x1eb   :  { %8579 = vmatmul.mubr.msk.bf16.gmra.mrb[168].mxu0 %vm1671_vm2, %v11598_v23  ;;  %8597 = vmatmul.mubr.msk.bf16.gmra.mrb[108].mxu1 %vm1671_vm2, %v11719_v38 }
 0x1ec   :  { %2389 = vmatprep.mubr.bf16.mxu0 %v13962_v0  ;;  %2577 = vmatprep.mubr.bf16.mxu1 %v13962_v0 }
 0x1ee   :  { %v1565_v56 = vpop.f32.mrb[112].mxu0 }
 0x1ef   :  { %v1567_v49 = vpop.f32.mrb[113].mxu0 }
 0x1f0   :  { %v1568_v6 = vpop.f32.mrb[114].mxu0 }
 0x1f1   :  { %v11869_v14 = vpack.c.bf16 %v1568_v6, %v1565_v56  ;;  %v1570_v15 = vpop.f32.mrb[115].mxu0  ;;  %v3226_v56 = vsel %vm1708_vm1, %v10240_v2, 0 }
 0x1f3   :  { %8580 = vmatmul.mubr.msk.bf16.gmra.mrb[172].mxu0 %vm1671_vm2, %v11612_v44  ;;  %8598 = vmatmul.mubr.msk.bf16.gmra.mrb[112].mxu1 %vm1671_vm2, %v11729_v21 }
 0x1f4   :  { %2399 = vmatprep.mubr.bf16.mxu0 %v13962_v0  ;;  %2587 = vmatprep.mubr.bf16.mxu1 %v13962_v0 }
 0x1f6   :  { %v1573_v23 = vpop.f32.mrb[116].mxu0 }
 0x1f7   :  { %v1575_v16 = vpop.f32.mrb[117].mxu0 }
 0x1f8   :  { %v1576_v19 = vpop.f32.mrb[118].mxu0 }
 0x1f9   :  { %v11877_v34 = vpack.c.bf16 %v1576_v19, %v1573_v23  ;;  %v1578_v26 = vpop.f32.mrb[119].mxu0 }
 0x1fb   :  { %8581 = vmatmul.mubr.msk.bf16.gmra.mrb[176].mxu0 %vm1671_vm2, %v11626_v31  ;;  %8599 = vmatmul.mubr.msk.bf16.gmra.mrb[116].mxu1 %vm1671_vm2, %v11739_v45 }
 0x1fc   :  { %2409 = vmatprep.mubr.bf16.mxu0 %v13962_v0  ;;  %2597 = vmatprep.mubr.bf16.mxu1 %v13962_v0 }
 0x1fe   :  { %v1581_v44 = vpop.f32.mrb[120].mxu0 }
 0x1ff   :  { %v1583_v20 = vpop.f32.mrb[121].mxu0 }
 0x200   :  { %v1584_v36 = vpop.f32.mrb[122].mxu0  ;;  %v10241_v20 = vld [vmem:[%s13949_s2 + $0x80] ss:$8 sps:$4 sm:$0xff]  }
 0x201   :  { %v11885_v37 = vpack.c.bf16 %v1584_v36, %v1581_v44  ;;  %v1586_v40 = vpop.f32.mrb[123].mxu0  ;;  %v10244_v36 = vld [vmem:[%s13949_s2 + $0x94] ss:$8 sps:$4 sm:$0x3f]  }
 0x203   :  { %8582 = vmatmul.mubr.msk.bf16.gmra.mrb[180].mxu0 %vm1671_vm2, %v11634_v48  ;;  %8600 = vmatmul.mubr.msk.bf16.gmra.mrb[120].mxu1 %vm1671_vm2, %v11749_v9 }
 0x204   :  { %2419 = vmatprep.mubr.bf16.mxu0 %v13962_v0  ;;  %2607 = vmatprep.mubr.bf16.mxu1 %v13962_v0 }
 0x206   :  { %v1589_v31 = vpop.f32.mrb[124].mxu0 }
 0x207   :  { %v1591_v46 = vpop.f32.mrb[125].mxu0 }
 0x208   :  { %v1592_v8 = vpop.f32.mrb[126].mxu0 }
 0x209   :  { %v11893_v12 = vpack.c.bf16 %v1592_v8, %v1589_v31  ;;  %v1594_v52 = vpop.f32.mrb[127].mxu0 }
 0x20b   :  { %8583 = vmatmul.mubr.msk.bf16.gmra.mrb[184].mxu0 %vm1671_vm2, %v11655_v61  ;;  %8601 = vmatmul.mubr.msk.bf16.gmra.mrb[124].mxu1 %vm1671_vm2, %v11759_v3 }
 0x20c   :  { %2429 = vmatprep.mubr.bf16.mxu0 %v13962_v0  ;;  %2617 = vmatprep.mubr.bf16.mxu1 %v13962_v0 }
 0x20e   :  { %v1597_v48 = vpop.f32.mrb[128].mxu0 }
 0x20f   :  { %v1599_v4 = vpop.f32.mrb[129].mxu0 }
 0x210   :  { %v1600_v57 = vpop.f32.mrb[130].mxu0 }
 0x211   :  { %v11904_v13 = vpack.c.bf16 %v1600_v57, %v1597_v48  ;;  %v1602_v24 = vpop.f32.mrb[131].mxu0 }
 0x213   :  { %8584 = vmatmul.mubr.msk.bf16.gmra.mrb[188].mxu0 %vm1671_vm2, %v11665_v5  ;;  %8602 = vmatmul.mubr.msk.bf16.gmra.mrb[128].mxu1 %vm1671_vm2, %v11772_v27  ;;  %v10238_v5 = vld [vmem:[%s13950_s3 + $0x74] ss:$8 sps:$4 sm:$0x3f]  }
 0x214   :  { %2627 = vmatprep.mubr.bf16.mxu1 %v13962_v0  ;;  %2767 = vmatprep.mubr.bf16.mxu0 %v13962_v0 }
 0x216   :  { %v1605_v61 = vpop.f32.mrb[132].mxu0 }
 0x217   :  { %v1607_v17 = vpop.f32.mrb[133].mxu0 }
 0x218   :  { %v1608_v33 = vpop.f32.mrb[134].mxu0 }
 0x219   :  { %v11912_v43 = vpack.c.bf16 %v1608_v33, %v1605_v61  ;;  %v1610_v42 = vpop.f32.mrb[135].mxu0 }
 0x21b   :  { %8603 = vmatmul.mubr.msk.bf16.gmra.mrb[132].mxu1 %vm1671_vm2, %v11782_v50  ;;  %8615 = vmatmul.mubr.msk.bf16.vlgmr.msra.gmra.mrb[144].mxu0 %vm1671_vm2, %v11678_v22 }
 0x21c   :  { %2637 = vmatprep.mubr.bf16.mxu1 %v13962_v0  ;;  %2777 = vmatprep.mubr.bf16.mxu0 %v13962_v0 }
 0x21d   :  { %3232 = vmatpush1.bf16.msra.mxu0 %v10235_v29 }
 0x21e   :  { %v1613_v63 = vpop.f32.mrb[136].mxu0  ;;  %8656 = vmatprep.subr.msk.bf16.mxu0 %vm1708_vm1, %v10238_v5 }
 0x21f   :  { %v1615_v49 = vpop.f32.mrb[137].mxu0 }
 0x220   :  { %v1616_v6 = vpop.f32.mrb[138].mxu0 }
 0x221   :  { %v11931_v15 = vpack.c.bf16 %v1616_v6, %v1613_v63  ;;  %v1618_v23 = vpop.f32.mrb[139].mxu0  ;;  %3234 = vmatpush1.bf16.msra.mxu0 %v3226_v56 }
 0x223   :  { %8604 = vmatmul.mubr.msk.bf16.gmra.mrb[136].mxu1 %vm1671_vm2, %v11803_v32  ;;  %8616 = vmatmul.mubr.msk.bf16.gmra.mrb[148].mxu0 %vm1671_vm2, %v11699_v51  ;;  %v10249_v51 = vld [vmem:[%s13950_s3 + $0x84] ss:$8 sps:$4 sm:$0xff]  }
 0x224   :  { %2647 = vmatprep.mubr.bf16.mxu1 %v13962_v0  ;;  %2787 = vmatprep.mubr.bf16.mxu0 %v13962_v0 }
 0x225   :  { %3727 = vmatprep.subr.bf16.mxu0 %v10249_v51 }
 0x226   :  { %v1621_v22 = vpop.f32.mrb[140].mxu0 }
 0x227   :  { %v1623_v16 = vpop.f32.mrb[141].mxu0 }
 0x228   :  { %v1624_v19 = vpop.f32.mrb[142].mxu0 }
 0x229   :  { %v11939_v26 = vpack.c.bf16 %v1624_v19, %v1621_v22  ;;  %v1626_v44 = vpop.f32.mrb[143].mxu0 }
 0x22b   :  { %8605 = vmatmul.mubr.msk.bf16.gmra.mrb[140].mxu1 %vm1671_vm2, %v11813_v18  ;;  %8617 = vmatmul.mubr.msk.bf16.gmra.mrb[152].mxu0 %vm1671_vm2, %v11709_v60  ;;  %v10246_v60 = vld [vmem:[%s13949_s2 + $0x90] ss:$8 sps:$4 sm:$0x3f]  }
 0x22c   :  { %2797 = vmatprep.mubr.bf16.mxu0 %v13962_v0  ;;  %3033 = vmatprep.mubr.bf16.mxu1 %v13962_v0  ;;  %v3492_v40 = vsel %vm1708_vm1, %v10246_v60, 0 }
 0x233   :  { %8618 = vmatmul.mubr.msk.bf16.gmra.mrb[156].mxu0 %vm1671_vm2, %v11719_v38  ;;  %8636 = vmatmul.mubr.msk.bf16.vlgmr.msra.gmra.mrb[96].mxu1 %vm1671_vm2, %v11683_v28  ;;  %v10247_v38 = vld [vmem:[%s13950_s3 + $0x80] ss:$8 sps:$4 sm:$0xff]  }
 0x234   :  { %2807 = vmatprep.mubr.bf16.mxu0 %v13962_v0  ;;  %3043 = vmatprep.mubr.bf16.mxu1 %v13962_v0 }
 0x235   :  { %3498 = vmatpush1.bf16.msra.mxu1 %v10241_v20 }
 0x236   :  { %8677 = vmatprep.subr.msk.bf16.mxu1 %vm1708_vm1, %v10244_v36 }
 0x239   :  { %3500 = vmatpush1.bf16.msra.mxu1 %v3492_v40 }
 0x23b   :  { %8619 = vmatmul.mubr.msk.bf16.gmra.mrb[160].mxu0 %vm1671_vm2, %v11729_v21  ;;  %8637 = vmatmul.mubr.msk.bf16.gmra.mrb[100].mxu1 %vm1671_vm2, %v11701_v25  ;;  %v10250_v21 = vld [vmem:[%s13950_s3 + $0x94] ss:$8 sps:$4 sm:$0x3f]  }
 0x23c   :  { %2817 = vmatprep.mubr.bf16.mxu0 %v13962_v0  ;;  %3053 = vmatprep.mubr.bf16.mxu1 %v13962_v0 }
 0x243   :  { %8620 = vmatmul.mubr.msk.bf16.gmra.mrb[164].mxu0 %vm1671_vm2, %v11739_v45  ;;  %8638 = vmatmul.mubr.msk.bf16.gmra.mrb[104].mxu1 %vm1671_vm2, %v11711_v55  ;;  %v10252_v45 = vld [vmem:[%s13950_s3 + $0x90] ss:$8 sps:$4 sm:$0x3f]  }
 0x244   :  { %2827 = vmatprep.mubr.bf16.mxu0 %v13962_v0  ;;  %3063 = vmatprep.mubr.bf16.mxu1 %v13962_v0 }
 0x24b   :  { %8621 = vmatmul.mubr.msk.bf16.gmra.mrb[168].mxu0 %vm1671_vm2, %v11749_v9  ;;  %8639 = vmatmul.mubr.msk.bf16.gmra.mrb[108].mxu1 %vm1671_vm2, %v11721_v11  ;;  %v3722_v9 = vsel %vm1708_vm1, %v10252_v45, 0 }
 0x24c   :  { %2837 = vmatprep.mubr.bf16.mxu0 %v13962_v0  ;;  %3073 = vmatprep.mubr.bf16.mxu1 %v13962_v0 }
 0x253   :  { %8622 = vmatmul.mubr.msk.bf16.gmra.mrb[172].mxu0 %vm1671_vm2, %v11759_v3  ;;  %8640 = vmatmul.mubr.msk.bf16.gmra.mrb[112].mxu1 %vm1671_vm2, %v11731_v10 }
 0x254   :  { %2847 = vmatprep.mubr.bf16.mxu0 %v13962_v0  ;;  %3083 = vmatprep.mubr.bf16.mxu1 %v13962_v0 }
 0x25b   :  { %8623 = vmatmul.mubr.msk.bf16.gmra.mrb[176].mxu0 %vm1671_vm2, %v11772_v27  ;;  %8641 = vmatmul.mubr.msk.bf16.gmra.mrb[116].mxu1 %vm1671_vm2, %v11741_v47 }
 0x25c   :  { %2857 = vmatprep.mubr.bf16.mxu0 %v13962_v0  ;;  %3093 = vmatprep.mubr.bf16.mxu1 %v13962_v0 }
 0x263   :  { %8624 = vmatmul.mubr.msk.bf16.gmra.mrb[180].mxu0 %vm1671_vm2, %v11782_v50  ;;  %8642 = vmatmul.mubr.msk.bf16.gmra.mrb[120].mxu1 %vm1671_vm2, %v11751_v59 }
 0x264   :  { %2867 = vmatprep.mubr.bf16.mxu0 %v13962_v0  ;;  %3103 = vmatprep.mubr.bf16.mxu1 %v13962_v0 }
 0x26b   :  { %8625 = vmatmul.mubr.msk.bf16.gmra.mrb[184].mxu0 %vm1671_vm2, %v11803_v32  ;;  %8643 = vmatmul.mubr.msk.bf16.gmra.mrb[124].mxu1 %vm1671_vm2, %v11761_v41 }
 0x26c   :  { %2877 = vmatprep.mubr.bf16.mxu0 %v13962_v0  ;;  %3113 = vmatprep.mubr.bf16.mxu1 %v13962_v0 }
 0x273   :  { %8626 = vmatmul.mubr.msk.bf16.gmra.mrb[188].mxu0 %vm1671_vm2, %v11813_v18  ;;  %8644 = vmatmul.mubr.msk.bf16.gmra.mrb[128].mxu1 %vm1671_vm2, %v11774_v1 }
 0x274   :  { %3123 = vmatprep.mubr.bf16.mxu1 %v13962_v0  ;;  %3263 = vmatprep.mubr.bf16.mxu0 %v13962_v0 }
 0x27b   :  { %8645 = vmatmul.mubr.msk.bf16.gmra.mrb[132].mxu1 %vm1671_vm2, %v11787_v53  ;;  %8657 = vmatmul.mubr.msk.bf16.vlgmr.msra.gmra.mrb[144].mxu0 %vm1671_vm2, %v11683_v28 }
 0x27c   :  { %3133 = vmatprep.mubr.bf16.mxu1 %v13962_v0  ;;  %3273 = vmatprep.mubr.bf16.mxu0 %v13962_v0 }
 0x27d   :  { %3728 = vmatpush1.bf16.msra.mxu0 %v10247_v38 }
 0x27e   :  { %8698 = vmatprep.subr.msk.bf16.mxu0 %vm1708_vm1, %v10250_v21 }
 0x281   :  { %3730 = vmatpush1.bf16.msra.mxu0 %v3722_v9 }
 0x283   :  { %8646 = vmatmul.mubr.msk.bf16.gmra.mrb[136].mxu1 %vm1671_vm2, %v11805_v54  ;;  %8658 = vmatmul.mubr.msk.bf16.gmra.mrb[148].mxu0 %vm1671_vm2, %v11701_v25 }
 0x284   :  { %3143 = vmatprep.mubr.bf16.mxu1 %v13962_v0  ;;  %3283 = vmatprep.mubr.bf16.mxu0 %v13962_v0 }
 0x28b   :  { %8647 = vmatmul.mubr.msk.bf16.gmra.mrb[140].mxu1 %vm1671_vm2, %v11815_v30  ;;  %8659 = vmatmul.mubr.msk.bf16.gmra.mrb[152].mxu0 %vm1671_vm2, %v11711_v55 }
 0x28c   :  { %3293 = vmatprep.mubr.bf16.mxu0 %v13962_v0  ;;  %3529 = vmatprep.mubr.bf16.mxu1 %v13962_v0 }
 0x293   :  { %8660 = vmatmul.mubr.msk.bf16.gmra.mrb[156].mxu0 %vm1671_vm2, %v11721_v11  ;;  %8678 = vmatmul.mubr.msk.bf16.vlgmr.msra.gmra.mrb[96].mxu1 %vm1671_vm2, %v11826_v39 }
 0x294   :  { %3303 = vmatprep.mubr.bf16.mxu0 %v13962_v0  ;;  %3539 = vmatprep.mubr.bf16.mxu1 %v13962_v0 }
 0x29b   :  { %8661 = vmatmul.mubr.msk.bf16.gmra.mrb[160].mxu0 %vm1671_vm2, %v11731_v10  ;;  %8679 = vmatmul.mubr.msk.bf16.gmra.mrb[100].mxu1 %vm1671_vm2, %v11845_v58 }
 0x29c   :  { %3313 = vmatprep.mubr.bf16.mxu0 %v13962_v0  ;;  %3549 = vmatprep.mubr.bf16.mxu1 %v13962_v0 }
 0x2a3   :  { %8662 = vmatmul.mubr.msk.bf16.gmra.mrb[164].mxu0 %vm1671_vm2, %v11741_v47  ;;  %8680 = vmatmul.mubr.msk.bf16.gmra.mrb[104].mxu1 %vm1671_vm2, %v11853_v62 }
 0x2a4   :  { %3323 = vmatprep.mubr.bf16.mxu0 %v13962_v0  ;;  %3559 = vmatprep.mubr.bf16.mxu1 %v13962_v0 }
 0x2ab   :  { %8663 = vmatmul.mubr.msk.bf16.gmra.mrb[168].mxu0 %vm1671_vm2, %v11751_v59  ;;  %8681 = vmatmul.mubr.msk.bf16.gmra.mrb[108].mxu1 %vm1671_vm2, %v11861_v35 }
 0x2ac   :  { %3333 = vmatprep.mubr.bf16.mxu0 %v13962_v0  ;;  %3569 = vmatprep.mubr.bf16.mxu1 %v13962_v0 }
 0x2b3   :  { %8664 = vmatmul.mubr.msk.bf16.gmra.mrb[172].mxu0 %vm1671_vm2, %v11761_v41  ;;  %8682 = vmatmul.mubr.msk.bf16.gmra.mrb[112].mxu1 %vm1671_vm2, %v11869_v14 }
 0x2b4   :  { %3343 = vmatprep.mubr.bf16.mxu0 %v13962_v0  ;;  %3579 = vmatprep.mubr.bf16.mxu1 %v13962_v0 }
 0x2bb   :  { %8665 = vmatmul.mubr.msk.bf16.gmra.mrb[176].mxu0 %vm1671_vm2, %v11774_v1  ;;  %8683 = vmatmul.mubr.msk.bf16.gmra.mrb[116].mxu1 %vm1671_vm2, %v11877_v34 }
 0x2bc   :  { %3353 = vmatprep.mubr.bf16.mxu0 %v13962_v0  ;;  %3589 = vmatprep.mubr.bf16.mxu1 %v13962_v0 }
 0x2c3   :  { %8666 = vmatmul.mubr.msk.bf16.gmra.mrb[180].mxu0 %vm1671_vm2, %v11787_v53  ;;  %8684 = vmatmul.mubr.msk.bf16.gmra.mrb[120].mxu1 %vm1671_vm2, %v11885_v37 }
 0x2c4   :  { %3363 = vmatprep.mubr.bf16.mxu0 %v13962_v0  ;;  %3599 = vmatprep.mubr.bf16.mxu1 %v13962_v0 }
 0x2cb   :  { %8667 = vmatmul.mubr.msk.bf16.gmra.mrb[184].mxu0 %vm1671_vm2, %v11805_v54  ;;  %8685 = vmatmul.mubr.msk.bf16.gmra.mrb[124].mxu1 %vm1671_vm2, %v11893_v12 }
 0x2cc   :  { %3373 = vmatprep.mubr.bf16.mxu0 %v13962_v0  ;;  %3609 = vmatprep.mubr.bf16.mxu1 %v13962_v0 }
 0x2d3   :  { %8668 = vmatmul.mubr.msk.bf16.gmra.mrb[188].mxu0 %vm1671_vm2, %v11815_v30  ;;  %8686 = vmatmul.mubr.msk.bf16.gmra.mrb[128].mxu1 %vm1671_vm2, %v11904_v13 }
 0x2d4   :  { %3619 = vmatprep.mubr.bf16.mxu1 %v13962_v0  ;;  %3759 = vmatprep.mubr.bf16.mxu0 %v13962_v0 }
 0x2db   :  { %8687 = vmatmul.mubr.msk.bf16.gmra.mrb[132].mxu1 %vm1671_vm2, %v11912_v43  ;;  %8699 = vmatmul.mubr.msk.bf16.vlgmr.msra.gmra.mrb[144].mxu0 %vm1671_vm2, %v11826_v39 }
 0x2dc   :  { %3629 = vmatprep.mubr.bf16.mxu1 %v13962_v0  ;;  %3769 = vmatprep.mubr.bf16.mxu0 %v13962_v0 }
 0x2e3   :  { %8688 = vmatmul.mubr.msk.bf16.gmra.mrb[136].mxu1 %vm1671_vm2, %v11931_v15  ;;  %8700 = vmatmul.mubr.msk.bf16.gmra.mrb[148].mxu0 %vm1671_vm2, %v11845_v58 }
 0x2e4   :  { %3639 = vmatprep.mubr.bf16.mxu1 %v13962_v0  ;;  %3779 = vmatprep.mubr.bf16.mxu0 %v13962_v0 }
 0x2eb   :  { %8689 = vmatmul.mubr.msk.bf16.gmra.mrb[140].mxu1 %vm1671_vm2, %v11939_v26  ;;  %8701 = vmatmul.mubr.msk.bf16.gmra.mrb[152].mxu0 %vm1671_vm2, %v11853_v62 }
 0x2ec   :  { %3789 = vmatprep.mubr.bf16.mxu0 %v13962_v0  ;;  %4144 = vmatprep.mubr.bf16.mxu1 %v13962_v0 }
 0x2f3   :  { %8702 = vmatmul.mubr.msk.bf16.gmra.mrb[156].mxu0 %vm1671_vm2, %v11861_v35 }
 0x2f4   :  { %3799 = vmatprep.mubr.bf16.mxu0 %v13962_v0 }
 0x2fb   :  { %8703 = vmatmul.mubr.msk.bf16.gmra.mrb[160].mxu0 %vm1671_vm2, %v11869_v14 }
 0x2fc   :  { %3809 = vmatprep.mubr.bf16.mxu0 %v13962_v0 }
 0x303   :  { %8704 = vmatmul.mubr.msk.bf16.gmra.mrb[164].mxu0 %vm1671_vm2, %v11877_v34 }
 0x304   :  { %3819 = vmatprep.mubr.bf16.mxu0 %v13962_v0 }
 0x30b   :  { %8705 = vmatmul.mubr.msk.bf16.gmra.mrb[168].mxu0 %vm1671_vm2, %v11885_v37 }
 0x30c   :  { %3829 = vmatprep.mubr.bf16.mxu0 %v13962_v0 }
 0x313   :  { %8706 = vmatmul.mubr.msk.bf16.gmra.mrb[172].mxu0 %vm1671_vm2, %v11893_v12 }
 0x314   :  { %3839 = vmatprep.mubr.bf16.mxu0 %v13962_v0 }
 0x31b   :  { %8707 = vmatmul.mubr.msk.bf16.gmra.mrb[176].mxu0 %vm1671_vm2, %v11904_v13 }
 0x31c   :  { %3849 = vmatprep.mubr.bf16.mxu0 %v13962_v0 }
 0x323   :  { %8708 = vmatmul.mubr.msk.bf16.gmra.mrb[180].mxu0 %vm1671_vm2, %v11912_v43 }
 0x324   :  { %3859 = vmatprep.mubr.bf16.mxu0 %v13962_v0 }
 0x32b   :  { %8709 = vmatmul.mubr.msk.bf16.gmra.mrb[184].mxu0 %vm1671_vm2, %v11931_v15 }
 0x32c   :  { %3869 = vmatprep.mubr.bf16.mxu0 %v13962_v0 }
 0x333   :  { %8710 = vmatmul.mubr.msk.bf16.gmra.mrb[188].mxu0 %vm1671_vm2, %v11939_v26 }
 0x334   :  { %4510 = vmatprep.mubr.bf16.mxu0 %v13962_v0 }
 0x366   :  { %v12143_v28 = vpop.f32.mrb[96].mxu1 }
 0x367   :  { %v12145_v25 = vpop.f32.mrb[97].mxu1 }
 0x368   :  { %v12147_v55 = vpop.f32.mrb[98].mxu1 }
 0x369   :  { %v12149_v11 = vpop.f32.mrb[99].mxu1 }
 0x36e   :  { %v12151_v10 = vpop.f32.mrb[100].mxu1 }
 0x36f   :  { %v12153_v47 = vpop.f32.mrb[101].mxu1 }
 0x370   :  { %v12155_v59 = vpop.f32.mrb[102].mxu1 }
 0x371   :  { %v12157_v3 = vpop.f32.mrb[103].mxu1 }
 0x376   :  { %v12159_v41 = vpop.f32.mrb[104].mxu1 }
 0x377   :  { %v12161_v27 = vpop.f32.mrb[105].mxu1 }
 0x378   :  { %v12163_v1 = vpop.f32.mrb[106].mxu1 }
 0x379   :  { %v12165_v50 = vpop.f32.mrb[107].mxu1 }
 0x37e   :  { %v12167_v53 = vpop.f32.mrb[108].mxu1 }
 0x37f   :  { %v12169_v32 = vpop.f32.mrb[109].mxu1 }
 0x380   :  { %v12171_v54 = vpop.f32.mrb[110].mxu1 }
 0x381   :  { %v12173_v18 = vpop.f32.mrb[111].mxu1 }
 0x386   :  { %v12175_v30 = vpop.f32.mrb[112].mxu1 }
 0x387   :  { %13982 = vst [vmem:[#allocation2_spill] sm:$0xff] %v12175_v30  ;;  %v12177_v39 = vpop.f32.mrb[113].mxu1 }
 0x388   :  { %13983 = vst [vmem:[#allocation3_spill] sm:$0xff] %v12177_v39  ;;  %v12179_v58 = vpop.f32.mrb[114].mxu1 }
 0x389   :  { %13984 = vst [vmem:[#allocation4_spill] sm:$0xff] %v12179_v58  ;;  %v12181_v62 = vpop.f32.mrb[115].mxu1  ;;  %v4000_v58 = vld [vmem:[%s13952_s4] sm:$0x3] }
 0x38a   :  { %13985 = vst [vmem:[#allocation5_spill] sm:$0xff] %v12181_v62 }
 0x38e   :  { %v12183_v35 = vpop.f32.mrb[116].mxu1 }
 0x38f   :  { %13986 = vst [vmem:[#allocation6_spill] sm:$0xff] %v12183_v35  ;;  %v12185_v14 = vpop.f32.mrb[117].mxu1 }
 0x390   :  { %13987 = vst [vmem:[#allocation7_spill] sm:$0xff] %v12185_v14  ;;  %v12187_v34 = vpop.f32.mrb[118].mxu1 }
 0x391   :  { %13988 = vst [vmem:[#allocation8_spill] sm:$0xff] %v12187_v34  ;;  %v12189_v37 = vpop.f32.mrb[119].mxu1  ;;  %v4002_v34 = vlaneseq }
 0x392   :  { %13989 = vst [vmem:[#allocation9_spill] sm:$0xff] %v12189_v37 }
 0x396   :  { %v12191_v31 = vpop.f32.mrb[120].mxu1 }
 0x397   :  { %v12195_v8 = vpop.f32.mrb[121].mxu1 }
 0x398   :  { %v12199_v52 = vpop.f32.mrb[122].mxu1 }
 0x399   :  { %v12203_v48 = vpop.f32.mrb[123].mxu1 }
 0x39e   :  { %v12207_v57 = vpop.f32.mrb[124].mxu1 }
 0x39f   :  { %v12211_v24 = vpop.f32.mrb[125].mxu1 }
 0x3a0   :  { %v12215_v17 = vpop.f32.mrb[126].mxu1 }
 0x3a1   :  { %v12219_v43 = vpop.f32.mrb[127].mxu1 }
 0x3a6   :  { %v12223_v29 = vpop.f32.mrb[128].mxu1 }
 0x3a7   :  { %v12227_v2 = vpop.f32.mrb[129].mxu1 }
 0x3a8   :  { %v12231_v56 = vpop.f32.mrb[130].mxu1 }
 0x3a9   :  { %v12235_v6 = vpop.f32.mrb[131].mxu1 }
 0x3ae   :  { %v12239_v23 = vpop.f32.mrb[132].mxu1  ;;  %v3761_v22 = vpop.f32.mrb[144].mxu0 }
 0x3af   :  { %v12243_v19 = vpop.f32.mrb[133].mxu1  ;;  %v3763_v26 = vpop.f32.mrb[145].mxu0 }
 0x3b0   :  { %v12247_v51 = vpop.f32.mrb[134].mxu1  ;;  %v3765_v20 = vpop.f32.mrb[146].mxu0 }
 0x3b1   :  { %v12251_v60 = vpop.f32.mrb[135].mxu1  ;;  %v3767_v40 = vpop.f32.mrb[147].mxu0 }
 0x3b6   :  { %v12255_v21 = vpop.f32.mrb[136].mxu1  ;;  %v12257_v45 = vpop.f32.mrb[148].mxu0 }
 0x3b7   :  { %13990 = vst [vmem:[#allocation10_spill] sm:$0xff] %v12255_v21  ;;  %v12261_v0 = vpop.f32.mrb[137].mxu1  ;;  %v12263_v44 = vpop.f32.mrb[149].mxu0 }
 0x3b8   :  { %13991 = vst [vmem:[#allocation11_spill] sm:$0xff] %v12261_v0  ;;  %v12267_v16 = vpop.f32.mrb[138].mxu1  ;;  %v12269_v15 = vpop.f32.mrb[150].mxu0 }
 0x3b9   :  { %13992 = vst [vmem:[#allocation12_spill] sm:$0xff] %v12267_v16  ;;  %v12273_v49 = vpop.f32.mrb[139].mxu1  ;;  %v12275_v63 = vpop.f32.mrb[151].mxu0 }
 0x3ba   :  { %13993 = vst [vmem:[#allocation13_spill] sm:$0xff] %v12273_v49 }
 0x3be   :  { %v12279_v5 = vpop.f32.mrb[140].mxu1  ;;  %v12281_v42 = vpop.f32.mrb[152].mxu0 }
 0x3bf   :  { %13994 = vst [vmem:[#allocation14_spill] sm:$0xff] %v12279_v5  ;;  %v12285_v33 = vpop.f32.mrb[141].mxu1  ;;  %v12287_v61 = vpop.f32.mrb[153].mxu0 }
 0x3c0   :  { %13995 = vst [vmem:[#allocation15_spill] sm:$0xff] %v12285_v33  ;;  %v12291_v13 = vpop.f32.mrb[142].mxu1  ;;  %v12293_v4 = vpop.f32.mrb[154].mxu0 }
 0x3c1   :  { %13996 = vst [vmem:[#allocation16_spill] sm:$0xff] %v12291_v13  ;;  %v12297_v7 = vpop.f32.mrb[143].mxu1  ;;  %v12299_v12 = vpop.f32.mrb[155].mxu0 }
 0x3c2   :  { %13997 = vst [vmem:[#allocation17_spill] sm:$0xff] %v12297_v7  ;;  %v12323_v7 = vshrl.u32 %v4002_v34, 7 }
 0x3c4   :  { %v13980_v16 = vsub.s32 0, %v12323_v7  ;;  %v13981_v0 = vsub.s32 1, %v12323_v7 }
 0x3c6   :  { %v12303_v46 = vpop.f32.mrb[156].mxu0 }
 0x3c7   :  { %v12305_v5 = vpop.f32.mrb[157].mxu0 }
 0x3c8   :  { %v12307_v35 = vpop.f32.mrb[158].mxu0 }
 0x3c9   :  { %v12309_v38 = vpop.f32.mrb[159].mxu0 }
 0x3ce   :  { %v12311_v33 = vpop.f32.mrb[160].mxu0 }
 0x3cf   :  { %13998 = vst [vmem:[#allocation18_spill] sm:$0xff] %v12311_v33  ;;  %v12313_v14 = vpop.f32.mrb[161].mxu0 }
 0x3d0   :  { %13999 = vst [vmem:[#allocation19_spill] sm:$0xff] %v12313_v14  ;;  %v12315_v9 = vpop.f32.mrb[162].mxu0 }
 0x3d1   :  { %14000 = vst [vmem:[#allocation20_spill] sm:$0xff] %v12315_v9  ;;  %v12317_v13 = vpop.f32.mrb[163].mxu0  ;;  %v14006_v9 = vmax.f32 %v12143_v28, %v12191_v31 }
 0x3d2   :  { %14001 = vst [vmem:[#allocation21_spill] sm:$0xff] %v12317_v13 }
 0x3d6   :  { %v12319_v49 = vpop.f32.mrb[164].mxu0 }
 0x3d7   :  { %14002 = vst [vmem:[#allocation22_spill] sm:$0xff] %v12319_v49  ;;  %v12321_v36 = vpop.f32.mrb[165].mxu0  ;;  %v12336_v49 = vrot.slane %v4000_v58, %v13980_v16 }
 0x3d8   :  { %14003 = vst [vmem:[#allocation23_spill] sm:$0xff] %v12321_v36  ;;  %v12325_v37 = vpop.f32.mrb[166].mxu0 }
 0x3d9   :  { %14004 = vst [vmem:[#allocation24_spill] sm:$0xff] %v12325_v37  ;;  %v12327_v62 = vpop.f32.mrb[167].mxu0  ;;  %v12340_v37 = vrot.slane %v4000_v58, %v13981_v0  ;;  %v14009_v0 = vmax.f32 %v12149_v11, %v12203_v48 }
 0x3da   :  { %14005 = vst [vmem:[#allocation25_spill] sm:$0xff] %v12327_v62 }
 0x3de   :  { %v3821_v13 = vpop.f32.mrb[168].mxu0 }
 0x3df   :  { %v3952_v39 = vmax.f32 %v3761_v22, %v3821_v13  ;;  %v3823_v34 = vpop.f32.mrb[169].mxu0  ;;  %v14007_v13 = vmax.f32 %v12145_v25, %v12195_v8 }
 0x3e0   :  { %v3953_v36 = vmax.f32 %v3763_v26, %v3823_v34  ;;  %v3825_v62 = vpop.f32.mrb[170].mxu0  ;;  %v14008_v26 = vmax.f32 %v12147_v55, %v12199_v52 }
 0x3e1   :  { %v3976_v21 = vmax.f32 %v14006_v9, %v3952_v39  ;;  %v3954_v30 = vmax.f32 %v3765_v20, %v3825_v62  ;;  %v3827_v14 = vpop.f32.mrb[171].mxu0 }
 0x3e2   :  { %v3977_v22 = vmax.f32 %v14007_v13, %v3953_v36  ;;  %v3955_v33 = vmax.f32 %v3767_v40, %v3827_v14  ;;  %v14012_v13 = vmax.f32 %v12155_v59, %v12215_v17 }
 0x3e3   :  { %v4012_v16 = vadd.f32 %v12336_v49, %v3976_v21  ;;  %v3978_v34 = vmax.f32 %v14008_v26, %v3954_v30 }
 0x3e4   :  { %v4013_v58 = vadd.f32 %v12340_v37, %v3977_v22  ;;  %v3979_v28 = vmax.f32 %v14009_v0, %v3955_v33  ;;  %v14010_v0 = vmax.f32 %v12151_v10, %v12207_v57  ;;  %v14013_v57 = vmax.f32 %v12157_v3, %v12219_v43 }
 0x3e5   :  { %v4014_v39 = vadd.f32 %v12336_v49, %v3978_v34  ;;  %v4036_v25 = vmax.f32 %v4012_v16, 0.0  ;;  %v14011_v16 = vmax.f32 %v12153_v47, %v12211_v24 }
 0x3e6   :  { %v4015_v62 = vadd.f32 %v12340_v37, %v3979_v28  ;;  %v3831_v31 = vpop.f32.mrb[172].mxu0  ;;  %v4037_v36 = vmax.f32 %v4013_v58, 0.0 }
 0x3e7   :  { %v4038_v8 = vmax.f32 %v4014_v39, 0.0  ;;  %v3956_v14 = vmax.f32 %v12257_v45, %v3831_v31  ;;  %v3833_v20 = vpop.f32.mrb[173].mxu0 }
 0x3e8   :  { %v4039_v40 = vmax.f32 %v4015_v62, 0.0  ;;  %v3957_v55 = vmax.f32 %v12263_v44, %v3833_v20  ;;  %v3835_v30 = vpop.f32.mrb[174].mxu0  ;;  %v14014_v62 = vmax.f32 %v12159_v41, %v12223_v29 }
 0x3e9   :  { %v12360_v52 = vpack.c.bf16 %v4038_v8, %v4036_v25  ;;  %v3980_v11 = vmax.f32 %v14010_v0, %v3956_v14  ;;  %v3958_v48 = vmax.f32 %v12269_v15, %v3835_v30  ;;  %v3837_v33 = vpop.f32.mrb[175].mxu0 }
 0x3ea   :  { %v12366_v21 = vpack.c.bf16 %v4039_v40, %v4037_v36  ;;  %v3981_v45 = vmax.f32 %v14011_v16, %v3957_v55  ;;  %v3959_v9 = vmax.f32 %v12275_v63, %v3837_v33  ;;  %v14016_v40 = vmax.f32 %v12163_v1, %v12231_v56 }
 0x3eb   :  { %v4016_v44 = vadd.f32 %v12336_v49, %v3980_v11  ;;  %v3982_v22 = vmax.f32 %v14012_v13, %v3958_v48  ;;  %v14018_v16 = vmax.f32 %v12167_v53, %v12239_v23 }
 0x3ec   :  { %v4017_v10 = vadd.f32 %v12340_v37, %v3981_v45  ;;  %v3983_v15 = vmax.f32 %v14013_v57, %v3959_v9  ;;  %4112 = vmatprep.subr.bf16.mxu1 %v12366_v21  ;;  %4478 = vmatprep.subr.bf16.mxu0 %v12366_v21  ;;  %v14020_v57 = vmax.f32 %v12171_v54, %v12247_v51 }
 0x3ed   :  { %v4018_v47 = vadd.f32 %v12336_v49, %v3982_v22  ;;  %4113 = vmatpush1.bf16.msra.mxu1 %v12360_v52  ;;  %4479 = vmatpush1.bf16.msra.mxu0 %v12360_v52  ;;  %v4040_v17 = vmax.f32 %v4016_v44, 0.0 }
 0x3ee   :  { %v4019_v24 = vadd.f32 %v12340_v37, %v3983_v15  ;;  %v3841_v59 = vpop.f32.mrb[176].mxu0  ;;  %v4041_v3 = vmax.f32 %v4017_v10, 0.0 }
 0x3ef   :  { %v4042_v63 = vmax.f32 %v4018_v47, 0.0  ;;  %v3960_v26 = vmax.f32 %v12281_v42, %v3841_v59  ;;  %v3843_v34 = vpop.f32.mrb[177].mxu0  ;;  %v14015_v42 = vmax.f32 %v12161_v27, %v12227_v2  ;;  %v14022_v47 = vld [vmem:[#allocation18_spill] sm:$0xff] }
 0x3f0   :  { %v4043_v43 = vmax.f32 %v4019_v24, 0.0  ;;  %v3961_v58 = vmax.f32 %v12287_v61, %v3843_v34  ;;  %v3845_v28 = vpop.f32.mrb[178].mxu0 }
 0x3f1   :  { %v12388_v39 = vpack.c.bf16 %v4042_v63, %v4040_v17  ;;  %v3984_v31 = vmax.f32 %v14014_v62, %v3960_v26  ;;  %v3962_v25 = vmax.f32 %v12293_v4, %v3845_v28  ;;  %v3847_v8 = vpop.f32.mrb[179].mxu0  ;;  %v14017_v4 = vmax.f32 %v12165_v50, %v12235_v6  ;;  %v14023_v17 = vld [vmem:[#allocation19_spill] sm:$0xff]  ;;  %v14027_v62 = vld [vmem:[#allocation20_spill] sm:$0xff] }
 0x3f2   :  { %v12394_v14 = vpack.c.bf16 %v4043_v43, %v4041_v3  ;;  %v3985_v20 = vmax.f32 %v14015_v42, %v3961_v58  ;;  %v3963_v36 = vmax.f32 %v12299_v12, %v3847_v8  ;;  %v14024_v3 = vld [vmem:[#allocation2_spill] sm:$0xff]  ;;  %v14028_v42 = vld [vmem:[#allocation3_spill] sm:$0xff] }
 0x3f3   :  { %v4020_v61 = vadd.f32 %v12336_v49, %v3984_v31  ;;  %v3986_v55 = vmax.f32 %v14016_v40, %v3962_v25  ;;  %v14025_v43 = vld [vmem:[#allocation10_spill] sm:$0xff]  ;;  %v14031_v40 = vld [vmem:[#allocation21_spill] sm:$0xff] }
 0x3f4   :  { %v4021_v41 = vadd.f32 %v12340_v37, %v3985_v20  ;;  %v3987_v29 = vmax.f32 %v14017_v4, %v3963_v36  ;;  %4114 = vmatprep.subr.bf16.mxu1 %v12394_v14  ;;  %4480 = vmatprep.subr.bf16.mxu0 %v12394_v14  ;;  %v14026_v58 = vmax.f32 %v14024_v3, %v14025_v43  ;;  %v14029_v20 = vld [vmem:[#allocation11_spill] sm:$0xff]  ;;  %v14032_v4 = vld [vmem:[#allocation4_spill] sm:$0xff] }
 0x3f5   :  { %v4022_v27 = vadd.f32 %v12336_v49, %v3986_v55  ;;  %4115 = vmatpush1.bf16.msra.mxu1 %v12388_v39  ;;  %4481 = vmatpush1.bf16.msra.mxu0 %v12388_v39  ;;  %v4044_v2 = vmax.f32 %v4020_v61, 0.0  ;;  %v14030_v36 = vmax.f32 %v14028_v42, %v14029_v20  ;;  %v14049_v3 = vld [vmem:[#allocation16_spill] sm:$0xff] }
 0x3f6   :  { %v4023_v12 = vadd.f32 %v12340_v37, %v3987_v29  ;;  %v3851_v1 = vpop.f32.mrb[180].mxu0  ;;  %v4045_v50 = vmax.f32 %v4021_v41, 0.0  ;;  %v14033_v29 = vld [vmem:[#allocation12_spill] sm:$0xff] }
 0x3f7   :  { %v4046_v56 = vmax.f32 %v4022_v27, 0.0  ;;  %v3964_v30 = vmax.f32 %v12303_v46, %v3851_v1  ;;  %v3853_v0 = vpop.f32.mrb[181].mxu0  ;;  %v14019_v46 = vmax.f32 %v12169_v32, %v12243_v19  ;;  %v14034_v27 = vmax.f32 %v14032_v4, %v14033_v29 }
 0x3f8   :  { %v4047_v6 = vmax.f32 %v4023_v12, 0.0  ;;  %v3965_v11 = vmax.f32 %v12305_v5, %v3853_v0  ;;  %v3855_v48 = vpop.f32.mrb[182].mxu0 }
 0x3f9   :  { %v12416_v33 = vpack.c.bf16 %v4046_v56, %v4044_v2  ;;  %v3988_v45 = vmax.f32 %v14018_v16, %v3964_v30  ;;  %v3966_v9 = vmax.f32 %v12307_v35, %v3855_v48  ;;  %v3857_v44 = vpop.f32.mrb[183].mxu0  ;;  %v14021_v35 = vmax.f32 %v12173_v18, %v12251_v60  ;;  %v14035_v2 = vld [vmem:[#allocation5_spill] sm:$0xff] }
 0x3fa   :  { %v12422_v13 = vpack.c.bf16 %v4047_v6, %v4045_v50  ;;  %v3989_v22 = vmax.f32 %v14019_v46, %v3965_v11  ;;  %v3967_v10 = vmax.f32 %v12309_v38, %v3857_v44  ;;  %v14036_v56 = vld [vmem:[#allocation13_spill] sm:$0xff] }
 0x3fb   :  { %v4024_v5 = vadd.f32 %v12336_v49, %v3988_v45  ;;  %v3990_v15 = vmax.f32 %v14020_v57, %v3966_v9  ;;  %v14037_v30 = vmax.f32 %v14035_v2, %v14036_v56  ;;  %v14038_v45 = vld [vmem:[#allocation22_spill] sm:$0xff]  ;;  %v14054_v2 = vmov 0  }
 0x3fc   :  { %v4025_v53 = vadd.f32 %v12340_v37, %v3989_v22  ;;  %v3991_v23 = vmax.f32 %v14021_v35, %v3967_v10  ;;  %4116 = vmatprep.subr.bf16.mxu1 %v12422_v13  ;;  %4482 = vmatprep.subr.bf16.mxu0 %v12422_v13  ;;  %v14039_v10 = vld [vmem:[#allocation23_spill] sm:$0xff]  ;;  %v14041_v35 = vld [vmem:[#allocation14_spill] sm:$0xff] }
 0x3fd   :  { %v4026_v32 = vadd.f32 %v12336_v49, %v3990_v15  ;;  %4117 = vmatpush1.bf16.msra.mxu1 %v12416_v33  ;;  %4483 = vmatpush1.bf16.msra.mxu0 %v12416_v33  ;;  %v4048_v51 = vmax.f32 %v4024_v5, 0.0  ;;  %v10273_v56 = vld [vmem:[%s13953_s6 + $0x100] ss:$8 sps:$4 sm:$0xff]  }
 0x3fe   :  { %v4027_v19 = vadd.f32 %v12340_v37, %v3991_v23  ;;  %v3861_v54 = vpop.f32.mrb[184].mxu0  ;;  %v4049_v18 = vmax.f32 %v4025_v53, 0.0  ;;  %v14040_v53 = vld [vmem:[#allocation6_spill] sm:$0xff] }
 0x3ff   :  { %v4050_v38 = vmax.f32 %v4026_v32, 0.0  ;;  %v3968_v24 = vmax.f32 %v14022_v47, %v3861_v54  ;;  %v3863_v59 = vpop.f32.mrb[185].mxu0  ;;  %v14042_v23 = vmax.f32 %v14040_v53, %v14041_v35  ;;  %v14044_v47 = vld [vmem:[#allocation7_spill] sm:$0xff]  ;;  %v10318_v35 = vld [vmem:[%s13953_s6 + $0x174] ss:$8 sps:$4 sm:$0xff]  }
 0x400   :  { %v4051_v60 = vmax.f32 %v4027_v19, 0.0  ;;  %v3969_v63 = vmax.f32 %v14023_v17, %v3863_v59  ;;  %v3865_v26 = vpop.f32.mrb[186].mxu0  ;;  %v14043_v19 = vld [vmem:[#allocation24_spill] sm:$0xff]  ;;  %v10309_v53 = vld [vmem:[%s13953_s6 + $0x160] ss:$8 sps:$4 sm:$0xff]  }
 0x401   :  { %v12444_v34 = vpack.c.bf16 %v4050_v38, %v4048_v51  ;;  %v3992_v28 = vmax.f32 %v14026_v58, %v3968_v24  ;;  %v3970_v31 = vmax.f32 %v14027_v62, %v3865_v26  ;;  %v3867_v25 = vpop.f32.mrb[187].mxu0  ;;  %v14045_v24 = vld [vmem:[#allocation15_spill] sm:$0xff]  ;;  %v14048_v26 = vld [vmem:[#allocation8_spill] sm:$0xff]  ;;  %v14051_v62 = vld [vmem:[#allocation9_spill] sm:$0xff] }
 0x402   :  { %v12450_v8 = vpack.c.bf16 %v4051_v60, %v4049_v18  ;;  %v3993_v61 = vmax.f32 %v14030_v36, %v3969_v63  ;;  %v3971_v55 = vmax.f32 %v14031_v40, %v3867_v25  ;;  %v14046_v59 = vmax.f32 %v14044_v47, %v14045_v24  ;;  %v14047_v60 = vld [vmem:[#allocation25_spill] sm:$0xff]  ;;  %v10259_v47 = vld [vmem:[%s13951_s5 + $0x30] sm:$0xff]  }
 0x403   :  { %v4028_v41 = vadd.f32 %v12336_v49, %v3992_v28  ;;  %v3994_v12 = vmax.f32 %v14034_v27, %v3970_v31  ;;  %v14050_v43 = vmax.f32 %v14048_v26, %v14049_v3  ;;  %v14052_v31 = vld [vmem:[#allocation17_spill] sm:$0xff]  ;;  %v10253_v27 = vld [vmem:[%s13951_s5] sm:$0xff]   ;;  %v10328_v3 = vld [vmem:[%s13951_s5 + $0x88] sm:$0xff]  }
 0x404   :  { %v4029_v1 = vadd.f32 %v12340_v37, %v3993_v61  ;;  %v3995_v0 = vmax.f32 %v14037_v30, %v3971_v55  ;;  %4118 = vmatprep.subr.bf16.mxu1 %v12450_v8  ;;  %4484 = vmatprep.subr.bf16.mxu0 %v12450_v8  ;;  %v14053_v25 = vmax.f32 %v14051_v62, %v14052_v31  ;;  %v10254_v30 = vld [vmem:[%s13951_s5 + $0x8] sm:$0xff]   ;;  %v10260_v24 = vld [vmem:[%s13951_s5 + $0x38] sm:$0xff]  }
 0x405   :  { %v4030_v50 = vadd.f32 %v12336_v49, %v3994_v12  ;;  %4119 = vmatpush1.bf16.msra.mxu1 %v12444_v34  ;;  %4485 = vmatpush1.bf16.msra.mxu0 %v12444_v34  ;;  %v4052_v48 = vmax.f32 %v4028_v41, 0.0  ;;  %v10265_v12 = vld [vmem:[%s13953_s6 + $0xf0] ss:$8 sps:$4 sm:$0xff]   ;;  %v10346_v62 = vld [vmem:[%s13953_s6 + $0x1b4] ss:$8 sps:$4 sm:$0xff]  }
 0x406   :  { %v4031_v6 = vadd.f32 %v12340_v37, %v3995_v0  ;;  %v3871_v11 = vpop.f32.mrb[188].mxu0  ;;  %v4053_v46 = vmax.f32 %v4029_v1, 0.0  ;;  %v10275_v1 = vld [vmem:[%s13953_s6 + $0x104] ss:$8 sps:$4 sm:$0xff]   ;;  %v10281_v0 = vld [vmem:[%s13953_s6 + $0x114] ss:$8 sps:$4 sm:$0xff]  }
 0x407   :  { %v4054_v16 = vmax.f32 %v4030_v50, 0.0  ;;  %v3972_v9 = vmax.f32 %v14038_v45, %v3871_v11  ;;  %v3873_v44 = vpop.f32.mrb[189].mxu0  ;;  %v10315_v50 = vld [vmem:[%s13951_s5 + $0x68] sm:$0xff]   ;;  %v10255_v45 = vld [vmem:[%s13951_s5 + $0x10] sm:$0xff]   ;;  %v10343_v26 = vld [vmem:[%s13951_s5 + $0x78] sm:$0xff]  }
 0x408   :  { %v4055_v22 = vmax.f32 %v4031_v6, 0.0  ;;  %v3973_v5 = vmax.f32 %v14039_v10, %v3873_v44  ;;  %v3875_v57 = vpop.f32.mrb[190].mxu0  ;;  %v10279_v6 = vld [vmem:[%s13953_s6 + $0x110] ss:$8 sps:$4 sm:$0xff]   ;;  %v10287_v11 = vld [vmem:[%s13953_s6 + $0x124] ss:$8 sps:$4 sm:$0xff]  }
 0x409   :  { %v12472_v15 = vpack.c.bf16 %v4054_v16, %v4052_v48  ;;  %v3996_v32 = vmax.f32 %v14042_v23, %v3972_v9  ;;  %v3974_v54 = vmax.f32 %v14043_v19, %v3875_v57  ;;  %v3877_v51 = vpop.f32.mrb[191].mxu0  ;;  %v10285_v48 = vld [vmem:[%s13953_s6 + $0x120] ss:$8 sps:$4 sm:$0xff]   ;;  %v10293_v16 = vld [vmem:[%s13953_s6 + $0x134] ss:$8 sps:$4 sm:$0xff]  }
 0x40a   :  { %v12478_v38 = vpack.c.bf16 %v4055_v22, %v4053_v46  ;;  %v3997_v18 = vmax.f32 %v14046_v59, %v3973_v5  ;;  %v3975_v17 = vmax.f32 %v14047_v60, %v3877_v51  ;;  %v10291_v9 = vld [vmem:[%s13953_s6 + $0x130] ss:$8 sps:$4 sm:$0xff]   ;;  %v10299_v44 = vld [vmem:[%s13953_s6 + $0x144] ss:$8 sps:$4 sm:$0xff]   ;;  %v10297_v46 = vld [vmem:[%s13953_s6 + $0x140] ss:$8 sps:$4 sm:$0xff]  }
 0x40b   :  { %v4032_v63 = vadd.f32 %v12336_v49, %v3996_v32  ;;  %v3998_v58 = vmax.f32 %v14050_v43, %v3974_v54  ;;  %v10305_v22 = vld [vmem:[%s13953_s6 + $0x154] ss:$8 sps:$4 sm:$0xff]   ;;  %v10303_v5 = vld [vmem:[%s13953_s6 + $0x150] ss:$8 sps:$4 sm:$0xff]   ;;  %v10311_v57 = vld [vmem:[%s13953_s6 + $0x164] ss:$8 sps:$4 sm:$0xff]  }
 0x40c   :  { %v4033_v28 = vadd.f32 %v12340_v37, %v3997_v18  ;;  %v3999_v42 = vmax.f32 %v14053_v25, %v3975_v17  ;;  %4120 = vmatprep.subr.bf16.mxu1 %v12478_v38  ;;  %4486 = vmatprep.subr.bf16.mxu0 %v12478_v38  ;;  %v10256_v10 = vld [vmem:[%s13951_s5 + $0x18] sm:$0xff]   ;;  %v10257_v23 = vld [vmem:[%s13951_s5 + $0x20] sm:$0xff]   ;;  %v10258_v51 = vld [vmem:[%s13951_s5 + $0x28] sm:$0xff]  }
 0x40d   :  { %v4034_v20 = vadd.f32 %v12336_v49, %v3998_v58  ;;  %4121 = vmatpush1.bf16.msra.mxu1 %v12472_v15  ;;  %4487 = vmatpush1.bf16.msra.mxu0 %v12472_v15  ;;  %v4056_v61 = vmax.f32 %v4032_v63, 0.0  ;;  %v10267_v49 = vld [vmem:[%s13953_s6 + $0xf4] ss:$8 sps:$4 sm:$0xff]   ;;  %v10316_v32 = vld [vmem:[%s13953_s6 + $0x170] ss:$8 sps:$4 sm:$0xff]   ;;  %v10261_v59 = vld [vmem:[%s13951_s5 + $0x40] sm:$0xff]  }
 0x40e   :  { %v4035_v36 = vadd.f32 %v12340_v37, %v3999_v42  ;;  %v4057_v55 = vmax.f32 %v4033_v28, 0.0  ;;  %v10271_v37 = vld [vmem:[%s13951_s5 + $0x60] sm:$0xff]   ;;  %v10284_v63 = vld [vmem:[%s13954_s7 + $0x114] ss:$8 sps:$4 sm:$0xff]   ;;  %v10282_v43 = vld [vmem:[%s13954_s7 + $0x110] ss:$8 sps:$4 sm:$0xff]  }
 0x40f   :  { %v4058_v40 = vmax.f32 %v4034_v20, 0.0  ;;  %v10324_v19 = vld [vmem:[%s13953_s6 + $0x184] ss:$8 sps:$4 sm:$0xff]   ;;  %v10322_v54 = vld [vmem:[%s13953_s6 + $0x180] ss:$8 sps:$4 sm:$0xff]   ;;  %v10342_v42 = vld [vmem:[%s13951_s5 + $0x90] sm:$0xff]  }
 0x410   :  { %v4059_v41 = vmax.f32 %v4035_v36, 0.0  ;;  %v10336_v18 = vld [vmem:[%s13953_s6 + $0x1a0] ss:$8 sps:$4 sm:$0xff]   ;;  %v10338_v60 = vld [vmem:[%s13953_s6 + $0x1a4] ss:$8 sps:$4 sm:$0xff]  }
 0x411   :  { %v12498_v4 = vpack.c.bf16 %v4058_v40, %v4056_v61  ;;  %v10276_v17 = vld [vmem:[%s13954_s7 + $0x100] ss:$8 sps:$4 sm:$0xff]   ;;  %v10290_v58 = vld [vmem:[%s13954_s7 + $0x124] ss:$8 sps:$4 sm:$0xff]   ;;  %v10344_v28 = vld [vmem:[%s13953_s6 + $0x1b0] ss:$8 sps:$4 sm:$0xff]  }
 0x412   :  { %v12500_v29 = vpack.c.bf16 %v4059_v41, %v4057_v55  ;;  %v10288_v31 = vld [vmem:[%s13954_s7 + $0x120] ss:$8 sps:$4 sm:$0xff]   ;;  %v10296_v25 = vld [vmem:[%s13954_s7 + $0x134] ss:$8 sps:$4 sm:$0xff]   ;;  %v10294_v20 = vld [vmem:[%s13954_s7 + $0x130] ss:$8 sps:$4 sm:$0xff]  }
 0x413   :  { %v10302_v36 = vld [vmem:[%s13954_s7 + $0x144] ss:$8 sps:$4 sm:$0xff]   ;;  %v10350_v61 = vld [vmem:[%s13953_s6 + $0x1c0] ss:$8 sps:$4 sm:$0xff]   ;;  %v10308_v41 = vld [vmem:[%s13954_s7 + $0x154] ss:$8 sps:$4 sm:$0xff]  }
 0x414   :  { %4122 = vmatprep.subr.bf16.mxu1 %v12500_v29  ;;  %4488 = vmatprep.subr.bf16.mxu0 %v12500_v29  ;;  %v10352_v40 = vld [vmem:[%s13953_s6 + $0x1c4] ss:$8 sps:$4 sm:$0xff]   ;;  %v10300_v55 = vld [vmem:[%s13954_s7 + $0x140] ss:$8 sps:$4 sm:$0xff]  }
 0x415   :  { %4123 = vmatpush1.bf16.msra.mxu1 %v12498_v4  ;;  %4489 = vmatpush1.bf16.msra.mxu0 %v12498_v4 }
 0x416   :  { %4234 = vmatprep.subr.bf16.mxu1 %v12366_v21  ;;  %4935 = vmatprep.subr.bf16.mxu0 %v10267_v49  ;;  %v10357_v49 = vld [vmem:[%s13953_s6 + $0x1d0] ss:$8 sps:$4 sm:$0xff]  }
 0x418   :  { %8715 = vmatmul.mubr.msk.bf16.vlgmr.msra.gmra.mrb[144].mxu1 %vm222_vm0, %v10253_v27  ;;  %8763 = vmatmul.mubr.msk.bf16.vlgmr.msra.gmra.mrb[192].mxu0 %vm222_vm0, %v10271_v37  ;;  %v10306_v27 = vld [vmem:[%s13954_s7 + $0x150] ss:$8 sps:$4 sm:$0xff]   ;;  %v10314_v37 = vld [vmem:[%s13954_s7 + $0x164] ss:$8 sps:$4 sm:$0xff]  }
 0x419   :  { %4235 = vmatpush1.bf16.msra.mxu1 %v12360_v52  ;;  %4154 = vmatprep.mubr.bf16.mxu1 %v14054_v2 }
 0x41a   :  { %4236 = vmatprep.subr.bf16.mxu1 %v12394_v14  ;;  %4936 = vmatpush1.bf16.msra.mxu0 %v10265_v12  ;;  %v10365_v12 = vld [vmem:[%s13953_s6 + $0x4] ss:$8 sps:$4 sm:$0xff]  }
 0x41b   :  { %4937 = vmatprep.subr.bf16.mxu0 %v10275_v1  ;;  %4520 = vmatprep.mubr.bf16.mxu0 %v14054_v2  ;;  %v10312_v1 = vld [vmem:[%s13954_s7 + $0x160] ss:$8 sps:$4 sm:$0xff]  }
 0x41d   :  { %4237 = vmatpush1.bf16.msra.mxu1 %v12388_v39 }
 0x41e   :  { %4238 = vmatprep.subr.bf16.mxu1 %v12422_v13  ;;  %4938 = vmatpush1.bf16.msra.mxu0 %v10273_v56  ;;  %v10321_v56 = vld [vmem:[%s13954_s7 + $0x174] ss:$8 sps:$4 sm:$0xff]  }
 0x41f   :  { %4939 = vmatprep.subr.bf16.mxu0 %v10281_v0  ;;  %v10327_v0 = vld [vmem:[%s13954_s7 + $0x184] ss:$8 sps:$4 sm:$0xff]  }
 0x420   :  { %8716 = vmatmul.mubr.msk.bf16.gmra.mrb[148].mxu1 %vm222_vm0, %v10254_v30  ;;  %8764 = vmatmul.mubr.msk.bf16.gmra.mrb[196].mxu0 %vm222_vm0, %v10315_v50  ;;  %v10319_v30 = vld [vmem:[%s13954_s7 + $0x170] ss:$8 sps:$4 sm:$0xff]   ;;  %v10325_v50 = vld [vmem:[%s13954_s7 + $0x180] ss:$8 sps:$4 sm:$0xff]  }
 0x421   :  { %4239 = vmatpush1.bf16.msra.mxu1 %v12416_v33  ;;  %4164 = vmatprep.mubr.bf16.mxu1 %v14054_v2 }
 0x422   :  { %4240 = vmatprep.subr.bf16.mxu1 %v12450_v8  ;;  %4940 = vmatpush1.bf16.msra.mxu0 %v10279_v6  ;;  %v10335_v6 = vld [vmem:[%s13954_s7 + $0x194] ss:$8 sps:$4 sm:$0xff]  }
 0x423   :  { %4941 = vmatprep.subr.bf16.mxu0 %v10287_v11  ;;  %4530 = vmatprep.mubr.bf16.mxu0 %v14054_v2  ;;  %v10333_v11 = vld [vmem:[%s13954_s7 + $0x190] ss:$8 sps:$4 sm:$0xff]  }
 0x425   :  { %4241 = vmatpush1.bf16.msra.mxu1 %v12444_v34 }
 0x426   :  { %4242 = vmatprep.subr.bf16.mxu1 %v12478_v38  ;;  %4942 = vmatpush1.bf16.msra.mxu0 %v10285_v48  ;;  %v10341_v48 = vld [vmem:[%s13954_s7 + $0x1a4] ss:$8 sps:$4 sm:$0xff]  }
 0x427   :  { %4943 = vmatprep.subr.bf16.mxu0 %v10293_v16  ;;  %v10339_v16 = vld [vmem:[%s13954_s7 + $0x1a0] ss:$8 sps:$4 sm:$0xff]  }
 0x428   :  { %8717 = vmatmul.mubr.msk.bf16.gmra.mrb[152].mxu1 %vm222_vm0, %v10255_v45  ;;  %v10349_v45 = vld [vmem:[%s13954_s7 + $0x1b4] ss:$8 sps:$4 sm:$0xff]  }
 0x429   :  { %4243 = vmatpush1.bf16.msra.mxu1 %v12472_v15  ;;  %4174 = vmatprep.mubr.bf16.mxu1 %v14054_v2 }
 0x42a   :  { %4244 = vmatprep.subr.bf16.mxu1 %v12500_v29  ;;  %4944 = vmatpush1.bf16.msra.mxu0 %v10291_v9  ;;  %v10347_v9 = vld [vmem:[%s13954_s7 + $0x1b0] ss:$8 sps:$4 sm:$0xff]  }
 0x42b   :  { %4945 = vmatprep.subr.bf16.mxu0 %v10299_v44  ;;  %v10355_v44 = vld [vmem:[%s13954_s7 + $0x1c4] ss:$8 sps:$4 sm:$0xff]  }
 0x42d   :  { %4245 = vmatpush1.bf16.msra.mxu1 %v12498_v4 }
 0x42e   :  { %4356 = vmatprep.subr.bf16.mxu1 %v12366_v21  ;;  %4946 = vmatpush1.bf16.msra.mxu0 %v10297_v46  ;;  %v10353_v46 = vld [vmem:[%s13954_s7 + $0x1c0] ss:$8 sps:$4 sm:$0xff]  }
 0x42f   :  { %4947 = vmatprep.subr.bf16.mxu0 %v10305_v22  ;;  %v10362_v22 = vld [vmem:[%s13954_s7 + $0x1d4] ss:$8 sps:$4 sm:$0xff]  }
 0x430   :  { %8718 = vmatmul.mubr.msk.bf16.gmra.mrb[156].mxu1 %vm222_vm0, %v10256_v10  ;;  %v10360_v10 = vld [vmem:[%s13954_s7 + $0x1d0] ss:$8 sps:$4 sm:$0xff]  }
 0x431   :  { %4266 = vmatprep.mubr.bf16.mxu1 %v14054_v2 }
 0x432   :  { %4948 = vmatpush1.bf16.msra.mxu0 %v10303_v5  ;;  %v10368_v5 = vld [vmem:[%s13954_s7 + $0x4] ss:$8 sps:$4 sm:$0xff]  }
 0x433   :  { %4949 = vmatprep.subr.bf16.mxu0 %v10311_v57 }
 0x436   :  { %4950 = vmatpush1.bf16.msra.mxu0 %v10309_v53 }
 0x437   :  { %4951 = vmatprep.subr.bf16.mxu0 %v10318_v35 }
 0x438   :  { %8731 = vmatmul.mubr.msk.bf16.vlgmr.msra.gmra.mrb[160].mxu1 %vm222_vm0, %v10257_v23 }
 0x439   :  { %4357 = vmatpush1.bf16.msra.mxu1 %v12360_v52  ;;  %4276 = vmatprep.mubr.bf16.mxu1 %v14054_v2 }
 0x43a   :  { %4358 = vmatprep.subr.bf16.mxu1 %v12394_v14  ;;  %4952 = vmatpush1.bf16.msra.mxu0 %v10316_v32 }
 0x43b   :  { %4953 = vmatprep.subr.bf16.mxu0 %v10324_v19 }
 0x43d   :  { %4359 = vmatpush1.bf16.msra.mxu1 %v12388_v39 }
 0x43e   :  { %4360 = vmatprep.subr.bf16.mxu1 %v12422_v13  ;;  %4954 = vmatpush1.bf16.msra.mxu0 %v10322_v54 }
 0x440   :  { %8732 = vmatmul.mubr.msk.bf16.gmra.mrb[164].mxu1 %vm222_vm0, %v10258_v51 }
 0x441   :  { %4361 = vmatpush1.bf16.msra.mxu1 %v12416_v33  ;;  %4286 = vmatprep.mubr.bf16.mxu1 %v14054_v2 }
 0x442   :  { %4362 = vmatprep.subr.bf16.mxu1 %v12450_v8 }
 0x445   :  { %4363 = vmatpush1.bf16.msra.mxu1 %v12444_v34 }
 0x446   :  { %4364 = vmatprep.subr.bf16.mxu1 %v12478_v38 }
 0x448   :  { %8733 = vmatmul.mubr.msk.bf16.gmra.mrb[168].mxu1 %vm222_vm0, %v10259_v47 }
 0x449   :  { %4365 = vmatpush1.bf16.msra.mxu1 %v12472_v15  ;;  %4296 = vmatprep.mubr.bf16.mxu1 %v14054_v2 }
 0x44a   :  { %4366 = vmatprep.subr.bf16.mxu1 %v12500_v29 }
 0x44d   :  { %4367 = vmatpush1.bf16.msra.mxu1 %v12498_v4 }
 0x44e   :  { %4600 = vmatprep.subr.bf16.mxu1 %v12366_v21  ;;  %v10262_v21 = vld [vmem:[%s13951_s5 + $0x48] sm:$0xff]  }
 0x450   :  { %8734 = vmatmul.mubr.msk.bf16.gmra.mrb[172].mxu1 %vm222_vm0, %v10260_v24 }
 0x451   :  { %4388 = vmatprep.mubr.bf16.mxu1 %v14054_v2 }
 0x458   :  { %8747 = vmatmul.mubr.msk.bf16.vlgmr.msra.gmra.mrb[176].mxu1 %vm222_vm0, %v10261_v59 }
 0x459   :  { %4601 = vmatpush1.bf16.msra.mxu1 %v12360_v52  ;;  %4398 = vmatprep.mubr.bf16.mxu1 %v14054_v2  ;;  %v10263_v52 = vld [vmem:[%s13951_s5 + $0x50] sm:$0xff]  }
 0x45a   :  { %4602 = vmatprep.subr.bf16.mxu1 %v12394_v14  ;;  %v10329_v14 = vld [vmem:[%s13951_s5 + $0x70] sm:$0xff]  }
 0x45b   :  { %8765 = vmatmul.mubr.msk.bf16.gmra.mrb[200].mxu0 %vm222_vm0, %v10329_v14 }
 0x45c   :  { %4540 = vmatprep.mubr.bf16.mxu0 %v14054_v2 }
 0x45d   :  { %4603 = vmatpush1.bf16.msra.mxu1 %v12388_v39  ;;  %v10270_v39 = vld [vmem:[%s13954_s7 + $0xf4] ss:$8 sps:$4 sm:$0xff]  }
 0x45e   :  { %4604 = vmatprep.subr.bf16.mxu1 %v12422_v13  ;;  %v10330_v13 = vld [vmem:[%s13953_s6 + $0x190] ss:$8 sps:$4 sm:$0xff]  }
 0x460   :  { %8748 = vmatmul.mubr.msk.bf16.gmra.mrb[180].mxu1 %vm222_vm0, %v10262_v21 }
 0x461   :  { %4605 = vmatpush1.bf16.msra.mxu1 %v12416_v33  ;;  %4408 = vmatprep.mubr.bf16.mxu1 %v14054_v2  ;;  %v10264_v33 = vld [vmem:[%s13951_s5 + $0x58] sm:$0xff]  }
 0x462   :  { %4606 = vmatprep.subr.bf16.mxu1 %v12450_v8  ;;  %v10272_v8 = vld [vmem:[%s13951_s5 + $0x80] sm:$0xff]  }
 0x463   :  { %8766 = vmatmul.mubr.msk.bf16.gmra.mrb[204].mxu0 %vm222_vm0, %v10343_v26 }
 0x465   :  { %4607 = vmatpush1.bf16.msra.mxu1 %v12444_v34  ;;  %v10332_v34 = vld [vmem:[%s13953_s6 + $0x194] ss:$8 sps:$4 sm:$0xff]  }
 0x466   :  { %4608 = vmatprep.subr.bf16.mxu1 %v12478_v38  ;;  %4955 = vmatprep.subr.bf16.mxu0 %v10332_v34  ;;  %v10278_v38 = vld [vmem:[%s13954_s7 + $0x104] ss:$8 sps:$4 sm:$0xff]  }
 0x467   :  { %4956 = vmatpush1.bf16.msra.mxu0 %v10330_v13 }
 0x468   :  { %8749 = vmatmul.mubr.msk.bf16.gmra.mrb[184].mxu1 %vm222_vm0, %v10263_v52  ;;  %4957 = vmatprep.subr.bf16.mxu0 %v10338_v60 }
 0x469   :  { %4609 = vmatpush1.bf16.msra.mxu1 %v12472_v15  ;;  %4418 = vmatprep.mubr.bf16.mxu1 %v14054_v2  ;;  %v10268_v15 = vld [vmem:[%s13954_s7 + $0xf0] ss:$8 sps:$4 sm:$0xff]  }
 0x46a   :  { %4610 = vmatprep.subr.bf16.mxu1 %v12500_v29  ;;  %v10359_v29 = vld [vmem:[%s13953_s6 + $0x1d4] ss:$8 sps:$4 sm:$0xff]  }
 0x46b   :  { %4958 = vmatpush1.bf16.msra.mxu0 %v10336_v18 }
 0x46c   :  { %4959 = vmatprep.subr.bf16.mxu0 %v10346_v62  ;;  %v10363_v62 = vld [vmem:[%s13953_s6] ss:$8 sps:$4 sm:$0xff]  }
 0x46d   :  { %4611 = vmatpush1.bf16.msra.mxu1 %v12498_v4  ;;  %v10356_v4 = vld [vmem:[%s13951_s5 + $0x98] sm:$0xff]  }
 0x46e   :  { %5424 = vmatprep.subr.bf16.mxu1 %v10270_v39 }
 0x46f   :  { %4960 = vmatpush1.bf16.msra.mxu0 %v10344_v28 }
 0x470   :  { %8750 = vmatmul.mubr.msk.bf16.gmra.mrb[188].mxu1 %vm222_vm0, %v10264_v33  ;;  %4961 = vmatprep.subr.bf16.mxu0 %v10352_v40 }
 0x471   :  { %4632 = vmatprep.mubr.bf16.mxu1 %v14054_v2 }
 0x473   :  { %4962 = vmatpush1.bf16.msra.mxu0 %v10350_v61  ;;  %v10372_v61 = vld [vmem:[%s13954_s7 + $0x10] ss:$8 sps:$4 sm:$0xff]  }
 0x474   :  { %4963 = vmatprep.subr.bf16.mxu0 %v10359_v29 }
 0x477   :  { %4964 = vmatpush1.bf16.msra.mxu0 %v10357_v49 }
 0x478   :  { %8779 = vmatmul.mubr.msk.bf16.vlgmr.msra.gmra.mrb[192].mxu1 %vm222_vm0, %v10272_v8  ;;  %5170 = vmatprep.subr.bf16.mxu0 %v10365_v12  ;;  %v10378_v12 = vld [vmem:[%s13954_s7 + $0x20] ss:$8 sps:$4 sm:$0xff]  }
 0x479   :  { %5425 = vmatpush1.bf16.msra.mxu1 %v10268_v15  ;;  %4642 = vmatprep.mubr.bf16.mxu1 %v14054_v2 }
 0x47a   :  { %5426 = vmatprep.subr.bf16.mxu1 %v10278_v38 }
 0x47d   :  { %5427 = vmatpush1.bf16.msra.mxu1 %v10276_v17 }
 0x47e   :  { %5428 = vmatprep.subr.bf16.mxu1 %v10284_v63 }
 0x480   :  { %8780 = vmatmul.mubr.msk.bf16.gmra.mrb[196].mxu1 %vm222_vm0, %v10328_v3 }
 0x481   :  { %5429 = vmatpush1.bf16.msra.mxu1 %v10282_v43  ;;  %4652 = vmatprep.mubr.bf16.mxu1 %v14054_v2 }
 0x482   :  { %5430 = vmatprep.subr.bf16.mxu1 %v10290_v58 }
 0x485   :  { %5431 = vmatpush1.bf16.msra.mxu1 %v10288_v31  ;;  %v10366_v31 = vld [vmem:[%s13954_s7] ss:$8 sps:$4 sm:$0xff]  }
 0x486   :  { %5432 = vmatprep.subr.bf16.mxu1 %v10296_v25  ;;  %v10371_v25 = vld [vmem:[%s13953_s6 + $0x14] ss:$8 sps:$4 sm:$0xff]  }
 0x488   :  { %8781 = vmatmul.mubr.msk.bf16.gmra.mrb[200].mxu1 %vm222_vm0, %v10342_v42  ;;  %v10374_v42 = vld [vmem:[%s13954_s7 + $0x14] ss:$8 sps:$4 sm:$0xff]  }
 0x489   :  { %5433 = vmatpush1.bf16.msra.mxu1 %v10294_v20  ;;  %4662 = vmatprep.mubr.bf16.mxu1 %v14054_v2 }
 0x48a   :  { %5434 = vmatprep.subr.bf16.mxu1 %v10302_v36  ;;  %v10369_v36 = vld [vmem:[%s13953_s6 + $0x10] ss:$8 sps:$4 sm:$0xff]  }
 0x48d   :  { %5435 = vmatpush1.bf16.msra.mxu1 %v10300_v55  ;;  %v10377_v55 = vld [vmem:[%s13953_s6 + $0x24] ss:$8 sps:$4 sm:$0xff]  }
 0x48e   :  { %5436 = vmatprep.subr.bf16.mxu1 %v10308_v41  ;;  %v10380_v41 = vld [vmem:[%s13954_s7 + $0x24] ss:$8 sps:$4 sm:$0xff]  }
 0x490   :  { %8782 = vmatmul.mubr.msk.bf16.gmra.mrb[204].mxu1 %vm222_vm0, %v10356_v4 }
 0x491   :  { %5437 = vmatpush1.bf16.msra.mxu1 %v10306_v27 }
 0x492   :  { %5438 = vmatprep.subr.bf16.mxu1 %v10314_v37  ;;  %v10375_v37 = vld [vmem:[%s13953_s6 + $0x20] ss:$8 sps:$4 sm:$0xff]  }
 0x495   :  { %5439 = vmatpush1.bf16.msra.mxu1 %v10312_v1  ;;  %v10383_v1 = vld [vmem:[%s13953_s6 + $0x34] ss:$8 sps:$4 sm:$0xff]  }
 0x496   :  { %5440 = vmatprep.subr.bf16.mxu1 %v10321_v56  ;;  %v10386_v56 = vld [vmem:[%s13954_s7 + $0x34] ss:$8 sps:$4 sm:$0xff]  }
 0x499   :  { %5441 = vmatpush1.bf16.msra.mxu1 %v10319_v30 }
 0x49a   :  { %5442 = vmatprep.subr.bf16.mxu1 %v10327_v0  ;;  %v10381_v0 = vld [vmem:[%s13953_s6 + $0x30] ss:$8 sps:$4 sm:$0xff]  }
 0x49d   :  { %5443 = vmatpush1.bf16.msra.mxu1 %v10325_v50  ;;  %v10384_v50 = vld [vmem:[%s13954_s7 + $0x30] ss:$8 sps:$4 sm:$0xff]  }
 0x49e   :  { %5444 = vmatprep.subr.bf16.mxu1 %v10335_v6 }
 0x4a1   :  { %5445 = vmatpush1.bf16.msra.mxu1 %v10333_v11  ;;  %v10389_v11 = vld [vmem:[%s13953_s6 + $0x44] ss:$8 sps:$4 sm:$0xff]  }
 0x4a2   :  { %5446 = vmatprep.subr.bf16.mxu1 %v10341_v48  ;;  %v10392_v48 = vld [vmem:[%s13954_s7 + $0x44] ss:$8 sps:$4 sm:$0xff]  }
 0x4a5   :  { %5447 = vmatpush1.bf16.msra.mxu1 %v10339_v16 }
 0x4a6   :  { %5448 = vmatprep.subr.bf16.mxu1 %v10349_v45 }
 0x4a9   :  { %5449 = vmatpush1.bf16.msra.mxu1 %v10347_v9 }
 0x4aa   :  { %5450 = vmatprep.subr.bf16.mxu1 %v10355_v44 }
 0x4ad   :  { %5451 = vmatpush1.bf16.msra.mxu1 %v10353_v46  ;;  %v10387_v46 = vld [vmem:[%s13953_s6 + $0x40] ss:$8 sps:$4 sm:$0xff]  }
 0x4ae   :  { %5452 = vmatprep.subr.bf16.mxu1 %v10362_v22  ;;  %v10390_v22 = vld [vmem:[%s13954_s7 + $0x40] ss:$8 sps:$4 sm:$0xff]  }
 0x4b1   :  { %5453 = vmatpush1.bf16.msra.mxu1 %v10360_v10  ;;  %v10395_v10 = vld [vmem:[%s13953_s6 + $0x54] ss:$8 sps:$4 sm:$0xff]  }
 0x4b2   :  { %5647 = vmatprep.subr.bf16.mxu1 %v10368_v5  ;;  %v10398_v5 = vld [vmem:[%s13954_s7 + $0x54] ss:$8 sps:$4 sm:$0xff]  }
 0x4eb   :  { %v4146_v57 = vpop.f32.mrb[144].mxu1 }
 0x4ec   :  { %v4148_v53 = vpop.f32.mrb[145].mxu1 }
 0x4ed   :  { %v4150_v35 = vpop.f32.mrb[146].mxu1 }
 0x4ee   :  { %v12826_v23 = vpack.c.bf16 %v4150_v35, %v4146_v57  ;;  %v4152_v32 = vpop.f32.mrb[147].mxu1  ;;  %v10396_v35 = vld [vmem:[%s13954_s7 + $0x50] ss:$8 sps:$4 sm:$0xff]  }
 0x4ef   :  { %v12828_v19 = vpack.c.bf16 %v4152_v32, %v4148_v53  ;;  %v10393_v53 = vld [vmem:[%s13953_s6 + $0x50] ss:$8 sps:$4 sm:$0xff]  }
 0x4f3   :  { %v4156_v54 = vpop.f32.mrb[148].mxu1 }
 0x4f4   :  { %v4158_v51 = vpop.f32.mrb[149].mxu1 }
 0x4f5   :  { %v4160_v47 = vpop.f32.mrb[150].mxu1 }
 0x4f6   :  { %v12830_v24 = vpack.c.bf16 %v4160_v47, %v4156_v54  ;;  %v4162_v59 = vpop.f32.mrb[151].mxu1  ;;  %v10401_v54 = vld [vmem:[%s13953_s6 + $0x64] ss:$8 sps:$4 sm:$0xff]  }
 0x4f7   :  { %v12832_v21 = vpack.c.bf16 %v4162_v59, %v4158_v51  ;;  %v10404_v51 = vld [vmem:[%s13954_s7 + $0x64] ss:$8 sps:$4 sm:$0xff]  }
 0x4fb   :  { %v4166_v52 = vpop.f32.mrb[152].mxu1 }
 0x4fc   :  { %v4168_v39 = vpop.f32.mrb[153].mxu1 }
 0x4fd   :  { %v4170_v14 = vpop.f32.mrb[154].mxu1 }
 0x4fe   :  { %v12834_v33 = vpack.c.bf16 %v4170_v14, %v4166_v52  ;;  %v4172_v13 = vpop.f32.mrb[155].mxu1  ;;  %v10399_v14 = vld [vmem:[%s13953_s6 + $0x60] ss:$8 sps:$4 sm:$0xff]  }
 0x4ff   :  { %v12836_v34 = vpack.c.bf16 %v4172_v13, %v4168_v39  ;;  %v10402_v13 = vld [vmem:[%s13954_s7 + $0x60] ss:$8 sps:$4 sm:$0xff]  }
 0x503   :  { %v4176_v8 = vpop.f32.mrb[156].mxu1 }
 0x504   :  { %v4178_v15 = vpop.f32.mrb[157].mxu1 }
 0x505   :  { %v4180_v38 = vpop.f32.mrb[158].mxu1 }
 0x506   :  { %v12838_v18 = vpack.c.bf16 %v4180_v38, %v4176_v8  ;;  %v4182_v60 = vpop.f32.mrb[159].mxu1  ;;  %v4512_v8 = vpop.f32.mrb[192].mxu0  ;;  %v10410_v38 = vld [vmem:[%s13954_s7 + $0x74] ss:$8 sps:$4 sm:$0xff]  }
 0x507   :  { %v12840_v17 = vpack.c.bf16 %v4182_v60, %v4178_v15  ;;  %v10407_v15 = vld [vmem:[%s13953_s6 + $0x74] ss:$8 sps:$4 sm:$0xff]   ;;  %v4514_v60 = vpop.f32.mrb[193].mxu0 }
 0x50b   :  { %v4268_v63 = vpop.f32.mrb[160].mxu1 }
 0x50c   :  { %v4270_v26 = vpop.f32.mrb[161].mxu1 }
 0x50d   :  { %v4272_v3 = vpop.f32.mrb[162].mxu1 }
 0x50e   :  { %v4307_v43 = vpack.c.bf16 %v4272_v3, %v4268_v63  ;;  %v4274_v58 = vpop.f32.mrb[163].mxu1  ;;  %v4516_v63 = vpop.f32.mrb[194].mxu0  ;;  %v10408_v3 = vld [vmem:[%s13954_s7 + $0x70] ss:$8 sps:$4 sm:$0xff]  }
 0x50f   :  { %v4308_v28 = vpack.c.bf16 %v4274_v58, %v4270_v26  ;;  %v10405_v26 = vld [vmem:[%s13953_s6 + $0x70] ss:$8 sps:$4 sm:$0xff]   ;;  %v4518_v58 = vpop.f32.mrb[195].mxu0 }
 0x511   :  { %8843 = vmatprep.mubr.msk.bf16.mxu0 %vm4922_vm3, %v4308_v28  ;;  %8941 = vmatprep.mubr.msk.bf16.mxu1 %vm4922_vm3, %v4308_v28  ;;  %v10413_v28 = vld [vmem:[%s13953_s6 + $0x84] ss:$8 sps:$4 sm:$0xff]  }
 0x512   :  { %4968 = vmatmul.mubr.bf16.vlgmr.msra.gmra.mrb[208].mxu0 %v4307_v43  ;;  %5457 = vmatmul.mubr.bf16.vlgmr.msra.gmra.mrb[208].mxu1 %v4307_v43 }
 0x513   :  { %5171 = vmatpush1.bf16.msra.mxu0 %v10363_v62  ;;  %5648 = vmatpush1.bf16.msra.mxu1 %v10366_v31  ;;  %v4278_v20 = vpop.f32.mrb[164].mxu1  ;;  %v10416_v62 = vld [vmem:[%s13954_s7 + $0x84] ss:$8 sps:$4 sm:$0xff]  }
 0x514   :  { %v4280_v40 = vpop.f32.mrb[165].mxu1  ;;  %5172 = vmatprep.subr.bf16.mxu0 %v10371_v25  ;;  %5649 = vmatprep.subr.bf16.mxu1 %v10374_v42  ;;  %v12950_v25 = vpack.c.bf16 %v4516_v63, %v4512_v8  ;;  %v12952_v42 = vpack.c.bf16 %v4518_v58, %v4514_v60  ;;  %v10447_v63 = vld [vmem:[%s13953_s6 + $0xe0] ss:$8 sps:$4 sm:$0xff]   ;;  %v10455_v58 = vld [vmem:[%s13953_s6 + $0x1e4] ss:$8 sps:$4 sm:$0xff]  }
 0x515   :  { %v4282_v4 = vpop.f32.mrb[166].mxu1 }
 0x516   :  { %v4309_v29 = vpack.c.bf16 %v4282_v4, %v4278_v20  ;;  %v4284_v27 = vpop.f32.mrb[167].mxu1  ;;  %v10422_v4 = vld [vmem:[%s13954_s7 + $0x94] ss:$8 sps:$4 sm:$0xff]  }
 0x517   :  { %v4310_v49 = vpack.c.bf16 %v4284_v27, %v4280_v40  ;;  %5173 = vmatpush1.bf16.msra.mxu0 %v10369_v36  ;;  %5650 = vmatpush1.bf16.msra.mxu1 %v10372_v61  ;;  %v10414_v40 = vld [vmem:[%s13954_s7 + $0x80] ss:$8 sps:$4 sm:$0xff]   ;;  %v10420_v27 = vld [vmem:[%s13954_s7 + $0x90] ss:$8 sps:$4 sm:$0xff]  }
 0x518   :  { %5174 = vmatprep.subr.bf16.mxu0 %v10377_v55  ;;  %5651 = vmatprep.subr.bf16.mxu1 %v10380_v41  ;;  %v10419_v41 = vld [vmem:[%s13953_s6 + $0x94] ss:$8 sps:$4 sm:$0xff]  }
 0x519   :  { %8844 = vmatprep.mubr.msk.bf16.mxu0 %vm4922_vm3, %v4310_v49  ;;  %8942 = vmatprep.mubr.msk.bf16.mxu1 %vm4922_vm3, %v4310_v49 }
 0x51a   :  { %4978 = vmatmul.mubr.bf16.gmra.mrb[212].mxu0 %v4309_v29  ;;  %5467 = vmatmul.mubr.bf16.gmra.mrb[212].mxu1 %v4309_v29  ;;  %v10417_v29 = vld [vmem:[%s13953_s6 + $0x90] ss:$8 sps:$4 sm:$0xff]  }
 0x51b   :  { %5175 = vmatpush1.bf16.msra.mxu0 %v10375_v37  ;;  %5652 = vmatpush1.bf16.msra.mxu1 %v10378_v12  ;;  %v4288_v30 = vpop.f32.mrb[168].mxu1  ;;  %v10425_v37 = vld [vmem:[%s13953_s6 + $0xa4] ss:$8 sps:$4 sm:$0xff]  }
 0x51c   :  { %v4290_v6 = vpop.f32.mrb[169].mxu1  ;;  %5176 = vmatprep.subr.bf16.mxu0 %v10383_v1  ;;  %5653 = vmatprep.subr.bf16.mxu1 %v10386_v56  ;;  %v10428_v12 = vld [vmem:[%s13954_s7 + $0xa4] ss:$8 sps:$4 sm:$0xff]  }
 0x51d   :  { %v4292_v16 = vpop.f32.mrb[170].mxu1 }
 0x51e   :  { %v4311_v45 = vpack.c.bf16 %v4292_v16, %v4288_v30  ;;  %v4294_v9 = vpop.f32.mrb[171].mxu1  ;;  %v10434_v16 = vld [vmem:[%s13954_s7 + $0xb4] ss:$8 sps:$4 sm:$0xff]  }
 0x51f   :  { %v4312_v44 = vpack.c.bf16 %v4294_v9, %v4290_v6  ;;  %5177 = vmatpush1.bf16.msra.mxu0 %v10381_v0  ;;  %5654 = vmatpush1.bf16.msra.mxu1 %v10384_v50  ;;  %v10423_v50 = vld [vmem:[%s13953_s6 + $0xa0] ss:$8 sps:$4 sm:$0xff]   ;;  %v10432_v9 = vld [vmem:[%s13954_s7 + $0xb0] ss:$8 sps:$4 sm:$0xff]  }
 0x520   :  { %5178 = vmatprep.subr.bf16.mxu0 %v10389_v11  ;;  %5655 = vmatprep.subr.bf16.mxu1 %v10392_v48  ;;  %v10426_v6 = vld [vmem:[%s13954_s7 + $0xa0] ss:$8 sps:$4 sm:$0xff]   ;;  %v10431_v48 = vld [vmem:[%s13953_s6 + $0xb4] ss:$8 sps:$4 sm:$0xff]  }
 0x521   :  { %8845 = vmatprep.mubr.msk.bf16.mxu0 %vm4922_vm3, %v4312_v44  ;;  %8943 = vmatprep.mubr.msk.bf16.mxu1 %vm4922_vm3, %v4312_v44 }
 0x522   :  { %4988 = vmatmul.mubr.bf16.gmra.mrb[216].mxu0 %v4311_v45  ;;  %5477 = vmatmul.mubr.bf16.gmra.mrb[216].mxu1 %v4311_v45  ;;  %v10429_v45 = vld [vmem:[%s13953_s6 + $0xb0] ss:$8 sps:$4 sm:$0xff]  }
 0x523   :  { %5179 = vmatpush1.bf16.msra.mxu0 %v10387_v46  ;;  %5656 = vmatpush1.bf16.msra.mxu1 %v10390_v22  ;;  %v4298_v57 = vpop.f32.mrb[172].mxu1  ;;  %v10437_v46 = vld [vmem:[%s13953_s6 + $0xc4] ss:$8 sps:$4 sm:$0xff]  }
 0x524   :  { %v4300_v32 = vpop.f32.mrb[173].mxu1  ;;  %5180 = vmatprep.subr.bf16.mxu0 %v10395_v10  ;;  %5657 = vmatprep.subr.bf16.mxu1 %v10398_v5  ;;  %v10440_v22 = vld [vmem:[%s13954_s7 + $0xc4] ss:$8 sps:$4 sm:$0xff]  }
 0x525   :  { %v4302_v47 = vpop.f32.mrb[174].mxu1 }
 0x526   :  { %v4313_v59 = vpack.c.bf16 %v4302_v47, %v4298_v57  ;;  %v4304_v52 = vpop.f32.mrb[175].mxu1  ;;  %v10446_v47 = vld [vmem:[%s13954_s7 + $0xd4] ss:$8 sps:$4 sm:$0xff]  }
 0x527   :  { %v4314_v39 = vpack.c.bf16 %v4304_v52, %v4300_v32  ;;  %5181 = vmatpush1.bf16.msra.mxu0 %v10393_v53  ;;  %5658 = vmatpush1.bf16.msra.mxu1 %v10396_v35  ;;  %v10435_v35 = vld [vmem:[%s13953_s6 + $0xc0] ss:$8 sps:$4 sm:$0xff]   ;;  %v10444_v52 = vld [vmem:[%s13954_s7 + $0xd0] ss:$8 sps:$4 sm:$0xff]  }
 0x528   :  { %5182 = vmatprep.subr.bf16.mxu0 %v10401_v54  ;;  %5659 = vmatprep.subr.bf16.mxu1 %v10404_v51  ;;  %v10438_v32 = vld [vmem:[%s13954_s7 + $0xc0] ss:$8 sps:$4 sm:$0xff]   ;;  %v10443_v51 = vld [vmem:[%s13953_s6 + $0xd4] ss:$8 sps:$4 sm:$0xff]  }
 0x529   :  { %8846 = vmatprep.mubr.msk.bf16.mxu0 %vm4922_vm3, %v4314_v39  ;;  %8944 = vmatprep.mubr.msk.bf16.mxu1 %vm4922_vm3, %v4314_v39 }
 0x52a   :  { %4998 = vmatmul.mubr.bf16.gmra.mrb[220].mxu0 %v4313_v59  ;;  %5487 = vmatmul.mubr.bf16.gmra.mrb[220].mxu1 %v4313_v59  ;;  %v10441_v59 = vld [vmem:[%s13953_s6 + $0xd0] ss:$8 sps:$4 sm:$0xff]  }
 0x52b   :  { %5183 = vmatpush1.bf16.msra.mxu0 %v10399_v14  ;;  %5660 = vmatpush1.bf16.msra.mxu1 %v10402_v13  ;;  %v4390_v43 = vpop.f32.mrb[176].mxu1  ;;  %v10449_v14 = vld [vmem:[%s13953_s6 + $0xe4] ss:$8 sps:$4 sm:$0xff]  }
 0x52c   :  { %8877 = vmatprep.mubr.msk.bf16.mxu0 %vm4922_vm3, %v12828_v19  ;;  %8975 = vmatprep.mubr.msk.bf16.mxu1 %vm4922_vm3, %v12828_v19  ;;  %v4392_v31 = vpop.f32.mrb[177].mxu1  ;;  %v10411_v19 = vld [vmem:[%s13953_s6 + $0x80] ss:$8 sps:$4 sm:$0xff]   ;;  %v10452_v13 = vld [vmem:[%s13954_s7 + $0xe4] ss:$8 sps:$4 sm:$0xff]  }
 0x52d   :  { %5184 = vmatprep.subr.bf16.mxu0 %v10407_v15  ;;  %5661 = vmatprep.subr.bf16.mxu1 %v10410_v38  ;;  %v4394_v20 = vpop.f32.mrb[178].mxu1 }
 0x52e   :  { %v12954_v36 = vpack.c.bf16 %v4394_v20, %v4390_v43  ;;  %v4396_v61 = vpop.f32.mrb[179].mxu1  ;;  %v4522_v43 = vpop.f32.mrb[196].mxu0 }
 0x52f   :  { %5185 = vmatpush1.bf16.msra.mxu0 %v10405_v26  ;;  %5662 = vmatpush1.bf16.msra.mxu1 %v10408_v3  ;;  %v12962_v55 = vpack.c.bf16 %v4396_v61, %v4392_v31  ;;  %v10450_v26 = vld [vmem:[%s13954_s7 + $0xe0] ss:$8 sps:$4 sm:$0xff]  }
 0x530   :  { %5186 = vmatprep.subr.bf16.mxu0 %v10413_v28  ;;  %5663 = vmatprep.subr.bf16.mxu1 %v10416_v62  ;;  %v10458_v28 = vld [vmem:[%s13954_s7 + $0x1e4] ss:$8 sps:$4 sm:$0xff]   ;;  %v4524_v62 = vpop.f32.mrb[197].mxu0 }
 0x531   :  { %v4526_v31 = vpop.f32.mrb[198].mxu0 }
 0x532   :  { %v13054_v20 = vpack.c.bf16 %v4526_v31, %v4522_v43  ;;  %v4528_v61 = vpop.f32.mrb[199].mxu0  ;;  %v10477_v43 = vld [vmem:[%s13953_s6 + $0x220] ss:$8 sps:$4 sm:$0xff]   ;;  %v10488_v31 = vld [vmem:[%s13954_s7 + $0x234] ss:$8 sps:$4 sm:$0xff]  }
 0x533   :  { %5187 = vmatpush1.bf16.msra.mxu0 %v10411_v19  ;;  %5664 = vmatpush1.bf16.msra.mxu1 %v10414_v40  ;;  %v4400_v49 = vpop.f32.mrb[180].mxu1  ;;  %v13056_v40 = vpack.c.bf16 %v4528_v61, %v4524_v62  ;;  %v10485_v62 = vld [vmem:[%s13953_s6 + $0x234] ss:$8 sps:$4 sm:$0xff]  }
 0x534   :  { %5188 = vmatprep.subr.bf16.mxu0 %v10419_v41  ;;  %5665 = vmatprep.subr.bf16.mxu1 %v10422_v4  ;;  %v4402_v1 = vpop.f32.mrb[181].mxu1  ;;  %v10453_v41 = vld [vmem:[%s13953_s6 + $0x1e0] ss:$8 sps:$4 sm:$0xff]  }
 0x535   :  { %v4404_v56 = vpop.f32.mrb[182].mxu1  ;;  %v10456_v4 = vld [vmem:[%s13954_s7 + $0x1e0] ss:$8 sps:$4 sm:$0xff]  }
 0x536   :  { %v12982_v30 = vpack.c.bf16 %v4404_v56, %v4400_v49  ;;  %v4406_v0 = vpop.f32.mrb[183].mxu1  ;;  %v10464_v49 = vld [vmem:[%s13954_s7 + $0x1f4] ss:$8 sps:$4 sm:$0xff]  }
 0x537   :  { %5189 = vmatpush1.bf16.msra.mxu0 %v10417_v29  ;;  %5666 = vmatpush1.bf16.msra.mxu1 %v10420_v27  ;;  %v12990_v11 = vpack.c.bf16 %v4406_v0, %v4402_v1  ;;  %v10461_v27 = vld [vmem:[%s13953_s6 + $0x1f4] ss:$8 sps:$4 sm:$0xff]   ;;  %v4532_v0 = vpop.f32.mrb[200].mxu0 }
 0x538   :  { %5190 = vmatprep.subr.bf16.mxu0 %v10425_v37  ;;  %5667 = vmatprep.subr.bf16.mxu1 %v10428_v12 }
 0x53b   :  { %5191 = vmatpush1.bf16.msra.mxu0 %v10423_v50  ;;  %5668 = vmatpush1.bf16.msra.mxu1 %v10426_v6  ;;  %v4410_v44 = vpop.f32.mrb[184].mxu1  ;;  %v10459_v50 = vld [vmem:[%s13953_s6 + $0x1f0] ss:$8 sps:$4 sm:$0xff]   ;;  %v4534_v6 = vpop.f32.mrb[201].mxu0 }
 0x53c   :  { %5192 = vmatprep.subr.bf16.mxu0 %v10431_v48  ;;  %5669 = vmatprep.subr.bf16.mxu1 %v10434_v16  ;;  %v4412_v10 = vpop.f32.mrb[185].mxu1  ;;  %v10470_v48 = vld [vmem:[%s13954_s7 + $0x204] ss:$8 sps:$4 sm:$0xff]   ;;  %v4536_v16 = vpop.f32.mrb[202].mxu0 }
 0x53d   :  { %v4414_v5 = vpop.f32.mrb[186].mxu1 }
 0x53e   :  { %v13010_v57 = vpack.c.bf16 %v4414_v5, %v4410_v44  ;;  %v4416_v53 = vpop.f32.mrb[187].mxu1 }
 0x53f   :  { %5193 = vmatpush1.bf16.msra.mxu0 %v10429_v45  ;;  %5670 = vmatpush1.bf16.msra.mxu1 %v10432_v9  ;;  %v13018_v54 = vpack.c.bf16 %v4416_v53, %v4412_v10  ;;  %v13092_v45 = vpack.c.bf16 %v4536_v16, %v4532_v0  ;;  %v4538_v9 = vpop.f32.mrb[203].mxu0  ;;  %v10468_v10 = vld [vmem:[%s13954_s7 + $0x200] ss:$8 sps:$4 sm:$0xff]   ;;  %v10473_v53 = vld [vmem:[%s13953_s6 + $0x214] ss:$8 sps:$4 sm:$0xff]  }
 0x540   :  { %5194 = vmatprep.subr.bf16.mxu0 %v10437_v46  ;;  %5671 = vmatprep.subr.bf16.mxu1 %v10440_v22  ;;  %v13094_v44 = vpack.c.bf16 %v4538_v9, %v4534_v6  ;;  %v10465_v22 = vld [vmem:[%s13953_s6 + $0x200] ss:$8 sps:$4 sm:$0xff]   ;;  %v10495_v16 = vld [vmem:[%s13953_s6 + $0x250] ss:$8 sps:$4 sm:$0xff]  }
 0x543   :  { %5195 = vmatpush1.bf16.msra.mxu0 %v10435_v35  ;;  %5672 = vmatpush1.bf16.msra.mxu1 %v10438_v32  ;;  %v4420_v39 = vpop.f32.mrb[188].mxu1  ;;  %v10476_v35 = vld [vmem:[%s13954_s7 + $0x214] ss:$8 sps:$4 sm:$0xff]  }
 0x544   :  { %5196 = vmatprep.subr.bf16.mxu0 %v10443_v51  ;;  %5673 = vmatprep.subr.bf16.mxu1 %v10446_v47  ;;  %v4422_v8 = vpop.f32.mrb[189].mxu1 }
 0x545   :  { %v4424_v15 = vpop.f32.mrb[190].mxu1 }
 0x546   :  { %v13038_v38 = vpack.c.bf16 %v4424_v15, %v4420_v39  ;;  %v4426_v60 = vpop.f32.mrb[191].mxu1  ;;  %v10471_v39 = vld [vmem:[%s13953_s6 + $0x210] ss:$8 sps:$4 sm:$0xff]  }
 0x547   :  { %5197 = vmatpush1.bf16.msra.mxu0 %v10441_v59  ;;  %5674 = vmatpush1.bf16.msra.mxu1 %v10444_v52  ;;  %v13046_v3 = vpack.c.bf16 %v4426_v60, %v4422_v8  ;;  %v4542_v59 = vpop.f32.mrb[204].mxu0 }
 0x548   :  { %5198 = vmatprep.subr.bf16.mxu0 %v10449_v14  ;;  %5675 = vmatprep.subr.bf16.mxu1 %v10452_v13  ;;  %v4544_v14 = vpop.f32.mrb[205].mxu0  ;;  %v10482_v13 = vld [vmem:[%s13954_s7 + $0x224] ss:$8 sps:$4 sm:$0xff]  }
 0x549   :  { %v4546_v8 = vpop.f32.mrb[206].mxu0 }
 0x54a   :  { %v13130_v15 = vpack.c.bf16 %v4546_v8, %v4542_v59  ;;  %v4548_v60 = vpop.f32.mrb[207].mxu0  ;;  %v10518_v59 = vld [vmem:[%s13954_s7 + $0x284] ss:$8 sps:$4 sm:$0xff]   ;;  %v10522_v8 = vld [vmem:[%s13954_s7 + $0x290] ss:$8 sps:$4 sm:$0xff]  }
 0x54b   :  { %5199 = vmatpush1.bf16.msra.mxu0 %v10447_v63  ;;  %5676 = vmatpush1.bf16.msra.mxu1 %v10450_v26  ;;  %v4634_v19 = vpop.f32.mrb[192].mxu1  ;;  %v13132_v63 = vpack.c.bf16 %v4548_v60, %v4544_v14  ;;  %v10521_v14 = vld [vmem:[%s13953_s6 + $0x294] ss:$8 sps:$4 sm:$0xff]   ;;  %v10527_v60 = vld [vmem:[%s13953_s6 + $0x2a4] ss:$8 sps:$4 sm:$0xff]  }
 0x54c   :  { %5913 = vmatprep.subr.bf16.mxu0 %v10455_v58  ;;  %6183 = vmatprep.subr.bf16.mxu1 %v10458_v28  ;;  %v4636_v29 = vpop.f32.mrb[193].mxu1  ;;  %v10480_v58 = vld [vmem:[%s13954_s7 + $0x220] ss:$8 sps:$4 sm:$0xff]  }
 0x54d   :  { %v4638_v37 = vpop.f32.mrb[194].mxu1 }
 0x54e   :  { %5203 = vmatmul.mubr.bf16.vlgmr.msra.gmra.mrb[208].mxu0 %v12826_v23  ;;  %5680 = vmatmul.mubr.bf16.vlgmr.msra.gmra.mrb[208].mxu1 %v12826_v23  ;;  %v13072_v12 = vpack.c.bf16 %v4638_v37, %v4634_v19  ;;  %v4640_v1 = vpop.f32.mrb[195].mxu1  ;;  %v10462_v23 = vld [vmem:[%s13954_s7 + $0x1f0] ss:$8 sps:$4 sm:$0xff]   ;;  %v10489_v37 = vld [vmem:[%s13953_s6 + $0x240] ss:$8 sps:$4 sm:$0xff]  }
 0x54f   :  { %8878 = vmatprep.mubr.msk.bf16.mxu0 %vm4922_vm3, %v12832_v21  ;;  %8976 = vmatprep.mubr.msk.bf16.mxu1 %vm4922_vm3, %v12832_v21  ;;  %v13078_v56 = vpack.c.bf16 %v4640_v1, %v4636_v29  ;;  %v10467_v21 = vld [vmem:[%s13953_s6 + $0x204] ss:$8 sps:$4 sm:$0xff]   ;;  %v10483_v29 = vld [vmem:[%s13953_s6 + $0x230] ss:$8 sps:$4 sm:$0xff]   ;;  %v10492_v1 = vld [vmem:[%s13954_s7 + $0x240] ss:$8 sps:$4 sm:$0xff]  }
 0x550   :  { %5914 = vmatpush1.bf16.msra.mxu0 %v10453_v41  ;;  %6184 = vmatpush1.bf16.msra.mxu1 %v10456_v4 }
 0x551   :  { %5915 = vmatprep.subr.bf16.mxu0 %v10461_v27  ;;  %6185 = vmatprep.subr.bf16.mxu1 %v10464_v49  ;;  %v10491_v27 = vld [vmem:[%s13953_s6 + $0x244] ss:$8 sps:$4 sm:$0xff]  }
 0x553   :  { %v4644_v46 = vpop.f32.mrb[196].mxu1 }
 0x554   :  { %5916 = vmatpush1.bf16.msra.mxu0 %v10459_v50  ;;  %6186 = vmatpush1.bf16.msra.mxu1 %v10462_v23  ;;  %v4646_v5 = vpop.f32.mrb[197].mxu1  ;;  %v10497_v50 = vld [vmem:[%s13953_s6 + $0x254] ss:$8 sps:$4 sm:$0xff]  }
 0x555   :  { %5917 = vmatprep.subr.bf16.mxu0 %v10467_v21  ;;  %6187 = vmatprep.subr.bf16.mxu1 %v10470_v48  ;;  %v4648_v32 = vpop.f32.mrb[198].mxu1  ;;  %v10500_v23 = vld [vmem:[%s13954_s7 + $0x254] ss:$8 sps:$4 sm:$0xff]  }
 0x556   :  { %5213 = vmatmul.mubr.bf16.gmra.mrb[212].mxu0 %v12830_v24  ;;  %5690 = vmatmul.mubr.bf16.gmra.mrb[212].mxu1 %v12830_v24  ;;  %v13110_v51 = vpack.c.bf16 %v4648_v32, %v4644_v46  ;;  %v4650_v47 = vpop.f32.mrb[199].mxu1  ;;  %v10474_v24 = vld [vmem:[%s13954_s7 + $0x210] ss:$8 sps:$4 sm:$0xff]   ;;  %v10506_v46 = vld [vmem:[%s13954_s7 + $0x264] ss:$8 sps:$4 sm:$0xff]  }
 0x557   :  { %8879 = vmatprep.mubr.msk.bf16.mxu0 %vm4922_vm3, %v12836_v34  ;;  %8977 = vmatprep.mubr.msk.bf16.mxu1 %vm4922_vm3, %v12836_v34  ;;  %v13116_v52 = vpack.c.bf16 %v4650_v47, %v4646_v5  ;;  %v10479_v34 = vld [vmem:[%s13953_s6 + $0x224] ss:$8 sps:$4 sm:$0xff]   ;;  %v10509_v5 = vld [vmem:[%s13953_s6 + $0x274] ss:$8 sps:$4 sm:$0xff]   ;;  %v10510_v32 = vld [vmem:[%s13954_s7 + $0x270] ss:$8 sps:$4 sm:$0xff]  }
 0x558   :  { %5918 = vmatpush1.bf16.msra.mxu0 %v10465_v22  ;;  %6188 = vmatpush1.bf16.msra.mxu1 %v10468_v10  ;;  %v10501_v22 = vld [vmem:[%s13953_s6 + $0x260] ss:$8 sps:$4 sm:$0xff]   ;;  %v10515_v47 = vld [vmem:[%s13953_s6 + $0x284] ss:$8 sps:$4 sm:$0xff]  }
 0x559   :  { %5919 = vmatprep.subr.bf16.mxu0 %v10473_v53  ;;  %6189 = vmatprep.subr.bf16.mxu1 %v10476_v35  ;;  %v10504_v10 = vld [vmem:[%s13954_s7 + $0x260] ss:$8 sps:$4 sm:$0xff]   ;;  %v10512_v53 = vld [vmem:[%s13954_s7 + $0x274] ss:$8 sps:$4 sm:$0xff]   ;;  %v10507_v35 = vld [vmem:[%s13953_s6 + $0x270] ss:$8 sps:$4 sm:$0xff]  }
 0x55b   :  { %v4654_v26 = vpop.f32.mrb[200].mxu1 }
 0x55c   :  { %5920 = vmatpush1.bf16.msra.mxu0 %v10471_v39  ;;  %6190 = vmatpush1.bf16.msra.mxu1 %v10474_v24  ;;  %v4656_v28 = vpop.f32.mrb[201].mxu1  ;;  %v10513_v39 = vld [vmem:[%s13953_s6 + $0x280] ss:$8 sps:$4 sm:$0xff]  }
 0x55d   :  { %5921 = vmatprep.subr.bf16.mxu0 %v10479_v34  ;;  %6191 = vmatprep.subr.bf16.mxu1 %v10482_v13  ;;  %v4658_v61 = vpop.f32.mrb[202].mxu1  ;;  %v10516_v24 = vld [vmem:[%s13954_s7 + $0x280] ss:$8 sps:$4 sm:$0xff]   ;;  %v10524_v34 = vld [vmem:[%s13954_s7 + $0x294] ss:$8 sps:$4 sm:$0xff]  }
 0x55e   :  { %5223 = vmatmul.mubr.bf16.gmra.mrb[216].mxu0 %v12834_v33  ;;  %5700 = vmatmul.mubr.bf16.gmra.mrb[216].mxu1 %v12834_v33  ;;  %v13148_v19 = vpack.c.bf16 %v4658_v61, %v4654_v26  ;;  %v4660_v41 = vpop.f32.mrb[203].mxu1  ;;  %v10486_v33 = vld [vmem:[%s13954_s7 + $0x230] ss:$8 sps:$4 sm:$0xff]   ;;  %v10530_v26 = vld [vmem:[%s13954_s7 + $0x2a4] ss:$8 sps:$4 sm:$0xff]  }
 0x55f   :  { %8880 = vmatprep.mubr.msk.bf16.mxu0 %vm4922_vm3, %v12840_v17  ;;  %8978 = vmatprep.mubr.msk.bf16.mxu1 %vm4922_vm3, %v12840_v17  ;;  %v13154_v4 = vpack.c.bf16 %v4660_v41, %v4656_v28  ;;  %v10494_v17 = vld [vmem:[%s13954_s7 + $0x244] ss:$8 sps:$4 sm:$0xff]   ;;  %v10519_v13 = vld [vmem:[%s13953_s6 + $0x290] ss:$8 sps:$4 sm:$0xff]   ;;  %v10533_v28 = vld [vmem:[%s13953_s6 + $0x2b4] ss:$8 sps:$4 sm:$0xff]  }
 0x560   :  { %5922 = vmatpush1.bf16.msra.mxu0 %v10477_v43  ;;  %6192 = vmatpush1.bf16.msra.mxu1 %v10480_v58  ;;  %v10525_v43 = vld [vmem:[%s13953_s6 + $0x2a0] ss:$8 sps:$4 sm:$0xff]   ;;  %v10534_v61 = vld [vmem:[%s13954_s7 + $0x2b0] ss:$8 sps:$4 sm:$0xff]   ;;  %v10539_v41 = vld [vmem:[%s13953_s6 + $0x2c4] ss:$8 sps:$4 sm:$0xff]  }
 0x561   :  { %5923 = vmatprep.subr.bf16.mxu0 %v10485_v62  ;;  %6193 = vmatprep.subr.bf16.mxu1 %v10488_v31  ;;  %v10528_v58 = vld [vmem:[%s13954_s7 + $0x2a0] ss:$8 sps:$4 sm:$0xff]   ;;  %v10536_v62 = vld [vmem:[%s13954_s7 + $0x2b4] ss:$8 sps:$4 sm:$0xff]   ;;  %v10531_v31 = vld [vmem:[%s13953_s6 + $0x2b0] ss:$8 sps:$4 sm:$0xff]  }
 0x563   :  { %v4664_v49 = vpop.f32.mrb[204].mxu1 }
 0x564   :  { %5924 = vmatpush1.bf16.msra.mxu0 %v10483_v29  ;;  %6194 = vmatpush1.bf16.msra.mxu1 %v10486_v33  ;;  %v4666_v0 = vpop.f32.mrb[205].mxu1  ;;  %v10542_v29 = vld [vmem:[%s13954_s7 + $0x2c4] ss:$8 sps:$4 sm:$0xff]   ;;  %v10537_v33 = vld [vmem:[%s13953_s6 + $0x2c0] ss:$8 sps:$4 sm:$0xff]  }
 0x565   :  { %5925 = vmatprep.subr.bf16.mxu0 %v10491_v27  ;;  %6195 = vmatprep.subr.bf16.mxu1 %v10494_v17  ;;  %v4668_v6 = vpop.f32.mrb[206].mxu1  ;;  %v10540_v27 = vld [vmem:[%s13954_s7 + $0x2c0] ss:$8 sps:$4 sm:$0xff]   ;;  %v10545_v17 = vld [vmem:[%s13953_s6 + $0x2d4] ss:$8 sps:$4 sm:$0xff]  }
 0x566   :  { %5233 = vmatmul.mubr.bf16.gmra.mrb[220].mxu0 %v12838_v18  ;;  %5710 = vmatmul.mubr.bf16.gmra.mrb[220].mxu1 %v12838_v18  ;;  %v13186_v21 = vpack.c.bf16 %v4668_v6, %v4664_v49  ;;  %v4670_v48 = vpop.f32.mrb[207].mxu1  ;;  %v10498_v18 = vld [vmem:[%s13954_s7 + $0x250] ss:$8 sps:$4 sm:$0xff]   ;;  %v10548_v49 = vld [vmem:[%s13954_s7 + $0x2d4] ss:$8 sps:$4 sm:$0xff]  }
 0x567   :  { %9039 = vmatprep.mubr.msk.bf16.mxu0 %vm4922_vm3, %v12962_v55  ;;  %9103 = vmatprep.mubr.msk.bf16.mxu1 %vm4922_vm3, %v12962_v55  ;;  %v13194_v9 = vpack.c.bf16 %v4670_v48, %v4666_v0  ;;  %v10503_v55 = vld [vmem:[%s13953_s6 + $0x264] ss:$8 sps:$4 sm:$0xff]   ;;  %v10552_v6 = vld [vmem:[%s13954_s7 + $0x2e0] ss:$8 sps:$4 sm:$0xff]   ;;  %v10557_v48 = vld [vmem:[%s13953_s6 + $0x2f4] ss:$8 sps:$4 sm:$0xff]  }
 0x568   :  { %5926 = vmatpush1.bf16.msra.mxu0 %v10489_v37  ;;  %6196 = vmatpush1.bf16.msra.mxu1 %v10492_v1  ;;  %v10543_v37 = vld [vmem:[%s13953_s6 + $0x2d0] ss:$8 sps:$4 sm:$0xff]   ;;  %v10551_v0 = vld [vmem:[%s13953_s6 + $0x2e4] ss:$8 sps:$4 sm:$0xff]  }
 0x569   :  { %5927 = vmatprep.subr.bf16.mxu0 %v10497_v50  ;;  %6197 = vmatprep.subr.bf16.mxu1 %v10500_v23  ;;  %v10546_v1 = vld [vmem:[%s13954_s7 + $0x2d0] ss:$8 sps:$4 sm:$0xff]   ;;  %v10554_v50 = vld [vmem:[%s13954_s7 + $0x2e4] ss:$8 sps:$4 sm:$0xff]   ;;  %v10549_v23 = vld [vmem:[%s13953_s6 + $0x2e0] ss:$8 sps:$4 sm:$0xff]  }
 0x56c   :  { %5928 = vmatpush1.bf16.msra.mxu0 %v10495_v16  ;;  %6198 = vmatpush1.bf16.msra.mxu1 %v10498_v18  ;;  %v10555_v16 = vld [vmem:[%s13953_s6 + $0x2f0] ss:$8 sps:$4 sm:$0xff]  }
 0x56d   :  { %5929 = vmatprep.subr.bf16.mxu0 %v10503_v55  ;;  %6199 = vmatprep.subr.bf16.mxu1 %v10506_v46  ;;  %v10558_v18 = vld [vmem:[%s13954_s7 + $0x2f0] ss:$8 sps:$4 sm:$0xff]   ;;  %v10563_v55 = vld [vmem:[%s13953_s6 + $0x304] ss:$8 sps:$4 sm:$0xff]   ;;  %v10561_v46 = vld [vmem:[%s13953_s6 + $0x300] ss:$8 sps:$4 sm:$0xff]  }
 0x570   :  { %5930 = vmatpush1.bf16.msra.mxu0 %v10501_v22  ;;  %6200 = vmatpush1.bf16.msra.mxu1 %v10504_v10  ;;  %v10564_v22 = vld [vmem:[%s13954_s7 + $0x300] ss:$8 sps:$4 sm:$0xff]   ;;  %v10569_v10 = vld [vmem:[%s13953_s6 + $0x314] ss:$8 sps:$4 sm:$0xff]  }
 0x571   :  { %5931 = vmatprep.subr.bf16.mxu0 %v10509_v5  ;;  %6201 = vmatprep.subr.bf16.mxu1 %v10512_v53  ;;  %v10567_v5 = vld [vmem:[%s13953_s6 + $0x310] ss:$8 sps:$4 sm:$0xff]  }
 0x572   :  { %v10570_v53 = vld [vmem:[%s13954_s7 + $0x310] ss:$8 sps:$4 sm:$0xff]  }
 0x574   :  { %5932 = vmatpush1.bf16.msra.mxu0 %v10507_v35  ;;  %6202 = vmatpush1.bf16.msra.mxu1 %v10510_v32  ;;  %v10575_v35 = vld [vmem:[%s13953_s6 + $0x324] ss:$8 sps:$4 sm:$0xff]   ;;  %v10573_v32 = vld [vmem:[%s13953_s6 + $0x320] ss:$8 sps:$4 sm:$0xff]  }
 0x575   :  { %5933 = vmatprep.subr.bf16.mxu0 %v10515_v47  ;;  %6203 = vmatprep.subr.bf16.mxu1 %v10518_v59  ;;  %v10576_v47 = vld [vmem:[%s13954_s7 + $0x320] ss:$8 sps:$4 sm:$0xff]   ;;  %v10581_v59 = vld [vmem:[%s13953_s6 + $0x334] ss:$8 sps:$4 sm:$0xff]  }
 0x578   :  { %5934 = vmatpush1.bf16.msra.mxu0 %v10513_v39  ;;  %6204 = vmatpush1.bf16.msra.mxu1 %v10516_v24  ;;  %v10579_v39 = vld [vmem:[%s13953_s6 + $0x330] ss:$8 sps:$4 sm:$0xff]  }
 0x579   :  { %5935 = vmatprep.subr.bf16.mxu0 %v10521_v14  ;;  %6205 = vmatprep.subr.bf16.mxu1 %v10524_v34  ;;  %v10582_v24 = vld [vmem:[%s13954_s7 + $0x330] ss:$8 sps:$4 sm:$0xff]   ;;  %v10587_v14 = vld [vmem:[%s13953_s6 + $0x344] ss:$8 sps:$4 sm:$0xff]   ;;  %v10585_v34 = vld [vmem:[%s13953_s6 + $0x340] ss:$8 sps:$4 sm:$0xff]  }
 0x57c   :  { %5936 = vmatpush1.bf16.msra.mxu0 %v10519_v13  ;;  %6206 = vmatpush1.bf16.msra.mxu1 %v10522_v8  ;;  %v10588_v13 = vld [vmem:[%s13954_s7 + $0x340] ss:$8 sps:$4 sm:$0xff]   ;;  %v10593_v8 = vld [vmem:[%s13953_s6 + $0x354] ss:$8 sps:$4 sm:$0xff]  }
 0x57d   :  { %5937 = vmatprep.subr.bf16.mxu0 %v10527_v60  ;;  %6207 = vmatprep.subr.bf16.mxu1 %v10530_v26  ;;  %v10591_v60 = vld [vmem:[%s13953_s6 + $0x350] ss:$8 sps:$4 sm:$0xff]  }
 0x57e   :  { %v10594_v26 = vld [vmem:[%s13954_s7 + $0x350] ss:$8 sps:$4 sm:$0xff]  }
 0x580   :  { %5938 = vmatpush1.bf16.msra.mxu0 %v10525_v43  ;;  %6208 = vmatpush1.bf16.msra.mxu1 %v10528_v58  ;;  %v10599_v43 = vld [vmem:[%s13953_s6 + $0x364] ss:$8 sps:$4 sm:$0xff]   ;;  %v10597_v58 = vld [vmem:[%s13953_s6 + $0x360] ss:$8 sps:$4 sm:$0xff]  }
 0x581   :  { %5939 = vmatprep.subr.bf16.mxu0 %v10533_v28  ;;  %6209 = vmatprep.subr.bf16.mxu1 %v10536_v62  ;;  %v10600_v28 = vld [vmem:[%s13954_s7 + $0x360] ss:$8 sps:$4 sm:$0xff]   ;;  %v10605_v62 = vld [vmem:[%s13953_s6 + $0x374] ss:$8 sps:$4 sm:$0xff]  }
 0x584   :  { %5940 = vmatpush1.bf16.msra.mxu0 %v10531_v31  ;;  %6210 = vmatpush1.bf16.msra.mxu1 %v10534_v61  ;;  %v10608_v31 = vld [vmem:[%s13954_s7 + $0x374] ss:$8 sps:$4 sm:$0xff]   ;;  %v10603_v61 = vld [vmem:[%s13953_s6 + $0x370] ss:$8 sps:$4 sm:$0xff]  }
 0x585   :  { %5941 = vmatprep.subr.bf16.mxu0 %v10539_v41  ;;  %6211 = vmatprep.subr.bf16.mxu1 %v10542_v29  ;;  %v10606_v41 = vld [vmem:[%s13954_s7 + $0x370] ss:$8 sps:$4 sm:$0xff]   ;;  %v10611_v29 = vld [vmem:[%s13953_s6 + $0x384] ss:$8 sps:$4 sm:$0xff]  }
 0x588   :  { %5942 = vmatpush1.bf16.msra.mxu0 %v10537_v33  ;;  %6212 = vmatpush1.bf16.msra.mxu1 %v10540_v27  ;;  %v10614_v33 = vld [vmem:[%s13954_s7 + $0x384] ss:$8 sps:$4 sm:$0xff]   ;;  %v10609_v27 = vld [vmem:[%s13953_s6 + $0x380] ss:$8 sps:$4 sm:$0xff]  }
 0x589   :  { %6465 = vmatprep.subr.bf16.mxu0 %v10545_v17  ;;  %6735 = vmatprep.subr.bf16.mxu1 %v10548_v49  ;;  %v10612_v17 = vld [vmem:[%s13954_s7 + $0x380] ss:$8 sps:$4 sm:$0xff]   ;;  %v10617_v49 = vld [vmem:[%s13953_s6 + $0x394] ss:$8 sps:$4 sm:$0xff]  }
 0x58b   :  { %5946 = vmatmul.mubr.bf16.vlgmr.msra.gmra.mrb[208].mxu0 %v12954_v36  ;;  %6216 = vmatmul.mubr.bf16.vlgmr.msra.gmra.mrb[208].mxu1 %v12954_v36  ;;  %v10560_v36 = vld [vmem:[%s13954_s7 + $0x2f4] ss:$8 sps:$4 sm:$0xff]  }
 0x58c   :  { %6466 = vmatpush1.bf16.msra.mxu0 %v10543_v37  ;;  %6736 = vmatpush1.bf16.msra.mxu1 %v10546_v1  ;;  %v10620_v37 = vld [vmem:[%s13954_s7 + $0x394] ss:$8 sps:$4 sm:$0xff]   ;;  %v10615_v1 = vld [vmem:[%s13953_s6 + $0x390] ss:$8 sps:$4 sm:$0xff]  }
 0x58d   :  { %6467 = vmatprep.subr.bf16.mxu0 %v10551_v0  ;;  %6737 = vmatprep.subr.bf16.mxu1 %v10554_v50  ;;  %v10618_v0 = vld [vmem:[%s13954_s7 + $0x390] ss:$8 sps:$4 sm:$0xff]   ;;  %v10623_v50 = vld [vmem:[%s13953_s6 + $0x3a4] ss:$8 sps:$4 sm:$0xff]  }
 0x58e   :  { %9040 = vmatprep.mubr.msk.bf16.mxu0 %vm4922_vm3, %v12990_v11  ;;  %9104 = vmatprep.mubr.msk.bf16.mxu1 %vm4922_vm3, %v12990_v11  ;;  %v10566_v11 = vld [vmem:[%s13954_s7 + $0x304] ss:$8 sps:$4 sm:$0xff]  }
 0x590   :  { %6468 = vmatpush1.bf16.msra.mxu0 %v10549_v23  ;;  %6738 = vmatpush1.bf16.msra.mxu1 %v10552_v6  ;;  %v10626_v23 = vld [vmem:[%s13954_s7 + $0x3a4] ss:$8 sps:$4 sm:$0xff]   ;;  %v10621_v6 = vld [vmem:[%s13953_s6 + $0x3a0] ss:$8 sps:$4 sm:$0xff]  }
 0x591   :  { %6469 = vmatprep.subr.bf16.mxu0 %v10557_v48  ;;  %6739 = vmatprep.subr.bf16.mxu1 %v10560_v36  ;;  %v10624_v48 = vld [vmem:[%s13954_s7 + $0x3a0] ss:$8 sps:$4 sm:$0xff]   ;;  %v10629_v36 = vld [vmem:[%s13953_s6 + $0x3b4] ss:$8 sps:$4 sm:$0xff]  }
 0x593   :  { %5956 = vmatmul.mubr.bf16.gmra.mrb[212].mxu0 %v12982_v30  ;;  %6226 = vmatmul.mubr.bf16.gmra.mrb[212].mxu1 %v12982_v30  ;;  %v10572_v30 = vld [vmem:[%s13954_s7 + $0x314] ss:$8 sps:$4 sm:$0xff]  }
 0x594   :  { %6470 = vmatpush1.bf16.msra.mxu0 %v10555_v16  ;;  %6740 = vmatpush1.bf16.msra.mxu1 %v10558_v18  ;;  %v10632_v16 = vld [vmem:[%s13954_s7 + $0x3b4] ss:$8 sps:$4 sm:$0xff]   ;;  %v10627_v18 = vld [vmem:[%s13953_s6 + $0x3b0] ss:$8 sps:$4 sm:$0xff]  }
 0x595   :  { %6471 = vmatprep.subr.bf16.mxu0 %v10563_v55  ;;  %6741 = vmatprep.subr.bf16.mxu1 %v10566_v11  ;;  %v10630_v55 = vld [vmem:[%s13954_s7 + $0x3b0] ss:$8 sps:$4 sm:$0xff]   ;;  %v10635_v11 = vld [vmem:[%s13953_s6 + $0x3c4] ss:$8 sps:$4 sm:$0xff]  }
 0x596   :  { %9041 = vmatprep.mubr.msk.bf16.mxu0 %vm4922_vm3, %v13018_v54  ;;  %9105 = vmatprep.mubr.msk.bf16.mxu1 %vm4922_vm3, %v13018_v54  ;;  %v10578_v54 = vld [vmem:[%s13954_s7 + $0x324] ss:$8 sps:$4 sm:$0xff]  }
 0x598   :  { %6472 = vmatpush1.bf16.msra.mxu0 %v10561_v46  ;;  %6742 = vmatpush1.bf16.msra.mxu1 %v10564_v22  ;;  %v10638_v46 = vld [vmem:[%s13954_s7 + $0x3c4] ss:$8 sps:$4 sm:$0xff]   ;;  %v10633_v22 = vld [vmem:[%s13953_s6 + $0x3c0] ss:$8 sps:$4 sm:$0xff]  }
 0x599   :  { %6473 = vmatprep.subr.bf16.mxu0 %v10569_v10  ;;  %6743 = vmatprep.subr.bf16.mxu1 %v10572_v30  ;;  %v10636_v10 = vld [vmem:[%s13954_s7 + $0x3c0] ss:$8 sps:$4 sm:$0xff]   ;;  %v10641_v30 = vld [vmem:[%s13953_s6 + $0x3d4] ss:$8 sps:$4 sm:$0xff]  }
 0x59b   :  { %5966 = vmatmul.mubr.bf16.gmra.mrb[216].mxu0 %v13010_v57  ;;  %6236 = vmatmul.mubr.bf16.gmra.mrb[216].mxu1 %v13010_v57  ;;  %v10584_v57 = vld [vmem:[%s13954_s7 + $0x334] ss:$8 sps:$4 sm:$0xff]  }
 0x59c   :  { %6474 = vmatpush1.bf16.msra.mxu0 %v10567_v5  ;;  %6744 = vmatpush1.bf16.msra.mxu1 %v10570_v53  ;;  %v10644_v5 = vld [vmem:[%s13954_s7 + $0x3d4] ss:$8 sps:$4 sm:$0xff]   ;;  %v10639_v53 = vld [vmem:[%s13953_s6 + $0x3d0] ss:$8 sps:$4 sm:$0xff]  }
 0x59d   :  { %6475 = vmatprep.subr.bf16.mxu0 %v10575_v35  ;;  %6745 = vmatprep.subr.bf16.mxu1 %v10578_v54  ;;  %v10642_v35 = vld [vmem:[%s13954_s7 + $0x3d0] ss:$8 sps:$4 sm:$0xff]   ;;  %v10647_v54 = vld [vmem:[%s13953_s6 + $0x3e4] ss:$8 sps:$4 sm:$0xff]  }
 0x59e   :  { %9042 = vmatprep.mubr.msk.bf16.mxu0 %vm4922_vm3, %v13046_v3  ;;  %9106 = vmatprep.mubr.msk.bf16.mxu1 %vm4922_vm3, %v13046_v3  ;;  %v10590_v3 = vld [vmem:[%s13954_s7 + $0x344] ss:$8 sps:$4 sm:$0xff]  }
 0x5a0   :  { %6476 = vmatpush1.bf16.msra.mxu0 %v10573_v32  ;;  %6746 = vmatpush1.bf16.msra.mxu1 %v10576_v47  ;;  %v10645_v32 = vld [vmem:[%s13953_s6 + $0x3e0] ss:$8 sps:$4 sm:$0xff]  }
 0x5a1   :  { %6477 = vmatprep.subr.bf16.mxu0 %v10581_v59  ;;  %6747 = vmatprep.subr.bf16.mxu1 %v10584_v57  ;;  %v10648_v47 = vld [vmem:[%s13954_s7 + $0x3e0] ss:$8 sps:$4 sm:$0xff]   ;;  %v10653_v59 = vld [vmem:[%s13953_s6 + $0x3f4] ss:$8 sps:$4 sm:$0xff]   ;;  %v10651_v57 = vld [vmem:[%s13953_s6 + $0x3f0] ss:$8 sps:$4 sm:$0xff]  }
 0x5a3   :  { %5976 = vmatmul.mubr.bf16.gmra.mrb[220].mxu0 %v13038_v38  ;;  %6246 = vmatmul.mubr.bf16.gmra.mrb[220].mxu1 %v13038_v38  ;;  %v10596_v38 = vld [vmem:[%s13954_s7 + $0x354] ss:$8 sps:$4 sm:$0xff]  }
 0x5a4   :  { %6478 = vmatpush1.bf16.msra.mxu0 %v10579_v39  ;;  %6748 = vmatpush1.bf16.msra.mxu1 %v10582_v24  ;;  %v10654_v39 = vld [vmem:[%s13954_s7 + $0x3f0] ss:$8 sps:$4 sm:$0xff]   ;;  %v10659_v24 = vld [vmem:[%s13953_s6 + $0x404] ss:$8 sps:$4 sm:$0xff]  }
 0x5a5   :  { %6479 = vmatprep.subr.bf16.mxu0 %v10587_v14  ;;  %6749 = vmatprep.subr.bf16.mxu1 %v10590_v3  ;;  %v10657_v14 = vld [vmem:[%s13953_s6 + $0x400] ss:$8 sps:$4 sm:$0xff]  }
 0x5a6   :  { %9167 = vmatprep.mubr.msk.bf16.mxu0 %vm4922_vm3, %v12952_v42  ;;  %9231 = vmatprep.mubr.msk.bf16.mxu1 %vm4922_vm3, %v12952_v42  ;;  %v10602_v42 = vld [vmem:[%s13954_s7 + $0x364] ss:$8 sps:$4 sm:$0xff]   ;;  %v10660_v3 = vld [vmem:[%s13954_s7 + $0x400] ss:$8 sps:$4 sm:$0xff]  }
 0x5a8   :  { %6480 = vmatpush1.bf16.msra.mxu0 %v10585_v34  ;;  %6750 = vmatpush1.bf16.msra.mxu1 %v10588_v13  ;;  %v10665_v34 = vld [vmem:[%s13953_s6 + $0x414] ss:$8 sps:$4 sm:$0xff]   ;;  %v10663_v13 = vld [vmem:[%s13953_s6 + $0x410] ss:$8 sps:$4 sm:$0xff]  }
 0x5a9   :  { %6481 = vmatprep.subr.bf16.mxu0 %v10593_v8  ;;  %6751 = vmatprep.subr.bf16.mxu1 %v10596_v38  ;;  %v10666_v8 = vld [vmem:[%s13954_s7 + $0x410] ss:$8 sps:$4 sm:$0xff]   ;;  %v10671_v38 = vld [vmem:[%s13953_s6 + $0x424] ss:$8 sps:$4 sm:$0xff]  }
 0x5ac   :  { %6482 = vmatpush1.bf16.msra.mxu0 %v10591_v60  ;;  %6752 = vmatpush1.bf16.msra.mxu1 %v10594_v26  ;;  %v10669_v60 = vld [vmem:[%s13953_s6 + $0x420] ss:$8 sps:$4 sm:$0xff]  }
 0x5ad   :  { %6483 = vmatprep.subr.bf16.mxu0 %v10599_v43  ;;  %6753 = vmatprep.subr.bf16.mxu1 %v10602_v42  ;;  %v10672_v26 = vld [vmem:[%s13954_s7 + $0x420] ss:$8 sps:$4 sm:$0xff]   ;;  %v10677_v43 = vld [vmem:[%s13953_s6 + $0x434] ss:$8 sps:$4 sm:$0xff]   ;;  %v10675_v42 = vld [vmem:[%s13953_s6 + $0x430] ss:$8 sps:$4 sm:$0xff]  }
 0x5b0   :  { %6484 = vmatpush1.bf16.msra.mxu0 %v10597_v58  ;;  %6754 = vmatpush1.bf16.msra.mxu1 %v10600_v28  ;;  %v10678_v58 = vld [vmem:[%s13954_s7 + $0x430] ss:$8 sps:$4 sm:$0xff]   ;;  %v10686_v28 = vld [vmem:[%s13954_s7 + $0x444] ss:$8 sps:$4 sm:$0xff]  }
 0x5b1   :  { %6485 = vmatprep.subr.bf16.mxu0 %v10605_v62  ;;  %6755 = vmatprep.subr.bf16.mxu1 %v10608_v31  ;;  %v10681_v62 = vld [vmem:[%s13953_s6 + $0x440] ss:$8 sps:$4 sm:$0xff]   ;;  %v10689_v31 = vld [vmem:[%s13953_s6 + $0x454] ss:$8 sps:$4 sm:$0xff]  }
 0x5b4   :  { %6486 = vmatpush1.bf16.msra.mxu0 %v10603_v61  ;;  %6756 = vmatpush1.bf16.msra.mxu1 %v10606_v41  ;;  %v10692_v61 = vld [vmem:[%s13954_s7 + $0x454] ss:$8 sps:$4 sm:$0xff]   ;;  %v10687_v41 = vld [vmem:[%s13953_s6 + $0x450] ss:$8 sps:$4 sm:$0xff]  }
 0x5b5   :  { %6487 = vmatprep.subr.bf16.mxu0 %v10611_v29  ;;  %6757 = vmatprep.subr.bf16.mxu1 %v10614_v33  ;;  %v10690_v29 = vld [vmem:[%s13954_s7 + $0x450] ss:$8 sps:$4 sm:$0xff]   ;;  %v10695_v33 = vld [vmem:[%s13953_s6 + $0x464] ss:$8 sps:$4 sm:$0xff]  }
 0x5b8   :  { %6488 = vmatpush1.bf16.msra.mxu0 %v10609_v27  ;;  %6758 = vmatpush1.bf16.msra.mxu1 %v10612_v17  ;;  %v10698_v27 = vld [vmem:[%s13954_s7 + $0x464] ss:$8 sps:$4 sm:$0xff]   ;;  %v10693_v17 = vld [vmem:[%s13953_s6 + $0x460] ss:$8 sps:$4 sm:$0xff]  }
 0x5b9   :  { %6489 = vmatprep.subr.bf16.mxu0 %v10617_v49  ;;  %6759 = vmatprep.subr.bf16.mxu1 %v10620_v37  ;;  %v10696_v49 = vld [vmem:[%s13954_s7 + $0x460] ss:$8 sps:$4 sm:$0xff]   ;;  %v10701_v37 = vld [vmem:[%s13953_s6 + $0x474] ss:$8 sps:$4 sm:$0xff]  }
 0x5bc   :  { %6490 = vmatpush1.bf16.msra.mxu0 %v10615_v1  ;;  %6760 = vmatpush1.bf16.msra.mxu1 %v10618_v0  ;;  %v10704_v1 = vld [vmem:[%s13954_s7 + $0x474] ss:$8 sps:$4 sm:$0xff]   ;;  %v10699_v0 = vld [vmem:[%s13953_s6 + $0x470] ss:$8 sps:$4 sm:$0xff]  }
 0x5bd   :  { %6491 = vmatprep.subr.bf16.mxu0 %v10623_v50  ;;  %6761 = vmatprep.subr.bf16.mxu1 %v10626_v23  ;;  %v10702_v50 = vld [vmem:[%s13954_s7 + $0x470] ss:$8 sps:$4 sm:$0xff]   ;;  %v10707_v23 = vld [vmem:[%s13953_s6 + $0x484] ss:$8 sps:$4 sm:$0xff]  }
 0x5c0   :  { %6492 = vmatpush1.bf16.msra.mxu0 %v10621_v6  ;;  %6762 = vmatpush1.bf16.msra.mxu1 %v10624_v48  ;;  %v10710_v6 = vld [vmem:[%s13954_s7 + $0x484] ss:$8 sps:$4 sm:$0xff]   ;;  %v10705_v48 = vld [vmem:[%s13953_s6 + $0x480] ss:$8 sps:$4 sm:$0xff]  }
 0x5c1   :  { %6493 = vmatprep.subr.bf16.mxu0 %v10629_v36  ;;  %6763 = vmatprep.subr.bf16.mxu1 %v10632_v16  ;;  %v10708_v36 = vld [vmem:[%s13954_s7 + $0x480] ss:$8 sps:$4 sm:$0xff]   ;;  %v10713_v16 = vld [vmem:[%s13953_s6 + $0x494] ss:$8 sps:$4 sm:$0xff]  }
 0x5c4   :  { %6494 = vmatpush1.bf16.msra.mxu0 %v10627_v18  ;;  %6764 = vmatpush1.bf16.msra.mxu1 %v10630_v55  ;;  %v10716_v18 = vld [vmem:[%s13954_s7 + $0x494] ss:$8 sps:$4 sm:$0xff]   ;;  %v10711_v55 = vld [vmem:[%s13953_s6 + $0x490] ss:$8 sps:$4 sm:$0xff]  }
 0x5c5   :  { %7017 = vmatprep.subr.bf16.mxu0 %v10635_v11  ;;  %7287 = vmatprep.subr.bf16.mxu1 %v10638_v46  ;;  %v10714_v11 = vld [vmem:[%s13954_s7 + $0x490] ss:$8 sps:$4 sm:$0xff]   ;;  %v10719_v46 = vld [vmem:[%s13953_s6 + $0x4a4] ss:$8 sps:$4 sm:$0xff]  }
 0x5c7   :  { %6498 = vmatmul.mubr.bf16.vlgmr.msra.gmra.mrb[208].mxu0 %v12950_v25  ;;  %6768 = vmatmul.mubr.bf16.vlgmr.msra.gmra.mrb[208].mxu1 %v12950_v25  ;;  %v10650_v25 = vld [vmem:[%s13954_s7 + $0x3e4] ss:$8 sps:$4 sm:$0xff]  }
 0x5c8   :  { %7018 = vmatpush1.bf16.msra.mxu0 %v10633_v22  ;;  %7288 = vmatpush1.bf16.msra.mxu1 %v10636_v10  ;;  %v10722_v22 = vld [vmem:[%s13954_s7 + $0x4a4] ss:$8 sps:$4 sm:$0xff]   ;;  %v10717_v10 = vld [vmem:[%s13953_s6 + $0x4a0] ss:$8 sps:$4 sm:$0xff]  }
 0x5c9   :  { %7019 = vmatprep.subr.bf16.mxu0 %v10641_v30  ;;  %7289 = vmatprep.subr.bf16.mxu1 %v10644_v5  ;;  %v10720_v30 = vld [vmem:[%s13954_s7 + $0x4a0] ss:$8 sps:$4 sm:$0xff]  }
 0x5ca   :  { %9168 = vmatprep.mubr.msk.bf16.mxu0 %vm4922_vm3, %v13056_v40  ;;  %9232 = vmatprep.mubr.msk.bf16.mxu1 %vm4922_vm3, %v13056_v40  ;;  %v10656_v40 = vld [vmem:[%s13954_s7 + $0x3f4] ss:$8 sps:$4 sm:$0xff]  }
 0x5cc   :  { %7020 = vmatpush1.bf16.msra.mxu0 %v10639_v53  ;;  %7290 = vmatpush1.bf16.msra.mxu1 %v10642_v35 }
 0x5cd   :  { %7021 = vmatprep.subr.bf16.mxu0 %v10647_v54  ;;  %7291 = vmatprep.subr.bf16.mxu1 %v10650_v25 }
 0x5cf   :  { %6508 = vmatmul.mubr.bf16.gmra.mrb[212].mxu0 %v13054_v20  ;;  %6778 = vmatmul.mubr.bf16.gmra.mrb[212].mxu1 %v13054_v20  ;;  %v10662_v20 = vld [vmem:[%s13954_s7 + $0x404] ss:$8 sps:$4 sm:$0xff]  }
 0x5d0   :  { %7022 = vmatpush1.bf16.msra.mxu0 %v10645_v32  ;;  %7292 = vmatpush1.bf16.msra.mxu1 %v10648_v47 }
 0x5d1   :  { %7023 = vmatprep.subr.bf16.mxu0 %v10653_v59  ;;  %7293 = vmatprep.subr.bf16.mxu1 %v10656_v40 }
 0x5d2   :  { %9169 = vmatprep.mubr.msk.bf16.mxu0 %vm4922_vm3, %v13094_v44  ;;  %9233 = vmatprep.mubr.msk.bf16.mxu1 %vm4922_vm3, %v13094_v44  ;;  %v10668_v44 = vld [vmem:[%s13954_s7 + $0x414] ss:$8 sps:$4 sm:$0xff]  }
 0x5d4   :  { %7024 = vmatpush1.bf16.msra.mxu0 %v10651_v57  ;;  %7294 = vmatpush1.bf16.msra.mxu1 %v10654_v39  ;;  %v7400_v57 = vld [vmem:[%s13956_s8] sm:$0x3] }
 0x5d5   :  { %7025 = vmatprep.subr.bf16.mxu0 %v10659_v24  ;;  %7295 = vmatprep.subr.bf16.mxu1 %v10662_v20 }
 0x5d7   :  { %6518 = vmatmul.mubr.bf16.gmra.mrb[216].mxu0 %v13092_v45  ;;  %6788 = vmatmul.mubr.bf16.gmra.mrb[216].mxu1 %v13092_v45  ;;  %v10674_v45 = vld [vmem:[%s13954_s7 + $0x424] ss:$8 sps:$4 sm:$0xff]  }
 0x5d8   :  { %7026 = vmatpush1.bf16.msra.mxu0 %v10657_v14  ;;  %7296 = vmatpush1.bf16.msra.mxu1 %v10660_v3 }
 0x5d9   :  { %7027 = vmatprep.subr.bf16.mxu0 %v10665_v34  ;;  %7297 = vmatprep.subr.bf16.mxu1 %v10668_v44  ;;  %v14055_v34 = vsub.s32 0, %v12323_v7 }
 0x5da   :  { %9170 = vmatprep.mubr.msk.bf16.mxu0 %vm4922_vm3, %v13132_v63  ;;  %9234 = vmatprep.mubr.msk.bf16.mxu1 %vm4922_vm3, %v13132_v63  ;;  %v10680_v63 = vld [vmem:[%s13954_s7 + $0x434] ss:$8 sps:$4 sm:$0xff]  }
 0x5db   :  { %v7405_v44 = vrot.slane %v7400_v57, %v14055_v34  ;;  %v10725_v34 = vld [vmem:[%s13955_s10 + $0x60] sm:$0xff]  }
 0x5dc   :  { %7028 = vmatpush1.bf16.msra.mxu0 %v10663_v13  ;;  %7298 = vmatpush1.bf16.msra.mxu1 %v10666_v8 }
 0x5dd   :  { %7029 = vmatprep.subr.bf16.mxu0 %v10671_v38  ;;  %7299 = vmatprep.subr.bf16.mxu1 %v10674_v45 }
 0x5df   :  { %6528 = vmatmul.mubr.bf16.gmra.mrb[220].mxu0 %v13130_v15  ;;  %6798 = vmatmul.mubr.bf16.gmra.mrb[220].mxu1 %v13130_v15  ;;  %v10683_v15 = vld [vmem:[%s13953_s6 + $0x444] ss:$8 sps:$4 sm:$0xff]  }
 0x5e0   :  { %7030 = vmatpush1.bf16.msra.mxu0 %v10669_v60  ;;  %9295 = vmatprep.mubr.msk.bf16.mxu0 %vm4922_vm3, %v13078_v56  ;;  %v14056_v60 = vsub.s32 1, %v12323_v7 }
 0x5e1   :  { %7300 = vmatpush1.bf16.msra.mxu1 %v10672_v26  ;;  %9359 = vmatprep.mubr.msk.bf16.mxu1 %vm4922_vm3, %v13078_v56  ;;  %v10684_v56 = vld [vmem:[%s13954_s7 + $0x440] ss:$8 sps:$4 sm:$0xff]  }
 0x5e2   :  { %7031 = vmatprep.subr.bf16.mxu0 %v10677_v43  ;;  %7301 = vmatprep.subr.bf16.mxu1 %v10680_v63  ;;  %v7409_v26 = vrot.slane %v7400_v57, %v14056_v60  ;;  %v10731_v60 = vld [vmem:[%s13955_s10 + $0x90] sm:$0xff]  }
 0x5e4   :  { %7032 = vmatpush1.bf16.msra.mxu0 %v10675_v42 }
 0x5e5   :  { %7302 = vmatpush1.bf16.msra.mxu1 %v10678_v58  ;;  %7033 = vmatprep.subr.bf16.mxu0 %v10683_v15 }
 0x5e6   :  { %7303 = vmatprep.subr.bf16.mxu1 %v10686_v28 }
 0x5e8   :  { %7034 = vmatpush1.bf16.msra.mxu0 %v10681_v62 }
 0x5e9   :  { %7304 = vmatpush1.bf16.msra.mxu1 %v10684_v56  ;;  %7035 = vmatprep.subr.bf16.mxu0 %v10689_v31 }
 0x5ea   :  { %7305 = vmatprep.subr.bf16.mxu1 %v10692_v61 }
 0x5ec   :  { %7036 = vmatpush1.bf16.msra.mxu0 %v10687_v41 }
 0x5ed   :  { %7306 = vmatpush1.bf16.msra.mxu1 %v10690_v29  ;;  %7037 = vmatprep.subr.bf16.mxu0 %v10695_v33 }
 0x5ee   :  { %7307 = vmatprep.subr.bf16.mxu1 %v10698_v27 }
 0x5f0   :  { %7038 = vmatpush1.bf16.msra.mxu0 %v10693_v17 }
 0x5f1   :  { %7308 = vmatpush1.bf16.msra.mxu1 %v10696_v49  ;;  %7039 = vmatprep.subr.bf16.mxu0 %v10701_v37 }
 0x5f2   :  { %7309 = vmatprep.subr.bf16.mxu1 %v10704_v1 }
 0x5f4   :  { %7040 = vmatpush1.bf16.msra.mxu0 %v10699_v0 }
 0x5f5   :  { %7310 = vmatpush1.bf16.msra.mxu1 %v10702_v50  ;;  %7041 = vmatprep.subr.bf16.mxu0 %v10707_v23 }
 0x5f6   :  { %7311 = vmatprep.subr.bf16.mxu1 %v10710_v6 }
 0x5f8   :  { %7042 = vmatpush1.bf16.msra.mxu0 %v10705_v48 }
 0x5f9   :  { %7312 = vmatpush1.bf16.msra.mxu1 %v10708_v36  ;;  %7043 = vmatprep.subr.bf16.mxu0 %v10713_v16 }
 0x5fa   :  { %7313 = vmatprep.subr.bf16.mxu1 %v10716_v18 }
 0x5fc   :  { %7044 = vmatpush1.bf16.msra.mxu0 %v10711_v55 }
 0x5fd   :  { %7314 = vmatpush1.bf16.msra.mxu1 %v10714_v11  ;;  %7045 = vmatprep.subr.bf16.mxu0 %v10719_v46 }
 0x5fe   :  { %7315 = vmatprep.subr.bf16.mxu1 %v10722_v22 }
 0x600   :  { %7046 = vmatpush1.bf16.msra.mxu0 %v10717_v10 }
 0x601   :  { %7316 = vmatpush1.bf16.msra.mxu1 %v10720_v30 }
 0x603   :  { %7050 = vmatmul.mubr.bf16.vlgmr.msra.gmra.mrb[208].mxu0 %v13072_v12 }
 0x604   :  { %7320 = vmatmul.mubr.bf16.vlgmr.msra.gmra.mrb[208].mxu1 %v13072_v12  ;;  %9296 = vmatprep.mubr.msk.bf16.mxu0 %vm4922_vm3, %v13116_v52 }
 0x605   :  { %9360 = vmatprep.mubr.msk.bf16.mxu1 %vm4922_vm3, %v13116_v52 }
 0x60b   :  { %7060 = vmatmul.mubr.bf16.gmra.mrb[212].mxu0 %v13110_v51 }
 0x60c   :  { %7330 = vmatmul.mubr.bf16.gmra.mrb[212].mxu1 %v13110_v51  ;;  %9297 = vmatprep.mubr.msk.bf16.mxu0 %vm4922_vm3, %v13154_v4 }
 0x60d   :  { %9361 = vmatprep.mubr.msk.bf16.mxu1 %vm4922_vm3, %v13154_v4 }
 0x613   :  { %7070 = vmatmul.mubr.bf16.gmra.mrb[216].mxu0 %v13148_v19 }
 0x614   :  { %7340 = vmatmul.mubr.bf16.gmra.mrb[216].mxu1 %v13148_v19  ;;  %9298 = vmatprep.mubr.msk.bf16.mxu0 %vm4922_vm3, %v13194_v9 }
 0x615   :  { %9362 = vmatprep.mubr.msk.bf16.mxu1 %vm4922_vm3, %v13194_v9 }
 0x61b   :  { %7080 = vmatmul.mubr.bf16.gmra.mrb[220].mxu0 %v13186_v21 }
 0x61c   :  { %7350 = vmatmul.mubr.bf16.gmra.mrb[220].mxu1 %v13186_v21  ;;  %7469 = vmatprep.mubr.bf16.mxu0 %v14054_v2 }
 0x61d   :  { %7537 = vmatprep.mubr.bf16.mxu1 %v14054_v2 }
 0x6d6   :  { %v7051_v12 = vpop.f32.mrb[208].mxu0 }
 0x6d7   :  { %v7321_v51 = vpop.f32.mrb[208].mxu1  ;;  %v7053_v52 = vpop.f32.mrb[209].mxu0 }
 0x6d8   :  { %v7323_v4 = vpop.f32.mrb[209].mxu1  ;;  %v7055_v5 = vpop.f32.mrb[210].mxu0 }
 0x6d9   :  { %v7325_v19 = vpop.f32.mrb[210].mxu1  ;;  %v7057_v53 = vpop.f32.mrb[211].mxu0 }
 0x6da   :  { %v7327_v35 = vpop.f32.mrb[211].mxu1 }
 0x6de   :  { %v7061_v54 = vpop.f32.mrb[212].mxu0 }
 0x6df   :  { %v7331_v25 = vpop.f32.mrb[212].mxu1  ;;  %v7063_v32 = vpop.f32.mrb[213].mxu0 }
 0x6e0   :  { %v7333_v9 = vpop.f32.mrb[213].mxu1  ;;  %v7065_v47 = vpop.f32.mrb[214].mxu0 }
 0x6e1   :  { %v7335_v59 = vpop.f32.mrb[214].mxu1  ;;  %v7067_v40 = vpop.f32.mrb[215].mxu0 }
 0x6e2   :  { %v7337_v21 = vpop.f32.mrb[215].mxu1 }
 0x6e6   :  { %v7071_v39 = vpop.f32.mrb[216].mxu0 }
 0x6e7   :  { %v7376_v24 = vmax.f32 %v7051_v12, %v7071_v39  ;;  %v7341_v20 = vpop.f32.mrb[216].mxu1  ;;  %v7073_v14 = vpop.f32.mrb[217].mxu0 }
 0x6e8   :  { %v7384_v3 = vmax.f32 %v7321_v51, %v7341_v20  ;;  %v7377_v13 = vmax.f32 %v7053_v52, %v7073_v14  ;;  %v7343_v8 = vpop.f32.mrb[217].mxu1  ;;  %v7075_v38 = vpop.f32.mrb[218].mxu0  ;;  %v7432_v20 = vld [vmem:[%s13957_s9] sm:$0xf]  ;;  %v10723_v14 = vld [vmem:[%s13955_s10 + $0x50] sm:$0xff]  }
 0x6e9   :  { %v7385_v45 = vmax.f32 %v7323_v4, %v7343_v8  ;;  %v7378_v43 = vmax.f32 %v7055_v5, %v7075_v38  ;;  %v7345_v63 = vpop.f32.mrb[218].mxu1  ;;  %v7077_v42 = vpop.f32.mrb[219].mxu0  ;;  %v10728_v8 = vld [vmem:[%s13955_s10 + $0x78] sm:$0xff]   ;;  %v10729_v38 = vld [vmem:[%s13955_s10 + $0x80] sm:$0xff]  }
 0x6ea   :  { %v7392_v58 = vmax.f32 %v7376_v24, %v7384_v3  ;;  %v7386_v15 = vmax.f32 %v7325_v19, %v7345_v63  ;;  %v7379_v28 = vmax.f32 %v7057_v53, %v7077_v42  ;;  %v7347_v62 = vpop.f32.mrb[219].mxu1  ;;  %v9364_v24 = vld [vmem:[%s13957_s9 + $0x4] sm:$0xf]  ;;  %v10724_v3 = vld [vmem:[%s13955_s10 + $0x58] sm:$0xff]   ;;  %v10734_v63 = vld [vmem:[%s13955_s10 + $0x8] sm:$0xff]  }
 0x6eb   :  { %v7393_v56 = vmax.f32 %v7377_v13, %v7385_v45  ;;  %v7387_v31 = vmax.f32 %v7327_v35, %v7347_v62  ;;  %v10727_v13 = vld [vmem:[%s13955_s10 + $0x70] sm:$0xff]   ;;  %v10730_v45 = vld [vmem:[%s13955_s10 + $0x88] sm:$0xff]  }
 0x6ec   :  { %v7412_v61 = vadd.f32 %v7405_v44, %v7392_v58  ;;  %v7394_v41 = vmax.f32 %v7378_v43, %v7386_v15  ;;  %v10733_v43 = vld [vmem:[%s13955_s10] sm:$0xff]   ;;  %v10735_v42 = vld [vmem:[%s13955_s10 + $0x10] sm:$0xff]   ;;  %v10736_v58 = vld [vmem:[%s13955_s10 + $0x18] sm:$0xff]  }
 0x6ed   :  { %v7413_v29 = vadd.f32 %v7409_v26, %v7393_v56  ;;  %v7395_v33 = vmax.f32 %v7379_v28, %v7387_v31  ;;  %v10737_v15 = vld [vmem:[%s13955_s10 + $0x20] sm:$0xff]   ;;  %v10738_v28 = vld [vmem:[%s13955_s10 + $0x28] sm:$0xff]   ;;  %v10739_v62 = vld [vmem:[%s13955_s10 + $0x30] sm:$0xff]  }
 0x6ee   :  { %v7414_v27 = vadd.f32 %v7405_v44, %v7394_v41  ;;  %v7081_v17 = vpop.f32.mrb[220].mxu0  ;;  %v7420_v0 = vmax.f32 %v7412_v61, 0.0  ;;  %v10740_v56 = vld [vmem:[%s13955_s10 + $0x38] sm:$0xff]   ;;  %v10741_v31 = vld [vmem:[%s13955_s10 + $0x40] sm:$0xff]   ;;  %v10742_v61 = vld [vmem:[%s13955_s10 + $0x48] sm:$0xff]  }
 0x6ef   :  { %v7415_v49 = vadd.f32 %v7409_v26, %v7395_v33  ;;  %v7380_v37 = vmax.f32 %v7061_v54, %v7081_v17  ;;  %v7351_v1 = vpop.f32.mrb[220].mxu1  ;;  %v7083_v7 = vpop.f32.mrb[221].mxu0  ;;  %v7421_v16 = vmax.f32 %v7413_v29, 0.0 }
 0x6f0   :  { %v7422_v50 = vmax.f32 %v7414_v27, 0.0  ;;  %v7388_v23 = vmax.f32 %v7331_v25, %v7351_v1  ;;  %v7381_v6 = vmax.f32 %v7063_v32, %v7083_v7  ;;  %v7353_v48 = vpop.f32.mrb[221].mxu1  ;;  %v7085_v36 = vpop.f32.mrb[222].mxu0 }
 0x6f1   :  { %v7423_v18 = vmax.f32 %v7415_v49, 0.0  ;;  %v7389_v55 = vmax.f32 %v7333_v9, %v7353_v48  ;;  %v7382_v11 = vmax.f32 %v7065_v47, %v7085_v36  ;;  %v7355_v46 = vpop.f32.mrb[222].mxu1  ;;  %v7087_v22 = vpop.f32.mrb[223].mxu0  ;;  %v10744_v48 = vld [vmem:[%s13955_s10 + $0xa8] sm:$0xff]  }
 0x6f2   :  { %v13717_v10 = vpack.c.bf16 %v7422_v50, %v7420_v0  ;;  %v7396_v30 = vmax.f32 %v7380_v37, %v7388_v23  ;;  %v7390_v12 = vmax.f32 %v7335_v59, %v7355_v46  ;;  %v7383_v51 = vmax.f32 %v7067_v40, %v7087_v22  ;;  %v7357_v52 = vpop.f32.mrb[223].mxu1  ;;  %v10743_v23 = vld [vmem:[%s13955_s10 + $0xa0] sm:$0xff]   ;;  %v9408_v36 = vld [vmem:[%s13957_s9 + $0x8] sm:$0xf]  ;;  %v10748_v22 = vld [vmem:[%s13955_s10 + $0xf8] sm:$0xff]  }
 0x6f3   :  { %v13719_v4 = vpack.c.bf16 %v7423_v18, %v7421_v16  ;;  %v7397_v5 = vmax.f32 %v7381_v6, %v7389_v55  ;;  %v7391_v19 = vmax.f32 %v7337_v21, %v7357_v52  ;;  %v10745_v16 = vld [vmem:[%s13955_s10 + $0xb0] sm:$0xff]   ;;  %v10747_v18 = vld [vmem:[%s13955_s10 + $0xb8] sm:$0xff]   ;;  %v9441_v55 = vld [vmem:[%s13957_s9 + $0xc] sm:$0xf] }
 0x6f4   :  { %v7416_v53 = vadd.f32 %v7405_v44, %v7396_v30  ;;  %v7398_v35 = vmax.f32 %v7382_v11, %v7390_v12  ;;  %v10746_v11 = vld [vmem:[%s13955_s10 + $0xf0] sm:$0xff]   ;;  %v10749_v46 = vld [vmem:[%s13955_s10 + $0xc0] sm:$0xff]   ;;  %v10755_v52 = vld [vmem:[%s13955_s10 + $0xd8] sm:$0xff]  }
 0x6f5   :  { %v7417_v54 = vadd.f32 %v7409_v26, %v7397_v5  ;;  %v7399_v25 = vmax.f32 %v7383_v51, %v7391_v19  ;;  %7437 = vmatprep.subr.bf16.mxu0 %v13719_v4  ;;  %7505 = vmatprep.subr.bf16.mxu1 %v13719_v4  ;;  %v10750_v30 = vld [vmem:[%s13955_s10 + $0x100] sm:$0xff]   ;;  %v10753_v12 = vld [vmem:[%s13955_s10 + $0xd0] sm:$0xff]   ;;  %v10752_v51 = vld [vmem:[%s13955_s10 + $0x108] sm:$0xff]  }
 0x6f6   :  { %v7418_v32 = vadd.f32 %v7405_v44, %v7398_v35  ;;  %7438 = vmatpush1.bf16.msra.mxu0 %v13717_v10  ;;  %7506 = vmatpush1.bf16.msra.mxu1 %v13717_v10  ;;  %v7424_v47 = vmax.f32 %v7416_v53, 0.0  ;;  %v10726_v44 = vld [vmem:[%s13955_s10 + $0x68] sm:$0xff]   ;;  %v10756_v5 = vld [vmem:[%s13955_s10 + $0x118] sm:$0xff]   ;;  %v10757_v19 = vld [vmem:[%s13955_s10 + $0xe0] sm:$0xff]  }
 0x6f7   :  { %v7419_v9 = vadd.f32 %v7409_v26, %v7399_v25  ;;  %v7425_v40 = vmax.f32 %v7417_v54, 0.0  ;;  %v10732_v26 = vld [vmem:[%s13955_s10 + $0x98] sm:$0xff]   ;;  %v10758_v53 = vld [vmem:[%s13955_s10 + $0x120] sm:$0xff]   ;;  %v10759_v35 = vld [vmem:[%s13955_s10 + $0xe8] sm:$0xff]  }
 0x6f8   :  { %v7426_v59 = vmax.f32 %v7418_v32, 0.0  ;;  %v10760_v54 = vld [vmem:[%s13955_s10 + $0x128] sm:$0xff]   ;;  %v10761_v25 = vld [vmem:[%s13955_s10 + $0x130] sm:$0xff]   ;;  %v10762_v32 = vld [vmem:[%s13955_s10 + $0x138] sm:$0xff]  }
 0x6f9   :  { %v7427_v57 = vmax.f32 %v7419_v9, 0.0 }
 0x6fa   :  { %v13725_v39 = vpack.c.bf16 %v7426_v59, %v7424_v47 }
 0x6fb   :  { %v13727_v21 = vpack.c.bf16 %v7427_v57, %v7425_v40 }
 0x6fd   :  { %7439 = vmatprep.subr.bf16.mxu0 %v13727_v21  ;;  %7507 = vmatprep.subr.bf16.mxu1 %v13727_v21 }
 0x6fe   :  { %7440 = vmatpush1.bf16.msra.mxu0 %v13725_v39  ;;  %7508 = vmatpush1.bf16.msra.mxu1 %v13725_v39 }
 0x6ff   :  { %7632 = vmatprep.subr.bf16.mxu0 %v14054_v2  ;;  %7735 = vmatprep.subr.bf16.mxu1 %v14054_v2 }
 0x701   :  { %9365 = vmatmul.mubr.msk.bf16.vlgmr.msra.gmra.mrb[224].mxu1 %vm7433_vm4, %v9364_v24  ;;  %9363 = vmatmul.mubr.msk.bf16.vlgmr.msra.gmra.mrb[224].mxu0 %vm7433_vm4, %v7432_v20 }
 0x702   :  { %7633 = vmatpush1.bf16.msra.mxu0 %v10723_v14  ;;  %7736 = vmatpush1.bf16.msra.mxu1 %v10733_v43 }
 0x703   :  { %7634 = vmatprep.subr.bf16.mxu0 %v14054_v2  ;;  %7737 = vmatprep.subr.bf16.mxu1 %v14054_v2 }
 0x706   :  { %7635 = vmatpush1.bf16.msra.mxu0 %v10724_v3  ;;  %7738 = vmatpush1.bf16.msra.mxu1 %v10734_v63  ;;  %v10763_v63 = vld [vmem:[%s13958_s12] sm:$0xff]  }
 0x707   :  { %7636 = vmatprep.subr.bf16.mxu0 %v14054_v2  ;;  %7739 = vmatprep.subr.bf16.mxu1 %v14054_v2 }
 0x70a   :  { %7637 = vmatpush1.bf16.msra.mxu0 %v10725_v34  ;;  %7740 = vmatpush1.bf16.msra.mxu1 %v10735_v42  ;;  %v10772_v42 = vmov 0.0  }
 0x70b   :  { %7638 = vmatprep.subr.bf16.mxu0 %v14054_v2  ;;  %7741 = vmatprep.subr.bf16.mxu1 %v14054_v2 }
 0x70e   :  { %7639 = vmatpush1.bf16.msra.mxu0 %v10726_v44  ;;  %7742 = vmatpush1.bf16.msra.mxu1 %v10736_v58  ;;  %v10764_v58 = vld [vmem:[%s13958_s12 + $0x8] sm:$0xff]  }
 0x70f   :  { %7640 = vmatprep.subr.bf16.mxu0 %v14054_v2  ;;  %7743 = vmatprep.subr.bf16.mxu1 %v14054_v2 }
 0x712   :  { %7641 = vmatpush1.bf16.msra.mxu0 %v10727_v13  ;;  %7744 = vmatpush1.bf16.msra.mxu1 %v10737_v15  ;;  %v10765_v15 = vld [vmem:[%s13958_s12 + $0x10] sm:$0xff]  }
 0x713   :  { %7642 = vmatprep.subr.bf16.mxu0 %v14054_v2  ;;  %7745 = vmatprep.subr.bf16.mxu1 %v14054_v2 }
 0x716   :  { %7643 = vmatpush1.bf16.msra.mxu0 %v10728_v8  ;;  %7746 = vmatpush1.bf16.msra.mxu1 %v10738_v28  ;;  %v10766_v28 = vld [vmem:[%s13958_s12 + $0x18] ss:$0 sps:$4 sm:$0x11]  }
 0x717   :  { %7644 = vmatprep.subr.bf16.mxu0 %v14054_v2  ;;  %7747 = vmatprep.subr.bf16.mxu1 %v14054_v2 }
 0x71a   :  { %7645 = vmatpush1.bf16.msra.mxu0 %v10729_v38  ;;  %7748 = vmatpush1.bf16.msra.mxu1 %v10739_v62  ;;  %v8172_v62 = vsel %vm8170_vm5, %v10766_v28, 0 }
 0x71b   :  { %7646 = vmatprep.subr.bf16.mxu0 %v14054_v2  ;;  %7749 = vmatprep.subr.bf16.mxu1 %v14054_v2 }
 0x71e   :  { %7647 = vmatpush1.bf16.msra.mxu0 %v10730_v45  ;;  %7750 = vmatpush1.bf16.msra.mxu1 %v10740_v56 }
 0x71f   :  { %7648 = vmatprep.subr.bf16.mxu0 %v14054_v2  ;;  %7751 = vmatprep.subr.bf16.mxu1 %v14054_v2 }
 0x722   :  { %7649 = vmatpush1.bf16.msra.mxu0 %v10731_v60  ;;  %7752 = vmatpush1.bf16.msra.mxu1 %v10741_v31 }
 0x723   :  { %7650 = vmatprep.subr.bf16.mxu0 %v14054_v2  ;;  %7753 = vmatprep.subr.bf16.mxu1 %v14054_v2 }
 0x726   :  { %7651 = vmatpush1.bf16.msra.mxu0 %v10732_v26  ;;  %7754 = vmatpush1.bf16.msra.mxu1 %v10742_v61 }
 0x727   :  { %7780 = vmatprep.subr.bf16.mxu0 %v13719_v4  ;;  %7907 = vmatprep.subr.bf16.mxu1 %v14054_v2 }
 0x7d4   :  { %v7539_v41 = vpop.f32.mrb[224].mxu1  ;;  %v7471_v29 = vpop.f32.mrb[224].mxu0 }
 0x7d5   :  { %v7541_v33 = vpop.f32.mrb[225].mxu1  ;;  %v7478_v27 = vpack.c.bf16 %v7471_v29, %v7471_v29  ;;  %v7473_v17 = vpop.f32.mrb[225].mxu0  ;;  %v7546_v0 = vpack.c.bf16 %v7539_v41, %v7539_v41 }
 0x7d6   :  { %v7547_v49 = vpack.c.bf16 %v7541_v33, %v7541_v33  ;;  %v7479_v37 = vpack.c.bf16 %v7473_v17, %v7473_v17  ;;  %v7543_v1 = vpop.f32.mrb[226].mxu1  ;;  %v7475_v7 = vpop.f32.mrb[226].mxu0 }
 0x7d7   :  { %v7544_v50 = vpop.f32.mrb[227].mxu1  ;;  %v7476_v6 = vpop.f32.mrb[227].mxu0 }
 0x7d8   :  { %9396 = vmatprep.mubr.msk.bf16.mxu0 %vm7433_vm4, %v7547_v49  ;;  %9407 = vmatprep.mubr.msk.bf16.mxu1 %vm7433_vm4, %v7479_v37 }
 0x7d9   :  { %7665 = vmatmul.mubr.bf16.vlgmr.msra.gmra.mrb[228].mxu0 %v7546_v0  ;;  %7768 = vmatmul.mubr.bf16.vlgmr.msra.gmra.mrb[228].mxu1 %v7478_v27  ;;  %v9474_v27 = vld [vmem:[%s13959_s11] ss:$0 sm:$0xff] }
 0x7da   :  { %7781 = vmatpush1.bf16.msra.mxu0 %v13717_v10  ;;  %7812 = vmatprep.mubr.bf16.mxu0 %v14054_v2 }
 0x7db   :  { %7782 = vmatprep.subr.bf16.mxu0 %v13727_v21  ;;  %7908 = vmatpush1.bf16.msra.mxu1 %v10743_v23  ;;  %v9475_v23 = vld [vmem:[%s13960_s13] ss:$0 sm:$0xff] }
 0x7dc   :  { %7909 = vmatprep.subr.bf16.mxu1 %v14054_v2 }
 0x7de   :  { %7783 = vmatpush1.bf16.msra.mxu0 %v13725_v39 }
 0x7df   :  { %7953 = vmatprep.subr.bf16.mxu0 %v13719_v4  ;;  %7910 = vmatpush1.bf16.msra.mxu1 %v10744_v48  ;;  %v10754_v4 = vld [vmem:[%s13955_s10 + $0x110] sm:$0xff]  }
 0x7e0   :  { %7911 = vmatprep.subr.bf16.mxu1 %v14054_v2 }
 0x7e1   :  { %9409 = vmatmul.mubr.msk.bf16.vlgmr.msra.gmra.mrb[232].mxu0 %vm7433_vm4, %v9408_v36 }
 0x7e2   :  { %7954 = vmatpush1.bf16.msra.mxu0 %v13717_v10  ;;  %7985 = vmatprep.mubr.bf16.mxu0 %v14054_v2  ;;  %v10751_v10 = vld [vmem:[%s13955_s10 + $0xc8] sm:$0xff]  }
 0x7e3   :  { %7955 = vmatprep.subr.bf16.mxu0 %v13727_v21  ;;  %7912 = vmatpush1.bf16.msra.mxu1 %v10745_v16 }
 0x7e4   :  { %7913 = vmatprep.subr.bf16.mxu1 %v14054_v2 }
 0x7e6   :  { %7956 = vmatpush1.bf16.msra.mxu0 %v13725_v39 }
 0x7e7   :  { %8080 = vmatprep.subr.bf16.mxu0 %v14054_v2  ;;  %7914 = vmatpush1.bf16.msra.mxu1 %v10747_v18 }
 0x7e8   :  { %7915 = vmatprep.subr.bf16.mxu1 %v14054_v2 }
 0x7e9   :  { %9442 = vmatmul.mubr.msk.bf16.vlgmr.msra.gmra.mrb[236].mxu0 %vm7433_vm4, %v9441_v55 }
 0x7ea   :  { %8081 = vmatpush1.bf16.msra.mxu0 %v10746_v11 }
 0x7eb   :  { %8082 = vmatprep.subr.bf16.mxu0 %v14054_v2  ;;  %7916 = vmatpush1.bf16.msra.mxu1 %v10749_v46 }
 0x7ec   :  { %7917 = vmatprep.subr.bf16.mxu1 %v14054_v2 }
 0x7ee   :  { %8083 = vmatpush1.bf16.msra.mxu0 %v10748_v22 }
 0x7ef   :  { %8084 = vmatprep.subr.bf16.mxu0 %v14054_v2  ;;  %7918 = vmatpush1.bf16.msra.mxu1 %v10751_v10 }
 0x7f0   :  { %7919 = vmatprep.subr.bf16.mxu1 %v14054_v2 }
 0x7f2   :  { %8085 = vmatpush1.bf16.msra.mxu0 %v10750_v30 }
 0x7f3   :  { %8086 = vmatprep.subr.bf16.mxu0 %v14054_v2  ;;  %7920 = vmatpush1.bf16.msra.mxu1 %v10753_v12 }
 0x7f4   :  { %7921 = vmatprep.subr.bf16.mxu1 %v14054_v2 }
 0x7f6   :  { %8087 = vmatpush1.bf16.msra.mxu0 %v10752_v51 }
 0x7f7   :  { %8088 = vmatprep.subr.bf16.mxu0 %v14054_v2  ;;  %7922 = vmatpush1.bf16.msra.mxu1 %v10755_v52 }
 0x7f8   :  { %7923 = vmatprep.subr.bf16.mxu1 %v14054_v2 }
 0x7fa   :  { %8089 = vmatpush1.bf16.msra.mxu0 %v10754_v4 }
 0x7fb   :  { %8090 = vmatprep.subr.bf16.mxu0 %v14054_v2  ;;  %7924 = vmatpush1.bf16.msra.mxu1 %v10757_v19 }
 0x7fc   :  { %7925 = vmatprep.subr.bf16.mxu1 %v14054_v2 }
 0x7fe   :  { %8091 = vmatpush1.bf16.msra.mxu0 %v10756_v5 }
 0x7ff   :  { %8092 = vmatprep.subr.bf16.mxu0 %v14054_v2  ;;  %7926 = vmatpush1.bf16.msra.mxu1 %v10759_v35 }
 0x800   :  { %9486 = vmatprep.subr.bf16.mxu1 %v10772_v42 }
 0x802   :  { %8093 = vmatpush1.bf16.msra.mxu0 %v10758_v53 }
 0x803   :  { %8094 = vmatprep.subr.bf16.mxu0 %v14054_v2 }
 0x806   :  { %8095 = vmatpush1.bf16.msra.mxu0 %v10760_v54 }
 0x807   :  { %8096 = vmatprep.subr.bf16.mxu0 %v14054_v2 }
 0x80a   :  { %8097 = vmatpush1.bf16.msra.mxu0 %v10761_v25 }
 0x80b   :  { %8098 = vmatprep.subr.bf16.mxu0 %v14054_v2 }
 0x80e   :  { %8099 = vmatpush1.bf16.msra.mxu0 %v10762_v32 }
 0x8ac   :  { %v7666_v9 = vpop.f32.mrb[228].mxu0  ;;  %v7769_v47 = vpop.f32.mrb[228].mxu1 }
 0x8ad   :  { %v7668_v59 = vpop.f32.mrb[229].mxu0  ;;  %v7770_v40 = vadd.f32 %v7769_v47, %v7666_v9  ;;  %v7771_v57 = vpop.f32.mrb[229].mxu1 }
 0x8ae   :  { %v7669_v39 = vpop.f32.mrb[230].mxu0  ;;  %v7772_v21 = vpop.f32.mrb[230].mxu1 }
 0x8af   :  { %v7670_v24 = vpop.f32.mrb[231].mxu0  ;;  %v7773_v20 = vpop.f32.mrb[231].mxu1 }
 0x8b4   :  { %v7814_v14 = vpop.f32.mrb[232].mxu0 }
 0x8b5   :  { %v7816_v3 = vpop.f32.mrb[233].mxu0  ;;  %v7821_v13 = vpack.c.bf16 %v7814_v14, %v7814_v14 }
 0x8b6   :  { %v7822_v34 = vpack.c.bf16 %v7816_v3, %v7816_v3  ;;  %v7818_v44 = vpop.f32.mrb[234].mxu0 }
 0x8b7   :  { %v7819_v2 = vpop.f32.mrb[235].mxu0 }
 0x8b8   :  { %9440 = vmatprep.mubr.msk.bf16.mxu1 %vm7433_vm4, %v7822_v34 }
 0x8b9   :  { %7940 = vmatmul.mubr.bf16.vlgmr.msra.gmra.mrb[232].mxu1 %v7821_v13 }
 0x8ba   :  { %9487 = vmatpush3.bf16.msra.mxu1 %v10763_v63  ;;  %9494 = vmatprep.mubr.msk.bf16.mxu1 %vm10773_vm6, %v10772_v42 }
 0x8bb   :  { %9488 = vmatprep.subr.bf16.mxu1 %v10772_v42 }
 0x8bc   :  { %v7987_v8 = vpop.f32.mrb[236].mxu0 }
 0x8bd   :  { %v7989_v38 = vpop.f32.mrb[237].mxu0  ;;  %v7994_v26 = vpack.c.bf16 %v7987_v8, %v7987_v8 }
 0x8be   :  { %v7995_v45 = vpack.c.bf16 %v7989_v38, %v7989_v38  ;;  %v7991_v60 = vpop.f32.mrb[238].mxu0  ;;  %9489 = vmatpush3.bf16.msra.mxu1 %v10764_v58 }
 0x8bf   :  { %v7992_v43 = vpop.f32.mrb[239].mxu0  ;;  %9490 = vmatprep.subr.bf16.mxu1 %v10772_v42 }
 0x8c0   :  { %9473 = vmatprep.mubr.msk.bf16.mxu0 %vm7433_vm4, %v7995_v45 }
 0x8c1   :  { %8113 = vmatmul.mubr.bf16.vlgmr.msra.gmra.mrb[240].mxu0 %v7994_v26 }
 0x8c2   :  { %9491 = vmatpush3.bf16.msra.mxu1 %v10765_v15 }
 0x8c3   :  { %9492 = vmatprep.subr.bf16.mxu1 %v10772_v42 }
 0x8c6   :  { %9493 = vmatpush3.bf16.msra.mxu1 %v8172_v62 }
 0x98c   :  { %v7941_v56 = vpop.f32.mrb[232].mxu1 }
 0x98d   :  { %v7947_v31 = vadd.f32 %v7941_v56, %v7770_v40  ;;  %v7943_v61 = vpop.f32.mrb[233].mxu1 }
 0x98e   :  { %v7944_v41 = vpop.f32.mrb[234].mxu1 }
 0x98f   :  { %v7945_v29 = vpop.f32.mrb[235].mxu1 }
 0x994   :  { %v8114_v33 = vpop.f32.mrb[240].mxu0 }
 0x995   :  { %v8120_v17 = vadd.f32 %v8114_v33, %v7947_v31  ;;  %v8116_v49 = vpop.f32.mrb[241].mxu0 }
 0x996   :  { %v8117_v37 = vpop.f32.mrb[242].mxu0 }
 0x997   :  { %v8128_v1 = vadd.f32 %v9474_v27, %v8120_v17  ;;  %v8118_v7 = vpop.f32.mrb[243].mxu0 }
 0x999   :  { %v8129_v0 = vmax.f32 %v8128_v1, 0.0 }
 0x99b   :  { %v8130_v50 = vpack.c.bf16 %v8129_v0, %v8129_v0 }
 0x99d   :  { %9495 = vmatmul.mubr.msk.bf16.vlgmr.msra.gmra.mrb[236].mxu1 %vm8166_vm7, %v8130_v50 }
 0xa70   :  { %v8208_v6 = vpop.f32.mrb[236].mxu1 }
 0xa71   :  { %v8209_v48 = vadd.f32 %v9475_v23, %v8208_v6  ;;  %v9496_v36 = vpop.f32.mrb[237].mxu1 }
 0xa72   :  { %v8211_v16 = vpop.f32.mrb[238].mxu1 }
 0xa73   :  { %v9497_v18 = vpop.f32.mrb[239].mxu1  ;;  %v8215_v55 = vsel %vm8214_vm8, %v8209_v48, -inf }
 0xa74   :  { %8216 = vmax.xlane.f32.xlu0 %v8215_v55 }
 0xb01   :  { %v8217_v11 = vpop.xlane.xlu0 %8216 }
 0xb02   :  { %v8218_v46 = vsub.f32 %v8209_v48, %v8217_v11 }
 0xb04   :  { %v8219_v22 = vmul.f32 1.442695, %v8218_v46 }
 0xb06   :  { %10767 = vpow2.f32 %v8219_v22 }
 0xb10   :  { %v10768_v10 = vpop.eup %10767 }
 0xb11   :  { %v8221_v30 = vsel %vm8214_vm8, %v10768_v10, 0.0 }
 0xb12   :  { %8222 = vadd.xlane.f32.xlu0 %v8221_v30 }
 0xb9f   :  { %v8223_v12 = vpop.xlane.xlu0 %8222 }
 0xba0   :  { %10769 = vlog2.f32 %v8223_v12 }
 0xbaa   :  { %v10770_v51 = vpop.eup %10769 }
 0xbab   :  { %v8225_v52 = vmul.f32 0.6931472, %v10770_v51 }
 0xbad   :  { %v8226_v4 = vadd.f32 %v8225_v52, %v8217_v11 }
 0xbaf   :  { %v8227_v5 = vsub.f32 %v8209_v48, %v8226_v4 }
 0xbb1   :  { %8228 = vst.msk [vmem:[%s13961_s14] sm:$0xff] %vm8214_vm8, %v8227_v5 }

</bundles_post_ra>
